<compile_context>
chip_gen: v5e
topology: v5e:2x2
jax: 0.10.0
libtpu: 0.0.40
codegen_flags: <defaults>
</compile_context>

<pallas_src>
import jax
import jax.numpy as jnp
from jax import lax
from jax.experimental import pallas as pl
from jax.experimental.pallas import tpu as pltpu


# ---------------------------------------------------------------------------
# Pallas kernels
# ---------------------------------------------------------------------------
def _conv_prelu_pool_kernel(p_ref, w_ref, b_ref, a_ref, o_ref):
    # p_ref: (4, TR, K) im2col patches, leading axis = 2x2 pool-window corner.
    # o_ref: (TR, OC) pooled + PReLU'd conv output.
    w = w_ref[...]
    b = b_ref[...]
    alpha = a_ref[0]

    def act(q):
        y = jnp.dot(p_ref[q], w, preferred_element_type=jnp.float32) + b
        return jnp.where(y > 0, y, alpha * y)          # PReLU before pool (PyTorch order)

    o_ref[...] = jnp.maximum(jnp.maximum(act(0), act(1)),
                             jnp.maximum(act(2), act(3)))


def _fc_stack_l2_kernel(x_ref, w1_ref, b1_ref, w2_ref, b2_ref, w3_ref, b3_ref,
                        a_ref, o_ref):
    # Fused fc1+PReLU -> fc2+PReLU -> fc3 -> L2 normalize; intermediates never leave VMEM.
    a1 = a_ref[0]
    a2 = a_ref[1]
    h = jnp.dot(x_ref[...], w1_ref[...], preferred_element_type=jnp.float32) + b1_ref[...]
    h = jnp.where(h > 0, h, a1 * h)
    h = jnp.dot(h, w2_ref[...], preferred_element_type=jnp.float32) + b2_ref[...]
    h = jnp.where(h > 0, h, a2 * h)
    y = jnp.dot(h, w3_ref[...], preferred_element_type=jnp.float32) + b3_ref[...]
    ss = jnp.sum(y * y, axis=1, keepdims=True)
    o_ref[...] = y * lax.rsqrt(ss + 1e-12)


# ---------------------------------------------------------------------------
# pallas_call wrappers (row-tiled 1-D grids, parallel semantics)
# ---------------------------------------------------------------------------
_VMEM_LIMIT = 32 * 1024 * 1024  # explicit: raises v5e's 16 MiB default, safe on v7x


def _round_up(x, m):
    return ((x + m - 1) // m) * m


def conv_prelu_pool(patches, w, b, alpha, max_rows):
    Q, R, K = patches.shape
    OC = w.shape[1]
    TR = min(_round_up(R, 8), max_rows)
    Rp = _round_up(R, TR)
    if Rp != R:
        patches = jnp.pad(patches, ((0, 0), (0, Rp - R), (0, 0)))
    out = pl.pallas_call(
        _conv_prelu_pool_kernel,
        out_shape=jax.ShapeDtypeStruct((Rp, OC), jnp.float32),
        grid=(Rp // TR,),
        in_specs=[
            pl.BlockSpec((Q, TR, K), lambda i: (0, i, 0)),
            pl.BlockSpec((K, OC), lambda i: (0, 0)),
            pl.BlockSpec((1, OC), lambda i: (0, 0)),
            pl.BlockSpec(memory_space=pltpu.MemorySpace.SMEM),
        ],
        out_specs=pl.BlockSpec((TR, OC), lambda i: (i, 0)),
        compiler_params=pltpu.CompilerParams(
            dimension_semantics=("parallel",),
            vmem_limit_bytes=_VMEM_LIMIT,
        ),
    )(patches, w, b.reshape(1, OC), jnp.asarray(alpha, jnp.float32).reshape(1))
    return out[:R] if Rp != R else out


def fc_stack_l2(x, w1, b1, a1, w2, b2, a2, w3, b3, max_rows=512):
    M, K1 = x.shape
    H1 = w1.shape[1]
    H2 = w2.shape[1]
    NO = w3.shape[1]
    TM = min(_round_up(M, 8), max_rows)
    Mp = _round_up(M, TM)
    if Mp != M:
        x = jnp.pad(x, ((0, Mp - M), (0, 0)))
    alphas = jnp.stack([jnp.asarray(a1, jnp.float32), jnp.asarray(a2, jnp.float32)])
    out = pl.pallas_call(
        _fc_stack_l2_kernel,
        out_shape=jax.ShapeDtypeStruct((Mp, NO), jnp.float32),
        grid=(Mp // TM,),
        in_specs=[
            pl.BlockSpec((TM, K1), lambda i: (i, 0)),
            pl.BlockSpec((K1, H1), lambda i: (0, 0)),
            pl.BlockSpec((1, H1), lambda i: (0, 0)),
            pl.BlockSpec((H1, H2), lambda i: (0, 0)),
            pl.BlockSpec((1, H2), lambda i: (0, 0)),
            pl.BlockSpec((H2, NO), lambda i: (0, 0)),
            pl.BlockSpec((1, NO), lambda i: (0, 0)),
            pl.BlockSpec(memory_space=pltpu.MemorySpace.SMEM),
        ],
        out_specs=pl.BlockSpec((TM, NO), lambda i: (i, 0)),
        compiler_params=pltpu.CompilerParams(
            dimension_semantics=("parallel",),
            vmem_limit_bytes=_VMEM_LIMIT,
        ),
    )(x, w1, b1.reshape(1, H1), w2, b2.reshape(1, H2), w3, b3.reshape(1, NO), alphas)
    return out[:M] if Mp != M else out


# ---------------------------------------------------------------------------
# Wrapper-side glue: pool-grouped im2col (pure layout gather, no compute)
# ---------------------------------------------------------------------------
def im2col_pool_grouped(x, kh, kw):
    """(N,H,W,C) NHWC -> (4, N*OHp*OWp, kh*kw*C) conv patches, grouped by the 2x2
    max-pool corner (q = 2*di + dj).  Rows are (b, ohp, owp)-ordered, features are
    (kh, kw, c)-ordered (weights are pre-permuted to match at init)."""
    N, H, W, C = x.shape
    OH, OW = H - kh + 1, W - kw + 1
    OHp, OWp = OH // 2, OW // 2
    groups = []
    for di in range(2):
        for dj in range(2):
            feats = jnp.stack(
                [x[:, di + i:di + i + 2 * OHp:2, dj + j:dj + j + 2 * OWp:2, :]
                 for i in range(kh) for j in range(kw)],
                axis=3)                                   # (N, OHp, OWp, kh*kw, C)
            groups.append(feats.reshape(N * OHp * OWp, kh * kw * C))
    return jnp.stack(groups, axis=0)


# ---------------------------------------------------------------------------
# Parameters: PyTorch-layout init + one-time layout precompute
# ---------------------------------------------------------------------------
def init_params(key):
    ks = jax.random.split(key, 10)

    def u(k, shape, fan_in):
        bound = 1.0 / float(fan_in) ** 0.5
        return jax.random.uniform(k, shape, jnp.float32, -bound, bound)

    return {
        "conv1_w": u(ks[0], (32, 1, 5, 5), 1 * 5 * 5),
        "conv1_b": u(ks[1], (32,), 1 * 5 * 5),
        "prelu1": jnp.float32(0.25),
        "conv2_w": u(ks[2], (64, 32, 5, 5), 32 * 5 * 5),
        "conv2_b": u(ks[3], (64,), 32 * 5 * 5),
        "prelu2": jnp.float32(0.25),
        "fc1_w": u(ks[4], (256, 64 * 4 * 4), 64 * 4 * 4),
        "fc1_b": u(ks[5], (256,), 64 * 4 * 4),
        "prelu3": jnp.float32(0.25),
        "fc2_w": u(ks[6], (256, 256), 256),
        "fc2_b": u(ks[7], (256,), 256),
        "prelu4": jnp.float32(0.25),
        "fc3_w": u(ks[8], (2, 256), 256),
        "fc3_b": u(ks[9], (2,), 256),
    }


def prepare_params(p):
    """One-time layout transforms so the forward pass has zero weight reshuffling."""
    def conv_w(w):  # PyTorch (OC, IC, KH, KW) -> (KH*KW*IC, OC), matching (kh,kw,c) patches
        oc = w.shape[0]
        return jnp.transpose(w, (0, 2, 3, 1)).reshape(oc, -1).T

    # Fold PyTorch's NCHW flatten (c,h,w) into fc1's columns so the NHWC (h,w,c)
    # flatten of the pooled conv2 output multiplies directly.
    fc1 = p["fc1_w"].reshape(256, 64, 4, 4)
    fc1 = jnp.transpose(fc1, (0, 2, 3, 1)).reshape(256, 64 * 4 * 4)

    return {
        "w1": conv_w(p["conv1_w"]), "b1": p["conv1_b"], "a1": p["prelu1"],
        "w2": conv_w(p["conv2_w"]), "b2": p["conv2_b"], "a2": p["prelu2"],
        "fw1": fc1.T, "fb1": p["fc1_b"], "fa1": p["prelu3"],
        "fw2": p["fc2_w"].T, "fb2": p["fc2_b"], "fa2": p["prelu4"],
        "fw3": p["fc3_w"].T, "fb3": p["fc3_b"],
    }


# ---------------------------------------------------------------------------
# Forward pass (EmbeddingNetL2)
# ---------------------------------------------------------------------------
def embedding_net_l2(pp, x_nchw):
    N = x_nchw.shape[0]
    x = jnp.transpose(x_nchw, (0, 2, 3, 1))                       # NCHW -> NHWC (N,28,28,1)

    # conv1 (1->32, k=5) + PReLU + 2x2 max-pool, fused in one kernel
    p1 = im2col_pool_grouped(x, 5, 5)                             # (4, N*144, 25)
    h = conv_prelu_pool(p1, pp["w1"], pp["b1"], pp["a1"], max_rows=1024)   # (N*144, 32)
    h = h.reshape(N, 12, 12, 32)

    # conv2 (32->64, k=5) + PReLU + 2x2 max-pool, fused in one kernel
    p2 = im2col_pool_grouped(h, 5, 5)                             # (4, N*16, 800)
    h = conv_prelu_pool(p2, pp["w2"], pp["b2"], pp["a2"], max_rows=512)    # (N*16, 64)

    # NHWC (h,w,c) flatten; fc1 columns were pre-permuted to match PyTorch's NCHW view
    h = h.reshape(N, 64 * 4 * 4)

    # fused fc1+PReLU / fc2+PReLU / fc3 + L2-normalize
    return fc_stack_l2(h, pp["fw1"], pp["fb1"], pp["fa1"],
                       pp["fw2"], pp["fb2"], pp["fa2"],
                       pp["fw3"], pp["fb3"])


# ---------------------------------------------------------------------------
# Pure-JAX reference (PyTorch layout) for correctness check
# ---------------------------------------------------------------------------
def _reference_forward(params, x):
    prec = lax.Precision.HIGHEST

    def prelu(v, a):
        return jnp.where(v > 0, v, a * v)

    def pool(v):  # (N,C,H,W), 2x2 stride 2
        n, c, hh, ww = v.shape
        return v.reshape(n, c, hh // 2, 2, ww // 2, 2).max(axis=(3, 5))

    h = lax.conv_general_dilated(x, params["conv1_w"], (1, 1), "VALID",
                                 dimension_numbers=("NCHW", "OIHW", "NCHW"),
                                 precision=prec) + params["conv1_b"][None, :, None, None]
    h = pool(prelu(h, params["prelu1"]))
    h = lax.conv_general_dilated(h, params["conv2_w"], (1, 1), "VALID",
                                 dimension_numbers=("NCHW", "OIHW", "NCHW"),
                                 precision=prec) + params["conv2_b"][None, :, None, None]
    h = pool(prelu(h, params["prelu2"]))
    h = h.reshape(h.shape[0], -1)
    h = prelu(jnp.dot(h, params["fc1_w"].T, precision=prec) + params["fc1_b"], params["prelu3"])
    h = prelu(jnp.dot(h, params["fc2_w"].T, precision=prec) + params["fc2_b"], params["prelu4"])
    y = jnp.dot(h, params["fc3_w"].T, precision=prec) + params["fc3_b"]
    return y / jnp.sqrt(jnp.sum(y * y, axis=1, keepdims=True))


if __name__ == "__main__":
    key = jax.random.PRNGKey(0)
    k_param, k_x = jax.random.split(key)
    params = init_params(k_param)
    pp = prepare_params(params)
    # EmbeddingNet implies 28x28 single-channel inputs (28->24->12->8->4 => 64*4*4).
    x = jax.random.normal(k_x, (2, 1, 28, 28), dtype=jnp.float32)

    fwd = jax.jit(embedding_net_l2)
    out = jax.block_until_ready(fwd(pp, x))

    assert out.shape == (2, 2)
    norms = jnp.sqrt(jnp.sum(out * out, axis=1))
    assert bool(jnp.all(jnp.abs(norms - 1.0) < 1e-4))

    ref = _reference_forward(params, x)
    assert bool(jnp.max(jnp.abs(out - ref)) < 5e-3)
    print("KERNEL_OK")
</pallas_src>

<mosaic_0001>
module attributes {stable_mosaic.version = 11 : i64} {
  func.func @_conv_prelu_pool_kernel(%arg0: i32, %arg1: memref<4x288x25xf32, #tpu.memory_space<vmem>>, %arg2: memref<25x32xf32, #tpu.memory_space<vmem>>, %arg3: memref<1x32xf32, #tpu.memory_space<vmem>>, %arg4: memref<1xf32, #tpu.memory_space<smem>>, %arg5: memref<288x32xf32, #tpu.memory_space<vmem>>) attributes {dimension_semantics = [#tpu.dimension_semantics<parallel>], iteration_bounds = array<i64: 1>, scalar_prefetch = 0 : i64, scratch_operands = 0 : i64, tpu.core_type = #tpu.core_type<tc>, window_params = [{transform_indices = @transform_0, window_bounds = array<i64: 4, 288, 25>}, {pipeline_mode = #tpu.pipeline_mode<synchronous>, transform_indices = @transform_1, window_bounds = array<i64: 25, 32>}, {pipeline_mode = #tpu.pipeline_mode<synchronous>, transform_indices = @transform_2, window_bounds = array<i64: 1, 32>}, {transform_indices = @transform_3, window_bounds = array<i64: 1>}, {transform_indices = @transform_4, window_bounds = array<i64: 288, 32>}]} {
    %c0 = arith.constant 0 : index
    %c0_0 = arith.constant 0 : index
    %0 = vector.load %arg2[%c0, %c0_0] : memref<25x32xf32, #tpu.memory_space<vmem>>, vector<25x32xf32>
    %c0_1 = arith.constant 0 : index
    %c0_2 = arith.constant 0 : index
    %1 = vector.load %arg3[%c0_1, %c0_2] : memref<1x32xf32, #tpu.memory_space<vmem>>, vector<1x32xf32>
    %c0_3 = arith.constant 0 : index
    %2 = memref.load %arg4[%c0_3] : memref<1xf32, #tpu.memory_space<smem>>
    %c0_4 = arith.constant 0 : index
    %c0_5 = arith.constant 0 : index
    %c0_6 = arith.constant 0 : index
    %3 = vector.load %arg1[%c0_4, %c0_5, %c0_6] : memref<4x288x25xf32, #tpu.memory_space<vmem>>, vector<1x288x25xf32>
    %4 = vector.shape_cast %3 : vector<1x288x25xf32> to vector<288x25xf32>
    %cst = arith.constant dense<0.000000e+00> : vector<288x32xf32>
    %5 = tpu.matmul %4, %0, %cst {dimension_numbers = #tpu.dot_dimension_numbers<[1], [0], [0], [1], [0, 0, 1, 1], [], []>} : vector<288x25xf32>, vector<25x32xf32>, vector<288x32xf32> -> vector<288x32xf32>
    %6 = vector.broadcast %1 : vector<1x32xf32> to vector<288x32xf32>
    %7 = arith.addf %5, %6 : vector<288x32xf32>
    %cst_7 = arith.constant 0.000000e+00 : f32
    %8 = vector.broadcast %cst_7 : f32 to vector<288x32xf32>
    %9 = arith.cmpf ogt, %7, %8 : vector<288x32xf32>
    %10 = vector.broadcast %2 : f32 to vector<288x32xf32>
    %11 = arith.mulf %10, %7 : vector<288x32xf32>
    %12 = arith.select %9, %7, %11 : vector<288x32xi1>, vector<288x32xf32>
    %c1 = arith.constant 1 : index
    %c0_8 = arith.constant 0 : index
    %c0_9 = arith.constant 0 : index
    %13 = vector.load %arg1[%c1, %c0_8, %c0_9] : memref<4x288x25xf32, #tpu.memory_space<vmem>>, vector<1x288x25xf32>
    %14 = vector.shape_cast %13 : vector<1x288x25xf32> to vector<288x25xf32>
    %cst_10 = arith.constant dense<0.000000e+00> : vector<288x32xf32>
    %15 = tpu.matmul %14, %0, %cst_10 {dimension_numbers = #tpu.dot_dimension_numbers<[1], [0], [0], [1], [0, 0, 1, 1], [], []>} : vector<288x25xf32>, vector<25x32xf32>, vector<288x32xf32> -> vector<288x32xf32>
    %16 = vector.broadcast %1 : vector<1x32xf32> to vector<288x32xf32>
    %17 = arith.addf %15, %16 : vector<288x32xf32>
    %cst_11 = arith.constant 0.000000e+00 : f32
    %18 = vector.broadcast %cst_11 : f32 to vector<288x32xf32>
    %19 = arith.cmpf ogt, %17, %18 : vector<288x32xf32>
    %20 = vector.broadcast %2 : f32 to vector<288x32xf32>
    %21 = arith.mulf %20, %17 : vector<288x32xf32>
    %22 = arith.select %19, %17, %21 : vector<288x32xi1>, vector<288x32xf32>
    %23 = arith.maximumf %12, %22 : vector<288x32xf32>
    %c2 = arith.constant 2 : index
    %c0_12 = arith.constant 0 : index
    %c0_13 = arith.constant 0 : index
    %24 = vector.load %arg1[%c2, %c0_12, %c0_13] : memref<4x288x25xf32, #tpu.memory_space<vmem>>, vector<1x288x25xf32>
    %25 = vector.shape_cast %24 : vector<1x288x25xf32> to vector<288x25xf32>
    %cst_14 = arith.constant dense<0.000000e+00> : vector<288x32xf32>
    %26 = tpu.matmul %25, %0, %cst_14 {dimension_numbers = #tpu.dot_dimension_numbers<[1], [0], [0], [1], [0, 0, 1, 1], [], []>} : vector<288x25xf32>, vector<25x32xf32>, vector<288x32xf32> -> vector<288x32xf32>
    %27 = vector.broadcast %1 : vector<1x32xf32> to vector<288x32xf32>
    %28 = arith.addf %26, %27 : vector<288x32xf32>
    %cst_15 = arith.constant 0.000000e+00 : f32
    %29 = vector.broadcast %cst_15 : f32 to vector<288x32xf32>
    %30 = arith.cmpf ogt, %28, %29 : vector<288x32xf32>
    %31 = vector.broadcast %2 : f32 to vector<288x32xf32>
    %32 = arith.mulf %31, %28 : vector<288x32xf32>
    %33 = arith.select %30, %28, %32 : vector<288x32xi1>, vector<288x32xf32>
    %c3 = arith.constant 3 : index
    %c0_16 = arith.constant 0 : index
    %c0_17 = arith.constant 0 : index
    %34 = vector.load %arg1[%c3, %c0_16, %c0_17] : memref<4x288x25xf32, #tpu.memory_space<vmem>>, vector<1x288x25xf32>
    %35 = vector.shape_cast %34 : vector<1x288x25xf32> to vector<288x25xf32>
    %cst_18 = arith.constant dense<0.000000e+00> : vector<288x32xf32>
    %36 = tpu.matmul %35, %0, %cst_18 {dimension_numbers = #tpu.dot_dimension_numbers<[1], [0], [0], [1], [0, 0, 1, 1], [], []>} : vector<288x25xf32>, vector<25x32xf32>, vector<288x32xf32> -> vector<288x32xf32>
    %37 = vector.broadcast %1 : vector<1x32xf32> to vector<288x32xf32>
    %38 = arith.addf %36, %37 : vector<288x32xf32>
    %cst_19 = arith.constant 0.000000e+00 : f32
    %39 = vector.broadcast %cst_19 : f32 to vector<288x32xf32>
    %40 = arith.cmpf ogt, %38, %39 : vector<288x32xf32>
    %41 = vector.broadcast %2 : f32 to vector<288x32xf32>
    %42 = arith.mulf %41, %38 : vector<288x32xf32>
    %43 = arith.select %40, %38, %42 : vector<288x32xi1>, vector<288x32xf32>
    %44 = arith.maximumf %33, %43 : vector<288x32xf32>
    %45 = arith.maximumf %23, %44 : vector<288x32xf32>
    %c0_20 = arith.constant 0 : index
    %c0_21 = arith.constant 0 : index
    %46 = vector.load %arg5[%c0_20, %c0_21] : memref<288x32xf32, #tpu.memory_space<vmem>>, vector<288x32xf32>
    tpu.vector_store %arg5[%c0_20, %c0_21], %45 {strides = array<i32>} : memref<288x32xf32, #tpu.memory_space<vmem>>, vector<288x32xf32>,
    return
  }
  func.func @transform_0(%arg0: i32) -> (i32, i32, i32) {
    %c0_i32 = arith.constant 0 : i32
    %c0_i32_0 = arith.constant 0 : i32
    %c0_i32_1 = arith.constant 0 : i32
    return %c0_i32, %arg0, %c0_i32_0 : i32, i32, i32
  }
  func.func @transform_1(%arg0: i32) -> (i32, i32) {
    %c0_i32 = arith.constant 0 : i32
    %c0_i32_0 = arith.constant 0 : i32
    %c0_i32_1 = arith.constant 0 : i32
    return %c0_i32, %c0_i32_0 : i32, i32
  }
  func.func @transform_2(%arg0: i32) -> (i32, i32) {
    %c0_i32 = arith.constant 0 : i32
    %c0_i32_0 = arith.constant 0 : i32
    %c0_i32_1 = arith.constant 0 : i32
    return %c0_i32, %c0_i32_0 : i32, i32
  }
  func.func @transform_3(%arg0: i32) -> i32 {
    %c0_i32 = arith.constant 0 : i32
    %c0_i32_0 = arith.constant 0 : i32
    return %c0_i32 : i32
  }
  func.func @transform_4(%arg0: i32) -> (i32, i32) {
    %c0_i32 = arith.constant 0 : i32
    %c0_i32_0 = arith.constant 0 : i32
    return %arg0, %c0_i32 : i32, i32
  }
}

module attributes {stable_mosaic.version = 11 : i64} {
  func.func @_conv_prelu_pool_kernel(%arg0: i32, %arg1: memref<4x32x800xf32, #tpu.memory_space<vmem>>, %arg2: memref<800x64xf32, #tpu.memory_space<vmem>>, %arg3: memref<1x64xf32, #tpu.memory_space<vmem>>, %arg4: memref<1xf32, #tpu.memory_space<smem>>, %arg5: memref<32x64xf32, #tpu.memory_space<vmem>>) attributes {dimension_semantics = [#tpu.dimension_semantics<parallel>], iteration_bounds = array<i64: 1>, scalar_prefetch = 0 : i64, scratch_operands = 0 : i64, tpu.core_type = #tpu.core_type<tc>, window_params = [{transform_indices = @transform_0, window_bounds = array<i64: 4, 32, 800>}, {pipeline_mode = #tpu.pipeline_mode<synchronous>, transform_indices = @transform_1, window_bounds = array<i64: 800, 64>}, {pipeline_mode = #tpu.pipeline_mode<synchronous>, transform_indices = @transform_2, window_bounds = array<i64: 1, 64>}, {transform_indices = @transform_3, window_bounds = array<i64: 1>}, {transform_indices = @transform_4, window_bounds = array<i64: 32, 64>}]} {
    %c0 = arith.constant 0 : index
    %c0_0 = arith.constant 0 : index
    %0 = vector.load %arg2[%c0, %c0_0] : memref<800x64xf32, #tpu.memory_space<vmem>>, vector<800x64xf32>
    %c0_1 = arith.constant 0 : index
    %c0_2 = arith.constant 0 : index
    %1 = vector.load %arg3[%c0_1, %c0_2] : memref<1x64xf32, #tpu.memory_space<vmem>>, vector<1x64xf32>
    %c0_3 = arith.constant 0 : index
    %2 = memref.load %arg4[%c0_3] : memref<1xf32, #tpu.memory_space<smem>>
    %c0_4 = arith.constant 0 : index
    %c0_5 = arith.constant 0 : index
    %c0_6 = arith.constant 0 : index
    %3 = vector.load %arg1[%c0_4, %c0_5, %c0_6] : memref<4x32x800xf32, #tpu.memory_space<vmem>>, vector<1x32x800xf32>
    %4 = vector.shape_cast %3 : vector<1x32x800xf32> to vector<32x800xf32>
    %cst = arith.constant dense<0.000000e+00> : vector<32x64xf32>
    %5 = tpu.matmul %4, %0, %cst {dimension_numbers = #tpu.dot_dimension_numbers<[1], [0], [0], [1], [0, 0, 1, 1], [], []>} : vector<32x800xf32>, vector<800x64xf32>, vector<32x64xf32> -> vector<32x64xf32>
    %6 = vector.broadcast %1 : vector<1x64xf32> to vector<32x64xf32>
    %7 = arith.addf %5, %6 : vector<32x64xf32>
    %cst_7 = arith.constant 0.000000e+00 : f32
    %8 = vector.broadcast %cst_7 : f32 to vector<32x64xf32>
    %9 = arith.cmpf ogt, %7, %8 : vector<32x64xf32>
    %10 = vector.broadcast %2 : f32 to vector<32x64xf32>
    %11 = arith.mulf %10, %7 : vector<32x64xf32>
    %12 = arith.select %9, %7, %11 : vector<32x64xi1>, vector<32x64xf32>
    %c1 = arith.constant 1 : index
    %c0_8 = arith.constant 0 : index
    %c0_9 = arith.constant 0 : index
    %13 = vector.load %arg1[%c1, %c0_8, %c0_9] : memref<4x32x800xf32, #tpu.memory_space<vmem>>, vector<1x32x800xf32>
    %14 = vector.shape_cast %13 : vector<1x32x800xf32> to vector<32x800xf32>
    %cst_10 = arith.constant dense<0.000000e+00> : vector<32x64xf32>
    %15 = tpu.matmul %14, %0, %cst_10 {dimension_numbers = #tpu.dot_dimension_numbers<[1], [0], [0], [1], [0, 0, 1, 1], [], []>} : vector<32x800xf32>, vector<800x64xf32>, vector<32x64xf32> -> vector<32x64xf32>
    %16 = vector.broadcast %1 : vector<1x64xf32> to vector<32x64xf32>
    %17 = arith.addf %15, %16 : vector<32x64xf32>
    %cst_11 = arith.constant 0.000000e+00 : f32
    %18 = vector.broadcast %cst_11 : f32 to vector<32x64xf32>
    %19 = arith.cmpf ogt, %17, %18 : vector<32x64xf32>
    %20 = vector.broadcast %2 : f32 to vector<32x64xf32>
    %21 = arith.mulf %20, %17 : vector<32x64xf32>
    %22 = arith.select %19, %17, %21 : vector<32x64xi1>, vector<32x64xf32>
    %23 = arith.maximumf %12, %22 : vector<32x64xf32>
    %c2 = arith.constant 2 : index
    %c0_12 = arith.constant 0 : index
    %c0_13 = arith.constant 0 : index
    %24 = vector.load %arg1[%c2, %c0_12, %c0_13] : memref<4x32x800xf32, #tpu.memory_space<vmem>>, vector<1x32x800xf32>
    %25 = vector.shape_cast %24 : vector<1x32x800xf32> to vector<32x800xf32>
    %cst_14 = arith.constant dense<0.000000e+00> : vector<32x64xf32>
    %26 = tpu.matmul %25, %0, %cst_14 {dimension_numbers = #tpu.dot_dimension_numbers<[1], [0], [0], [1], [0, 0, 1, 1], [], []>} : vector<32x800xf32>, vector<800x64xf32>, vector<32x64xf32> -> vector<32x64xf32>
    %27 = vector.broadcast %1 : vector<1x64xf32> to vector<32x64xf32>
    %28 = arith.addf %26, %27 : vector<32x64xf32>
    %cst_15 = arith.constant 0.000000e+00 : f32
    %29 = vector.broadcast %cst_15 : f32 to vector<32x64xf32>
    %30 = arith.cmpf ogt, %28, %29 : vector<32x64xf32>
    %31 = vector.broadcast %2 : f32 to vector<32x64xf32>
    %32 = arith.mulf %31, %28 : vector<32x64xf32>
    %33 = arith.select %30, %28, %32 : vector<32x64xi1>, vector<32x64xf32>
    %c3 = arith.constant 3 : index
    %c0_16 = arith.constant 0 : index
    %c0_17 = arith.constant 0 : index
    %34 = vector.load %arg1[%c3, %c0_16, %c0_17] : memref<4x32x800xf32, #tpu.memory_space<vmem>>, vector<1x32x800xf32>
    %35 = vector.shape_cast %34 : vector<1x32x800xf32> to vector<32x800xf32>
    %cst_18 = arith.constant dense<0.000000e+00> : vector<32x64xf32>
    %36 = tpu.matmul %35, %0, %cst_18 {dimension_numbers = #tpu.dot_dimension_numbers<[1], [0], [0], [1], [0, 0, 1, 1], [], []>} : vector<32x800xf32>, vector<800x64xf32>, vector<32x64xf32> -> vector<32x64xf32>
    %37 = vector.broadcast %1 : vector<1x64xf32> to vector<32x64xf32>
    %38 = arith.addf %36, %37 : vector<32x64xf32>
    %cst_19 = arith.constant 0.000000e+00 : f32
    %39 = vector.broadcast %cst_19 : f32 to vector<32x64xf32>
    %40 = arith.cmpf ogt, %38, %39 : vector<32x64xf32>
    %41 = vector.broadcast %2 : f32 to vector<32x64xf32>
    %42 = arith.mulf %41, %38 : vector<32x64xf32>
    %43 = arith.select %40, %38, %42 : vector<32x64xi1>, vector<32x64xf32>
    %44 = arith.maximumf %33, %43 : vector<32x64xf32>
    %45 = arith.maximumf %23, %44 : vector<32x64xf32>
    %c0_20 = arith.constant 0 : index
    %c0_21 = arith.constant 0 : index
    %46 = vector.load %arg5[%c0_20, %c0_21] : memref<32x64xf32, #tpu.memory_space<vmem>>, vector<32x64xf32>
    tpu.vector_store %arg5[%c0_20, %c0_21], %45 {strides = array<i32>} : memref<32x64xf32, #tpu.memory_space<vmem>>, vector<32x64xf32>,
    return
  }
  func.func @transform_0(%arg0: i32) -> (i32, i32, i32) {
    %c0_i32 = arith.constant 0 : i32
    %c0_i32_0 = arith.constant 0 : i32
    %c0_i32_1 = arith.constant 0 : i32
    return %c0_i32, %arg0, %c0_i32_0 : i32, i32, i32
  }
  func.func @transform_1(%arg0: i32) -> (i32, i32) {
    %c0_i32 = arith.constant 0 : i32
    %c0_i32_0 = arith.constant 0 : i32
    %c0_i32_1 = arith.constant 0 : i32
    return %c0_i32, %c0_i32_0 : i32, i32
  }
  func.func @transform_2(%arg0: i32) -> (i32, i32) {
    %c0_i32 = arith.constant 0 : i32
    %c0_i32_0 = arith.constant 0 : i32
    %c0_i32_1 = arith.constant 0 : i32
    return %c0_i32, %c0_i32_0 : i32, i32
  }
  func.func @transform_3(%arg0: i32) -> i32 {
    %c0_i32 = arith.constant 0 : i32
    %c0_i32_0 = arith.constant 0 : i32
    return %c0_i32 : i32
  }
  func.func @transform_4(%arg0: i32) -> (i32, i32) {
    %c0_i32 = arith.constant 0 : i32
    %c0_i32_0 = arith.constant 0 : i32
    return %arg0, %c0_i32 : i32, i32
  }
}

module attributes {stable_mosaic.version = 11 : i64} {
  func.func @_fc_stack_l2_kernel(%arg0: i32, %arg1: memref<8x1024xf32, #tpu.memory_space<vmem>>, %arg2: memref<1024x256xf32, #tpu.memory_space<vmem>>, %arg3: memref<1x256xf32, #tpu.memory_space<vmem>>, %arg4: memref<256x256xf32, #tpu.memory_space<vmem>>, %arg5: memref<1x256xf32, #tpu.memory_space<vmem>>, %arg6: memref<256x2xf32, #tpu.memory_space<vmem>>, %arg7: memref<1x2xf32, #tpu.memory_space<vmem>>, %arg8: memref<2xf32, #tpu.memory_space<smem>>, %arg9: memref<8x2xf32, #tpu.memory_space<vmem>>) attributes {dimension_semantics = [#tpu.dimension_semantics<parallel>], iteration_bounds = array<i64: 1>, scalar_prefetch = 0 : i64, scratch_operands = 0 : i64, tpu.core_type = #tpu.core_type<tc>, window_params = [{transform_indices = @transform_0, window_bounds = array<i64: 8, 1024>}, {pipeline_mode = #tpu.pipeline_mode<synchronous>, transform_indices = @transform_1, window_bounds = array<i64: 1024, 256>}, {pipeline_mode = #tpu.pipeline_mode<synchronous>, transform_indices = @transform_2, window_bounds = array<i64: 1, 256>}, {pipeline_mode = #tpu.pipeline_mode<synchronous>, transform_indices = @transform_3, window_bounds = array<i64: 256, 256>}, {pipeline_mode = #tpu.pipeline_mode<synchronous>, transform_indices = @transform_4, window_bounds = array<i64: 1, 256>}, {pipeline_mode = #tpu.pipeline_mode<synchronous>, transform_indices = @transform_5, window_bounds = array<i64: 256, 2>}, {pipeline_mode = #tpu.pipeline_mode<synchronous>, transform_indices = @transform_6, window_bounds = array<i64: 1, 2>}, {transform_indices = @transform_7, window_bounds = array<i64: 2>}, {transform_indices = @transform_8, window_bounds = array<i64: 8, 2>}]} {
    %c0 = arith.constant 0 : index
    %0 = memref.load %arg8[%c0] : memref<2xf32, #tpu.memory_space<smem>>
    %c1 = arith.constant 1 : index
    %1 = memref.load %arg8[%c1] : memref<2xf32, #tpu.memory_space<smem>>
    %c0_0 = arith.constant 0 : index
    %c0_1 = arith.constant 0 : index
    %2 = vector.load %arg1[%c0_0, %c0_1] : memref<8x1024xf32, #tpu.memory_space<vmem>>, vector<8x1024xf32>
    %c0_2 = arith.constant 0 : index
    %c0_3 = arith.constant 0 : index
    %3 = vector.load %arg2[%c0_2, %c0_3] : memref<1024x256xf32, #tpu.memory_space<vmem>>, vector<1024x256xf32>
    %cst = arith.constant dense<0.000000e+00> : vector<8x256xf32>
    %4 = tpu.matmul %2, %3, %cst {dimension_numbers = #tpu.dot_dimension_numbers<[1], [0], [0], [1], [0, 0, 1, 1], [], []>} : vector<8x1024xf32>, vector<1024x256xf32>, vector<8x256xf32> -> vector<8x256xf32>
    %c0_4 = arith.constant 0 : index
    %c0_5 = arith.constant 0 : index
    %5 = vector.load %arg3[%c0_4, %c0_5] : memref<1x256xf32, #tpu.memory_space<vmem>>, vector<1x256xf32>
    %6 = vector.broadcast %5 : vector<1x256xf32> to vector<8x256xf32>
    %7 = arith.addf %4, %6 : vector<8x256xf32>
    %cst_6 = arith.constant 0.000000e+00 : f32
    %8 = vector.broadcast %cst_6 : f32 to vector<8x256xf32>
    %9 = arith.cmpf ogt, %7, %8 : vector<8x256xf32>
    %10 = vector.broadcast %0 : f32 to vector<8x256xf32>
    %11 = arith.mulf %10, %7 : vector<8x256xf32>
    %12 = arith.select %9, %7, %11 : vector<8x256xi1>, vector<8x256xf32>
    %c0_7 = arith.constant 0 : index
    %c0_8 = arith.constant 0 : index
    %13 = vector.load %arg4[%c0_7, %c0_8] : memref<256x256xf32, #tpu.memory_space<vmem>>, vector<256x256xf32>
    %cst_9 = arith.constant dense<0.000000e+00> : vector<8x256xf32>
    %14 = tpu.matmul %12, %13, %cst_9 {dimension_numbers = #tpu.dot_dimension_numbers<[1], [0], [0], [1], [0, 0, 1, 1], [], []>} : vector<8x256xf32>, vector<256x256xf32>, vector<8x256xf32> -> vector<8x256xf32>
    %c0_10 = arith.constant 0 : index
    %c0_11 = arith.constant 0 : index
    %15 = vector.load %arg5[%c0_10, %c0_11] : memref<1x256xf32, #tpu.memory_space<vmem>>, vector<1x256xf32>
    %16 = vector.broadcast %15 : vector<1x256xf32> to vector<8x256xf32>
    %17 = arith.addf %14, %16 : vector<8x256xf32>
    %cst_12 = arith.constant 0.000000e+00 : f32
    %18 = vector.broadcast %cst_12 : f32 to vector<8x256xf32>
    %19 = arith.cmpf ogt, %17, %18 : vector<8x256xf32>
    %20 = vector.broadcast %1 : f32 to vector<8x256xf32>
    %21 = arith.mulf %20, %17 : vector<8x256xf32>
    %22 = arith.select %19, %17, %21 : vector<8x256xi1>, vector<8x256xf32>
    %c0_13 = arith.constant 0 : index
    %c0_14 = arith.constant 0 : index
    %23 = vector.load %arg6[%c0_13, %c0_14] : memref<256x2xf32, #tpu.memory_space<vmem>>, vector<256x2xf32>
    %cst_15 = arith.constant dense<0.000000e+00> : vector<8x2xf32>
    %24 = tpu.matmul %22, %23, %cst_15 {dimension_numbers = #tpu.dot_dimension_numbers<[1], [0], [0], [1], [0, 0, 1, 1], [], []>} : vector<8x256xf32>, vector<256x2xf32>, vector<8x2xf32> -> vector<8x2xf32>
    %c0_16 = arith.constant 0 : index
    %c0_17 = arith.constant 0 : index
    %25 = vector.load %arg7[%c0_16, %c0_17] : memref<1x2xf32, #tpu.memory_space<vmem>>, vector<1x2xf32>
    %26 = vector.broadcast %25 : vector<1x2xf32> to vector<8x2xf32>
    %27 = arith.addf %24, %26 : vector<8x2xf32>
    %28 = arith.mulf %27, %27 : vector<8x2xf32>
    %cst_18 = arith.constant dense<0.000000e+00> : vector<8xf32>
    %29 = vector.multi_reduction <add>, %28, %cst_18 [1] : vector<8x2xf32> to vector<8xf32>
    %30 = vector.shape_cast %29 : vector<8xf32> to vector<8x1xf32>
    %cst_19 = arith.constant 9.99999996E-13 : f32
    %31 = vector.broadcast %cst_19 : f32 to vector<8x1xf32>
    %32 = arith.addf %30, %31 : vector<8x1xf32>
    %33 = math.rsqrt %32 : vector<8x1xf32>
    %34 = vector.broadcast %33 : vector<8x1xf32> to vector<8x2xf32>
    %35 = arith.mulf %27, %34 : vector<8x2xf32>
    %c0_20 = arith.constant 0 : index
    %c0_21 = arith.constant 0 : index
    %36 = vector.load %arg9[%c0_20, %c0_21] : memref<8x2xf32, #tpu.memory_space<vmem>>, vector<8x2xf32>
    tpu.vector_store %arg9[%c0_20, %c0_21], %35 {strides = array<i32>} : memref<8x2xf32, #tpu.memory_space<vmem>>, vector<8x2xf32>,
    return
  }
  func.func @transform_0(%arg0: i32) -> (i32, i32) {
    %c0_i32 = arith.constant 0 : i32
    %c0_i32_0 = arith.constant 0 : i32
    return %arg0, %c0_i32 : i32, i32
  }
  func.func @transform_1(%arg0: i32) -> (i32, i32) {
    %c0_i32 = arith.constant 0 : i32
    %c0_i32_0 = arith.constant 0 : i32
    %c0_i32_1 = arith.constant 0 : i32
    return %c0_i32, %c0_i32_0 : i32, i32
  }
  func.func @transform_2(%arg0: i32) -> (i32, i32) {
    %c0_i32 = arith.constant 0 : i32
    %c0_i32_0 = arith.constant 0 : i32
    %c0_i32_1 = arith.constant 0 : i32
    return %c0_i32, %c0_i32_0 : i32, i32
  }
  func.func @transform_3(%arg0: i32) -> (i32, i32) {
    %c0_i32 = arith.constant 0 : i32
    %c0_i32_0 = arith.constant 0 : i32
    %c0_i32_1 = arith.constant 0 : i32
    return %c0_i32, %c0_i32_0 : i32, i32
  }
  func.func @transform_4(%arg0: i32) -> (i32, i32) {
    %c0_i32 = arith.constant 0 : i32
    %c0_i32_0 = arith.constant 0 : i32
    %c0_i32_1 = arith.constant 0 : i32
    return %c0_i32, %c0_i32_0 : i32, i32
  }
  func.func @transform_5(%arg0: i32) -> (i32, i32) {
    %c0_i32 = arith.constant 0 : i32
    %c0_i32_0 = arith.constant 0 : i32
    %c0_i32_1 = arith.constant 0 : i32
    return %c0_i32, %c0_i32_0 : i32, i32
  }
  func.func @transform_6(%arg0: i32) -> (i32, i32) {
    %c0_i32 = arith.constant 0 : i32
    %c0_i32_0 = arith.constant 0 : i32
    %c0_i32_1 = arith.constant 0 : i32
    return %c0_i32, %c0_i32_0 : i32, i32
  }
  func.func @transform_7(%arg0: i32) -> i32 {
    %c0_i32 = arith.constant 0 : i32
    %c0_i32_0 = arith.constant 0 : i32
    return %c0_i32 : i32
  }
  func.func @transform_8(%arg0: i32) -> (i32, i32) {
    %c0_i32 = arith.constant 0 : i32
    %c0_i32_0 = arith.constant 0 : i32
    return %arg0, %c0_i32 : i32, i32
  }
}

</mosaic_0001>

<bundles_post_ra>
// kernel: embedding_net_l2.3
= control target key start
LH: loop header
LB: loop body
LE: loop exit
PB: predicated region body
PF: predicated region fallthrough
CT: control target
= control target key end

     0   :  { %vm172_vm0 = vcmask 1040384   ;;  %vm63_vm1 = vcmask 203776   ;;  %vm1652_vm6 = vcmask 261120   ;;  %s3011_s1 = inlined_call_operand.vmem [shape: f32[25,32], index: 1, kind: input, shape index: {}]   ;;  %s3012_s0 = inlined_call_operand.vmem [shape: f32[4,288,25], index: 0, kind: input, shape index: {}]   ;;  %s3013_s2 = inlined_call_operand.vmem [shape: f32[1,32], index: 2, kind: input, shape index: {}]   ;;  %s3014_s3 = inlined_call_operand.<no memory space> [shape: f32[1], index: 3, kind: input, shape index: {}]   ;;  %s3015_s4 = inlined_call_operand.vmem [shape: f32[288,32], index: 4, kind: output, shape index: {}]  }
   0x1   :  { %v21_v0 = vld [vmem:[%s3011_s1 + $0x18] sm:$0x1]  ;;  %v20_v1 = vld [vmem:[%s3011_s1 + $0x10] sm:$0xff]  ;;  %v19_v2 = vld [vmem:[%s3011_s1 + $0x8] sm:$0xff] }
   0x2   :  { %1839 = vmatpush.msk.msra.mxu2 %vm172_vm0, %v21_v0  ;;  %1912 = vmatpush.msk.msra.mxu3 %vm172_vm0, %v21_v0  ;;  %v18_v3 = vld [vmem:[%s3011_s1] sm:$0xff]  ;;  %v1804_v8 = vld [vmem:[%s3012_s0 + $0x248] sm:$0xff]  ;;  %v1805_v12 = vld [vmem:[%s3012_s0 + $0x250] sm:$0xff] }
   0x3   :  { %1693 = vmatpush.msk.msra.mxu0 %vm172_vm0, %v21_v0  ;;  %1766 = vmatpush.msk.msra.mxu1 %vm172_vm0, %v21_v0  ;;  %v1803_v4 = vld [vmem:[%s3012_s0 + $0x240] sm:$0xff]  ;;  %v1877_v9 = vld [vmem:[%s3012_s0 + $0x368] sm:$0xff]  ;;  %v1878_v13 = vld [vmem:[%s3012_s0 + $0x370] sm:$0xff] }
   0x4   :  { %982 = vmatpush.msra.mxu2 %v20_v1  ;;  %1360 = vmatpush.msra.mxu3 %v20_v1  ;;  %v1876_v5 = vld [vmem:[%s3012_s0 + $0x360] sm:$0xff]  ;;  %v25_v10 = vld [vmem:[%s3012_s0 + $0x8] sm:$0xff]  ;;  %v26_v14 = vld [vmem:[%s3012_s0 + $0x10] sm:$0xff] }
   0x5   :  { %189 = vmatpush.msra.mxu0 %v20_v1  ;;  %568 = vmatpush.msra.mxu1 %v20_v1  ;;  %v24_v6 = vld [vmem:[%s3012_s0] sm:$0xff]  ;;  %v1731_v11 = vld [vmem:[%s3012_s0 + $0x128] sm:$0xff]  ;;  %v1732_v15 = vld [vmem:[%s3012_s0 + $0x130] sm:$0xff] }
   0x6   :  { %983 = vmatpush.msra.mxu2 %v19_v2  ;;  %1361 = vmatpush.msra.mxu3 %v19_v2  ;;  %v1730_v7 = vld [vmem:[%s3012_s0 + $0x120] sm:$0xff]  ;;  %v1806_v16 = vld [vmem:[%s3012_s0 + $0x258] sm:$0xff]  ;;  %v1808_v24 = vld [vmem:[%s3012_s0 + $0x268] sm:$0xff] }
   0x7   :  { %190 = vmatpush.msra.mxu0 %v19_v2  ;;  %569 = vmatpush.msra.mxu1 %v19_v2  ;;  %v1879_v17 = vld [vmem:[%s3012_s0 + $0x378] sm:$0xff]  ;;  %v1807_v20 = vld [vmem:[%s3012_s0 + $0x260] sm:$0xff]  ;;  %v1881_v25 = vld [vmem:[%s3012_s0 + $0x388] sm:$0xff] }
   0x8   :  { %984 = vmatpush.msra.mxu2 %v18_v3  ;;  %1362 = vmatpush.msra.mxu3 %v18_v3  ;;  %v27_v18 = vld [vmem:[%s3012_s0 + $0x18] sm:$0xff]  ;;  %v1880_v21 = vld [vmem:[%s3012_s0 + $0x380] sm:$0xff]  ;;  %v29_v26 = vld [vmem:[%s3012_s0 + $0x28] sm:$0xff] }
   0x9   :  { %1840 = vmatmul.msk.f32.vlgmr.msra.gmra.mxu2 %vm63_vm1, %v1803_v4  ;;  %1913 = vmatmul.msk.f32.vlgmr.msra.gmra.mxu3 %vm63_vm1, %v1876_v5  ;;  %v1733_v19 = vld [vmem:[%s3012_s0 + $0x138] sm:$0xff]  ;;  %v28_v22 = vld [vmem:[%s3012_s0 + $0x20] sm:$0xff]  ;;  %v1735_v27 = vld [vmem:[%s3012_s0 + $0x148] sm:$0xff] }
   0xa   :  { %191 = vmatpush.msra.mxu0 %v18_v3  ;;  %570 = vmatpush.msra.mxu1 %v18_v3  ;;  %v1734_v23 = vld [vmem:[%s3012_s0 + $0x140] sm:$0xff]  ;;  %v1809_v28 = vld [vmem:[%s3012_s0 + $0x270] sm:$0xff]  ;;  %v1810_v32 = vld [vmem:[%s3012_s0 + $0x278] sm:$0xff] }
   0xb   :  { %1694 = vmatmul.msk.f32.vlgmr.msra.gmra.mxu0 %vm63_vm1, %v24_v6  ;;  %1767 = vmatmul.msk.f32.vlgmr.msra.gmra.mxu1 %vm63_vm1, %v1730_v7  ;;  %v1882_v29 = vld [vmem:[%s3012_s0 + $0x390] sm:$0xff]  ;;  %v1883_v33 = vld [vmem:[%s3012_s0 + $0x398] sm:$0xff]  ;;  %v1811_v36 = vld [vmem:[%s3012_s0 + $0x280] sm:$0xff] }
   0xc   :  { %v30_v30 = vld [vmem:[%s3012_s0 + $0x30] sm:$0xff]  ;;  %v31_v34 = vld [vmem:[%s3012_s0 + $0x38] sm:$0xff]  ;;  %v1884_v37 = vld [vmem:[%s3012_s0 + $0x3a0] sm:$0xff] }
   0xd   :  { %v1736_v31 = vld [vmem:[%s3012_s0 + $0x150] sm:$0xff]  ;;  %v1737_v35 = vld [vmem:[%s3012_s0 + $0x158] sm:$0xff]  ;;  %v32_v38 = vld [vmem:[%s3012_s0 + $0x40] sm:$0xff] }
   0xe   :  { %v1738_v39 = vld [vmem:[%s3012_s0 + $0x160] sm:$0xff]  ;;  %v1812_v40 = vld [vmem:[%s3012_s0 + $0x288] sm:$0xff]  ;;  %v1813_v44 = vld [vmem:[%s3012_s0 + $0x290] sm:$0xff] }
   0xf   :  { %v1885_v41 = vld [vmem:[%s3012_s0 + $0x3a8] sm:$0xff]  ;;  %v1886_v45 = vld [vmem:[%s3012_s0 + $0x3b0] sm:$0xff]  ;;  %v1814_v48 = vld [vmem:[%s3012_s0 + $0x298] sm:$0xff] }
  0x10   :  { %v33_v42 = vld [vmem:[%s3012_s0 + $0x48] sm:$0xff]  ;;  %v34_v46 = vld [vmem:[%s3012_s0 + $0x50] sm:$0xff]  ;;  %v1887_v49 = vld [vmem:[%s3012_s0 + $0x3b8] sm:$0xff] }
  0x11   :  { %1841 = vmatmul.msk.f32.gmra.mxu2 %vm63_vm1, %v1804_v8  ;;  %1914 = vmatmul.msk.f32.gmra.mxu3 %vm63_vm1, %v1877_v9  ;;  %v1739_v43 = vld [vmem:[%s3012_s0 + $0x168] sm:$0xff]  ;;  %v1740_v47 = vld [vmem:[%s3012_s0 + $0x170] sm:$0xff]  ;;  %v35_v50 = vld [vmem:[%s3012_s0 + $0x58] sm:$0xff]  ;;  %v2258_v8 = vstv %s3014_s3 }
  0x12   :  { %v1741_v51 = vld [vmem:[%s3012_s0 + $0x178] sm:$0xff]  ;;  %v1815_v52 = vld [vmem:[%s3012_s0 + $0x2a0] sm:$0xff]  ;;  %v1816_v56 = vld [vmem:[%s3012_s0 + $0x2a8] sm:$0xff] }
  0x13   :  { %1695 = vmatmul.msk.f32.gmra.mxu0 %vm63_vm1, %v25_v10  ;;  %1768 = vmatmul.msk.f32.gmra.mxu1 %vm63_vm1, %v1731_v11  ;;  %v1888_v53 = vld [vmem:[%s3012_s0 + $0x3c0] sm:$0xff]  ;;  %v1889_v57 = vld [vmem:[%s3012_s0 + $0x3c8] sm:$0xff]  ;;  %v1817_v60 = vld [vmem:[%s3012_s0 + $0x2b0] sm:$0xff] }
  0x14   :  { %v36_v54 = vld [vmem:[%s3012_s0 + $0x60] sm:$0xff]  ;;  %v37_v58 = vld [vmem:[%s3012_s0 + $0x68] sm:$0xff]  ;;  %v1890_v61 = vld [vmem:[%s3012_s0 + $0x3d0] sm:$0xff] }
  0x15   :  { %v1742_v55 = vld [vmem:[%s3012_s0 + $0x180] sm:$0xff]  ;;  %v1743_v59 = vld [vmem:[%s3012_s0 + $0x188] sm:$0xff]  ;;  %v38_v62 = vld [vmem:[%s3012_s0 + $0x70] sm:$0xff] }
  0x16   :  { %v1744_v63 = vld [vmem:[%s3012_s0 + $0x190] sm:$0xff]  ;;  %v1818_v0 = vld [vmem:[%s3012_s0 + $0x2b8] sm:$0xff]  ;;  %v2247_v4 = vld [vmem:[%s3013_s2] ss:$0 sm:$0xff] }
  0x17   :  { %v1891_v1 = vld [vmem:[%s3012_s0 + $0x3d8] sm:$0xff]  ;;  %v1819_v5 = vld [vmem:[%s3012_s0 + $0x2c0] sm:$0xff] }
  0x18   :  { %v39_v2 = vld [vmem:[%s3012_s0 + $0x78] sm:$0xff]  ;;  %v1892_v6 = vld [vmem:[%s3012_s0 + $0x3e0] sm:$0xff] }
  0x19   :  { %1842 = vmatmul.msk.f32.gmra.mxu2 %vm63_vm1, %v1805_v12  ;;  %1915 = vmatmul.msk.f32.gmra.mxu3 %vm63_vm1, %v1878_v13  ;;  %v1745_v3 = vld [vmem:[%s3012_s0 + $0x198] sm:$0xff]  ;;  %v40_v10 = vld [vmem:[%s3012_s0 + $0x80] sm:$0xff] }
  0x1a   :  { %v1746_v11 = vld [vmem:[%s3012_s0 + $0x1a0] sm:$0xff] }
  0x1b   :  { %1696 = vmatmul.msk.f32.gmra.mxu0 %vm63_vm1, %v26_v14  ;;  %1769 = vmatmul.msk.f32.gmra.mxu1 %vm63_vm1, %v1732_v15 }
  0x21   :  { %1843 = vmatmul.msk.f32.gmra.mxu2 %vm63_vm1, %v1806_v16  ;;  %1916 = vmatmul.msk.f32.gmra.mxu3 %vm63_vm1, %v1879_v17 }
  0x23   :  { %1697 = vmatmul.msk.f32.gmra.mxu0 %vm63_vm1, %v27_v18  ;;  %1770 = vmatmul.msk.f32.gmra.mxu1 %vm63_vm1, %v1733_v19 }
  0x29   :  { %1844 = vmatmul.msk.f32.gmra.mxu2 %vm63_vm1, %v1807_v20  ;;  %1917 = vmatmul.msk.f32.gmra.mxu3 %vm63_vm1, %v1880_v21 }
  0x2b   :  { %1698 = vmatmul.msk.f32.gmra.mxu0 %vm63_vm1, %v28_v22  ;;  %1771 = vmatmul.msk.f32.gmra.mxu1 %vm63_vm1, %v1734_v23  ;;  %v1820_v22 = vld [vmem:[%s3012_s0 + $0x2c8] sm:$0xff] }
  0x2c   :  { %v1893_v23 = vld [vmem:[%s3012_s0 + $0x3e8] sm:$0xff] }
  0x31   :  { %1845 = vmatmul.msk.f32.gmra.mxu2 %vm63_vm1, %v1808_v24  ;;  %1918 = vmatmul.msk.f32.gmra.mxu3 %vm63_vm1, %v1881_v25 }
  0x33   :  { %1699 = vmatmul.msk.f32.gmra.mxu0 %vm63_vm1, %v29_v26  ;;  %1772 = vmatmul.msk.f32.gmra.mxu1 %vm63_vm1, %v1735_v27 }
  0x39   :  { %1846 = vmatmul.msk.f32.gmra.mxu2 %vm63_vm1, %v1809_v28  ;;  %1919 = vmatmul.msk.f32.gmra.mxu3 %vm63_vm1, %v1882_v29  ;;  %v41_v28 = vld [vmem:[%s3012_s0 + $0x88] sm:$0xff] }
  0x3a   :  { %v1747_v29 = vld [vmem:[%s3012_s0 + $0x1a8] sm:$0xff] }
  0x3b   :  { %1700 = vmatmul.msk.f32.gmra.mxu0 %vm63_vm1, %v30_v30  ;;  %1773 = vmatmul.msk.f32.gmra.mxu1 %vm63_vm1, %v1736_v31 }
  0x41   :  { %1847 = vmatmul.msk.f32.gmra.mxu2 %vm63_vm1, %v1810_v32  ;;  %1920 = vmatmul.msk.f32.gmra.mxu3 %vm63_vm1, %v1883_v33 }
  0x43   :  { %1701 = vmatmul.msk.f32.gmra.mxu0 %vm63_vm1, %v31_v34  ;;  %1774 = vmatmul.msk.f32.gmra.mxu1 %vm63_vm1, %v1737_v35 }
  0x49   :  { %1848 = vmatmul.msk.f32.gmra.mxu2 %vm63_vm1, %v1811_v36  ;;  %1921 = vmatmul.msk.f32.gmra.mxu3 %vm63_vm1, %v1884_v37 }
  0x4b   :  { %1702 = vmatmul.msk.f32.gmra.mxu0 %vm63_vm1, %v32_v38  ;;  %1775 = vmatmul.msk.f32.gmra.mxu1 %vm63_vm1, %v1738_v39 }
  0x51   :  { %1849 = vmatmul.msk.f32.gmra.mxu2 %vm63_vm1, %v1812_v40  ;;  %1922 = vmatmul.msk.f32.gmra.mxu3 %vm63_vm1, %v1885_v41 }
  0x53   :  { %1703 = vmatmul.msk.f32.gmra.mxu0 %vm63_vm1, %v33_v42  ;;  %1776 = vmatmul.msk.f32.gmra.mxu1 %vm63_vm1, %v1739_v43  ;;  %v1821_v43 = vld [vmem:[%s3012_s0 + $0x2d0] sm:$0xff] }
  0x59   :  { %1850 = vmatmul.msk.f32.gmra.mxu2 %vm63_vm1, %v1813_v44  ;;  %1923 = vmatmul.msk.f32.gmra.mxu3 %vm63_vm1, %v1886_v45  ;;  %v1894_v44 = vld [vmem:[%s3012_s0 + $0x3f0] sm:$0xff] }
  0x5b   :  { %1704 = vmatmul.msk.f32.gmra.mxu0 %vm63_vm1, %v34_v46  ;;  %1777 = vmatmul.msk.f32.gmra.mxu1 %vm63_vm1, %v1740_v47 }
  0x61   :  { %1851 = vmatmul.msk.f32.gmra.mxu2 %vm63_vm1, %v1814_v48  ;;  %1924 = vmatmul.msk.f32.gmra.mxu3 %vm63_vm1, %v1887_v49 }
  0x63   :  { %1705 = vmatmul.msk.f32.gmra.mxu0 %vm63_vm1, %v35_v50  ;;  %1778 = vmatmul.msk.f32.gmra.mxu1 %vm63_vm1, %v1741_v51  ;;  %v42_v51 = vld [vmem:[%s3012_s0 + $0x90] sm:$0xff] }
  0x69   :  { %1852 = vmatmul.msk.f32.gmra.mxu2 %vm63_vm1, %v1815_v52  ;;  %1925 = vmatmul.msk.f32.gmra.mxu3 %vm63_vm1, %v1888_v53  ;;  %v1748_v52 = vld [vmem:[%s3012_s0 + $0x1b0] sm:$0xff] }
  0x6b   :  { %1706 = vmatmul.msk.f32.gmra.mxu0 %vm63_vm1, %v36_v54  ;;  %1779 = vmatmul.msk.f32.gmra.mxu1 %vm63_vm1, %v1742_v55 }
  0x71   :  { %1853 = vmatmul.msk.f32.gmra.mxu2 %vm63_vm1, %v1816_v56  ;;  %1926 = vmatmul.msk.f32.gmra.mxu3 %vm63_vm1, %v1889_v57 }
  0x73   :  { %1707 = vmatmul.msk.f32.gmra.mxu0 %vm63_vm1, %v37_v58  ;;  %1780 = vmatmul.msk.f32.gmra.mxu1 %vm63_vm1, %v1743_v59 }
  0x79   :  { %1854 = vmatmul.msk.f32.gmra.mxu2 %vm63_vm1, %v1817_v60  ;;  %1927 = vmatmul.msk.f32.gmra.mxu3 %vm63_vm1, %v1890_v61 }
  0x7b   :  { %1708 = vmatmul.msk.f32.gmra.mxu0 %vm63_vm1, %v38_v62  ;;  %1781 = vmatmul.msk.f32.gmra.mxu1 %vm63_vm1, %v1744_v63 }
  0x81   :  { %1855 = vmatmul.msk.f32.gmra.mxu2 %vm63_vm1, %v1818_v0  ;;  %1928 = vmatmul.msk.f32.gmra.mxu3 %vm63_vm1, %v1891_v1 }
  0x83   :  { %1709 = vmatmul.msk.f32.gmra.mxu0 %vm63_vm1, %v39_v2  ;;  %1782 = vmatmul.msk.f32.gmra.mxu1 %vm63_vm1, %v1745_v3  ;;  %v1822_v2 = vld [vmem:[%s3012_s0 + $0x2d8] sm:$0xff] }
  0x84   :  { %v1895_v3 = vld [vmem:[%s3012_s0 + $0x3f8] sm:$0xff] }
  0x88   :  { %v193_v7 = vpop.f32.mrf.mxu0  ;;  %v572_v9 = vpop.f32.mrf.mxu1 }
  0x89   :  { %1856 = vmatmul.msk.f32.gmra.mxu2 %vm63_vm1, %v1819_v5  ;;  %1929 = vmatmul.msk.f32.gmra.mxu3 %vm63_vm1, %v1892_v6  ;;  %v194_v12 = vadd.f32 %v2247_v4, %v193_v7  ;;  %v573_v13 = vadd.f32 %v2247_v4, %v572_v9 }
  0x8b   :  { %vm301_vm2 = vcmp.gt.f32.partialorder %v194_v12, 0.0  ;;  %v338_v14 = vmul.f32 %v2258_v8, %v194_v12  ;;  %vm680_vm3 = vcmp.gt.f32.partialorder %v573_v13, 0.0  ;;  %v716_v15 = vmul.f32 %v573_v13, %v2258_v8  ;;  %1710 = vmatmul.msk.f32.gmra.mxu0 %vm63_vm1, %v40_v10  ;;  %1783 = vmatmul.msk.f32.gmra.mxu1 %vm63_vm1, %v1746_v11 }
  0x8c   :  { %v986_v16 = vpop.f32.mrf.mxu2  ;;  %v1364_v17 = vpop.f32.mrf.mxu3 }
  0x8d   :  { %v987_v18 = vadd.f32 %v2247_v4, %v986_v16  ;;  %v1365_v19 = vadd.f32 %v2247_v4, %v1364_v17  ;;  %v374_v20 = vsel %vm301_vm2, %v194_v12, %v338_v14  ;;  %v752_v21 = vsel %vm680_vm3, %v573_v13, %v716_v15  ;;  %v43_v12 = vld [vmem:[%s3012_s0 + $0x98] sm:$0xff] }
  0x8e   :  { %v788_v33 = vmax.f32 %v374_v20, %v752_v21  ;;  %v1749_v13 = vld [vmem:[%s3012_s0 + $0x1b8] sm:$0xff] }
  0x8f   :  { %vm1094_vm4 = vcmp.gt.f32.partialorder %v987_v18, 0.0  ;;  %v1130_v24 = vmul.f32 %v987_v18, %v2258_v8  ;;  %vm1472_vm5 = vcmp.gt.f32.partialorder %v1365_v19, 0.0  ;;  %v1508_v25 = vmul.f32 %v1365_v19, %v2258_v8 }
  0x90   :  { %v196_v26 = vpop.f32.mrf.mxu0  ;;  %v575_v27 = vpop.f32.mrf.mxu1 }
  0x91   :  { %v1166_v30 = vsel %vm1094_vm4, %v987_v18, %v1130_v24  ;;  %v1544_v31 = vsel %vm1472_vm5, %v1365_v19, %v1508_v25  ;;  %1857 = vmatmul.msk.f32.gmra.mxu2 %vm63_vm1, %v1820_v22  ;;  %1930 = vmatmul.msk.f32.gmra.mxu3 %vm63_vm1, %v1893_v23  ;;  %v197_v32 = vadd.f32 %v2247_v4, %v196_v26 }
  0x92   :  { %v1580_v34 = vmax.f32 %v1166_v30, %v1544_v31  ;;  %v576_v35 = vadd.f32 %v2247_v4, %v575_v27  ;;  %v1823_v27 = vld [vmem:[%s3012_s0 + $0x2e0] sm:$0xff] }
  0x93   :  { %1711 = vmatmul.msk.f32.gmra.mxu0 %vm63_vm1, %v41_v28  ;;  %1784 = vmatmul.msk.f32.gmra.mxu1 %vm63_vm1, %v1747_v29  ;;  %v339_v37 = vmul.f32 %v2258_v8, %v197_v32  ;;  %vm302_vm7 = vcmp.gt.f32.partialorder %v197_v32, 0.0  ;;  %v1896_v28 = vld [vmem:[%s3012_s0 + $0x400] sm:$0xff] }
  0x94   :  { %v1616_v36 = vmax.f32 %v788_v33, %v1580_v34  ;;  %v717_v38 = vmul.f32 %v576_v35, %v2258_v8  ;;  %v989_v39 = vpop.f32.mrf.mxu2  ;;  %v1367_v40 = vpop.f32.mrf.mxu3  ;;  %vm681_vm8 = vcmp.gt.f32.partialorder %v576_v35, 0.0 }
  0x95   :  { %v990_v41 = vadd.f32 %v2247_v4, %v989_v39  ;;  %v1368_v42 = vadd.f32 %v2247_v4, %v1367_v40  ;;  %v375_v46 = vsel %vm302_vm7, %v197_v32, %v339_v37 }
  0x96   :  { %1653 = vst.msk [vmem:[%s3015_s4] sm:$0xff] %vm1652_vm6, %v1616_v36  ;;  %v753_v47 = vsel %vm681_vm8, %v576_v35, %v717_v38  ;;  %v44_v35 = vld [vmem:[%s3012_s0 + $0xa0] sm:$0xff] }
  0x97   :  { %vm1095_vm9 = vcmp.gt.f32.partialorder %v990_v41, 0.0  ;;  %v1131_v45 = vmul.f32 %v990_v41, %v2258_v8  ;;  %vm1473_vm10 = vcmp.gt.f32.partialorder %v1368_v42, 0.0  ;;  %v1509_v48 = vmul.f32 %v1368_v42, %v2258_v8  ;;  %v1750_v36 = vld [vmem:[%s3012_s0 + $0x1c0] sm:$0xff] }
  0x98   :  { %v199_v49 = vpop.f32.mrf.mxu0  ;;  %v578_v50 = vpop.f32.mrf.mxu1  ;;  %v789_v57 = vmax.f32 %v375_v46, %v753_v47 }
  0x99   :  { %v1167_v53 = vsel %vm1095_vm9, %v990_v41, %v1131_v45  ;;  %1858 = vmatmul.msk.f32.gmra.mxu2 %vm63_vm1, %v1821_v43  ;;  %1931 = vmatmul.msk.f32.gmra.mxu3 %vm63_vm1, %v1894_v44  ;;  %v200_v54 = vadd.f32 %v2247_v4, %v199_v49  ;;  %v579_v55 = vadd.f32 %v2247_v4, %v578_v50  ;;  %v1824_v50 = vld [vmem:[%s3012_s0 + $0x2e8] sm:$0xff] }
  0x9a   :  { %v1545_v56 = vsel %vm1473_vm10, %v1368_v42, %v1509_v48 }
  0x9b   :  { %v1581_v58 = vmax.f32 %v1167_v53, %v1545_v56  ;;  %1712 = vmatmul.msk.f32.gmra.mxu0 %vm63_vm1, %v42_v51  ;;  %1785 = vmatmul.msk.f32.gmra.mxu1 %vm63_vm1, %v1748_v52  ;;  %vm303_vm11 = vcmp.gt.f32.partialorder %v200_v54, 0.0  ;;  %v340_v59 = vmul.f32 %v2258_v8, %v200_v54  ;;  %v718_v60 = vmul.f32 %v579_v55, %v2258_v8  ;;  %v1897_v51 = vld [vmem:[%s3012_s0 + $0x408] sm:$0xff] }
  0x9c   :  { %v992_v61 = vpop.f32.mrf.mxu2  ;;  %v1370_v62 = vpop.f32.mrf.mxu3  ;;  %vm682_vm12 = vcmp.gt.f32.partialorder %v579_v55, 0.0 }
  0x9d   :  { %v1617_v63 = vmax.f32 %v789_v57, %v1581_v58  ;;  %v993_v0 = vadd.f32 %v2247_v4, %v992_v61  ;;  %v1371_v1 = vadd.f32 %v2247_v4, %v1370_v62  ;;  %v376_v6 = vsel %vm303_vm11, %v200_v54, %v340_v59  ;;  %v45_v58 = vld [vmem:[%s3012_s0 + $0xa8] sm:$0xff] }
  0x9e   :  { %v754_v7 = vsel %vm682_vm12, %v579_v55, %v718_v60  ;;  %v1751_v59 = vld [vmem:[%s3012_s0 + $0x1c8] sm:$0xff] }
  0x9f   :  { %1654 = vst.msk [vmem:[%s3015_s4 + $0x8] sm:$0xff] %vm1652_vm6, %v1617_v63  ;;  %vm1096_vm13 = vcmp.gt.f32.partialorder %v993_v0, 0.0  ;;  %v1132_v5 = vmul.f32 %v993_v0, %v2258_v8  ;;  %vm1474_vm14 = vcmp.gt.f32.partialorder %v1371_v1, 0.0  ;;  %v1510_v9 = vmul.f32 %v1371_v1, %v2258_v8 }
  0xa0   :  { %v202_v10 = vpop.f32.mrf.mxu0  ;;  %v581_v11 = vpop.f32.mrf.mxu1  ;;  %v790_v18 = vmax.f32 %v376_v6, %v754_v7 }
  0xa1   :  { %v1168_v14 = vsel %vm1096_vm13, %v993_v0, %v1132_v5  ;;  %1859 = vmatmul.msk.f32.gmra.mxu2 %vm63_vm1, %v1822_v2  ;;  %1932 = vmatmul.msk.f32.gmra.mxu3 %vm63_vm1, %v1895_v3  ;;  %v203_v15 = vadd.f32 %v2247_v4, %v202_v10  ;;  %v582_v16 = vadd.f32 %v2247_v4, %v581_v11  ;;  %v1825_v11 = vld [vmem:[%s3012_s0 + $0x2f0] sm:$0xff] }
  0xa2   :  { %v1546_v17 = vsel %vm1474_vm14, %v1371_v1, %v1510_v9 }
  0xa3   :  { %v1582_v19 = vmax.f32 %v1168_v14, %v1546_v17  ;;  %1713 = vmatmul.msk.f32.gmra.mxu0 %vm63_vm1, %v43_v12  ;;  %1786 = vmatmul.msk.f32.gmra.mxu1 %vm63_vm1, %v1749_v13  ;;  %vm304_vm15 = vcmp.gt.f32.partialorder %v203_v15, 0.0  ;;  %v341_v20 = vmul.f32 %v2258_v8, %v203_v15  ;;  %v719_v21 = vmul.f32 %v582_v16, %v2258_v8  ;;  %v1898_v12 = vld [vmem:[%s3012_s0 + $0x410] sm:$0xff] }
  0xa4   :  { %v995_v22 = vpop.f32.mrf.mxu2  ;;  %v1373_v23 = vpop.f32.mrf.mxu3  ;;  %vm683_vm0 = vcmp.gt.f32.partialorder %v582_v16, 0.0 }
  0xa5   :  { %v1618_v24 = vmax.f32 %v790_v18, %v1582_v19  ;;  %v996_v25 = vadd.f32 %v2247_v4, %v995_v22  ;;  %v1374_v26 = vadd.f32 %v2247_v4, %v1373_v23  ;;  %v377_v30 = vsel %vm304_vm15, %v203_v15, %v341_v20  ;;  %v46_v19 = vld [vmem:[%s3012_s0 + $0xb0] sm:$0xff] }
  0xa6   :  { %v755_v31 = vsel %vm683_vm0, %v582_v16, %v719_v21  ;;  %v1752_v20 = vld [vmem:[%s3012_s0 + $0x1d0] sm:$0xff] }
  0xa7   :  { %1655 = vst.msk [vmem:[%s3015_s4 + $0x10] sm:$0xff] %vm1652_vm6, %v1618_v24  ;;  %vm1097_vm2 = vcmp.gt.f32.partialorder %v996_v25, 0.0  ;;  %v1133_v29 = vmul.f32 %v996_v25, %v2258_v8  ;;  %vm1475_vm3 = vcmp.gt.f32.partialorder %v1374_v26, 0.0  ;;  %v1511_v32 = vmul.f32 %v1374_v26, %v2258_v8 }
  0xa8   :  { %v205_v33 = vpop.f32.mrf.mxu0  ;;  %v584_v34 = vpop.f32.mrf.mxu1  ;;  %v791_v41 = vmax.f32 %v377_v30, %v755_v31 }
  0xa9   :  { %v1169_v37 = vsel %vm1097_vm2, %v996_v25, %v1133_v29  ;;  %1860 = vmatmul.msk.f32.gmra.mxu2 %vm63_vm1, %v1823_v27  ;;  %1933 = vmatmul.msk.f32.gmra.mxu3 %vm63_vm1, %v1896_v28  ;;  %v206_v38 = vadd.f32 %v2247_v4, %v205_v33  ;;  %v585_v39 = vadd.f32 %v2247_v4, %v584_v34  ;;  %v1826_v34 = vld [vmem:[%s3012_s0 + $0x2f8] sm:$0xff] }
  0xaa   :  { %v1547_v40 = vsel %vm1475_vm3, %v1374_v26, %v1511_v32 }
  0xab   :  { %v1583_v42 = vmax.f32 %v1169_v37, %v1547_v40  ;;  %1714 = vmatmul.msk.f32.gmra.mxu0 %vm63_vm1, %v44_v35  ;;  %1787 = vmatmul.msk.f32.gmra.mxu1 %vm63_vm1, %v1750_v36  ;;  %vm305_vm4 = vcmp.gt.f32.partialorder %v206_v38, 0.0  ;;  %v342_v43 = vmul.f32 %v2258_v8, %v206_v38  ;;  %v720_v44 = vmul.f32 %v585_v39, %v2258_v8  ;;  %v1899_v35 = vld [vmem:[%s3012_s0 + $0x418] sm:$0xff] }
  0xac   :  { %v998_v45 = vpop.f32.mrf.mxu2  ;;  %v1376_v46 = vpop.f32.mrf.mxu3  ;;  %vm684_vm5 = vcmp.gt.f32.partialorder %v585_v39, 0.0 }
  0xad   :  { %v1619_v47 = vmax.f32 %v791_v41, %v1583_v42  ;;  %v999_v48 = vadd.f32 %v2247_v4, %v998_v45  ;;  %v1377_v49 = vadd.f32 %v2247_v4, %v1376_v46  ;;  %v378_v53 = vsel %vm305_vm4, %v206_v38, %v342_v43  ;;  %v47_v42 = vld [vmem:[%s3012_s0 + $0xb8] sm:$0xff] }
  0xae   :  { %v756_v54 = vsel %vm684_vm5, %v585_v39, %v720_v44  ;;  %v1753_v43 = vld [vmem:[%s3012_s0 + $0x1d8] sm:$0xff] }
  0xaf   :  { %1656 = vst.msk [vmem:[%s3015_s4 + $0x18] sm:$0xff] %vm1652_vm6, %v1619_v47  ;;  %vm1098_vm7 = vcmp.gt.f32.partialorder %v999_v48, 0.0  ;;  %v1134_v52 = vmul.f32 %v999_v48, %v2258_v8  ;;  %vm1476_vm8 = vcmp.gt.f32.partialorder %v1377_v49, 0.0  ;;  %v1512_v55 = vmul.f32 %v1377_v49, %v2258_v8 }
  0xb0   :  { %v208_v56 = vpop.f32.mrf.mxu0  ;;  %v587_v57 = vpop.f32.mrf.mxu1  ;;  %v792_v0 = vmax.f32 %v378_v53, %v756_v54 }
  0xb1   :  { %v1170_v60 = vsel %vm1098_vm7, %v999_v48, %v1134_v52  ;;  %1861 = vmatmul.msk.f32.gmra.mxu2 %vm63_vm1, %v1824_v50  ;;  %1934 = vmatmul.msk.f32.gmra.mxu3 %vm63_vm1, %v1897_v51  ;;  %v209_v61 = vadd.f32 %v2247_v4, %v208_v56  ;;  %v588_v62 = vadd.f32 %v2247_v4, %v587_v57  ;;  %v1827_v57 = vld [vmem:[%s3012_s0 + $0x300] sm:$0xff] }
  0xb2   :  { %v1548_v63 = vsel %vm1476_vm8, %v1377_v49, %v1512_v55 }
  0xb3   :  { %v1584_v1 = vmax.f32 %v1170_v60, %v1548_v63  ;;  %1715 = vmatmul.msk.f32.gmra.mxu0 %vm63_vm1, %v45_v58  ;;  %1788 = vmatmul.msk.f32.gmra.mxu1 %vm63_vm1, %v1751_v59  ;;  %vm306_vm9 = vcmp.gt.f32.partialorder %v209_v61, 0.0  ;;  %v343_v2 = vmul.f32 %v2258_v8, %v209_v61  ;;  %v721_v3 = vmul.f32 %v588_v62, %v2258_v8  ;;  %v1900_v58 = vld [vmem:[%s3012_s0 + $0x420] sm:$0xff] }
  0xb4   :  { %v1001_v5 = vpop.f32.mrf.mxu2  ;;  %v1379_v6 = vpop.f32.mrf.mxu3  ;;  %vm685_vm10 = vcmp.gt.f32.partialorder %v588_v62, 0.0 }
  0xb5   :  { %v1620_v7 = vmax.f32 %v792_v0, %v1584_v1  ;;  %v1002_v9 = vadd.f32 %v2247_v4, %v1001_v5  ;;  %v1380_v10 = vadd.f32 %v2247_v4, %v1379_v6  ;;  %v379_v14 = vsel %vm306_vm9, %v209_v61, %v343_v2  ;;  %v48_v1 = vld [vmem:[%s3012_s0 + $0xc0] sm:$0xff] }
  0xb6   :  { %v757_v15 = vsel %vm685_vm10, %v588_v62, %v721_v3  ;;  %v1754_v2 = vld [vmem:[%s3012_s0 + $0x1e0] sm:$0xff] }
  0xb7   :  { %1657 = vst.msk [vmem:[%s3015_s4 + $0x20] sm:$0xff] %vm1652_vm6, %v1620_v7  ;;  %vm1099_vm11 = vcmp.gt.f32.partialorder %v1002_v9, 0.0  ;;  %v1135_v13 = vmul.f32 %v1002_v9, %v2258_v8  ;;  %vm1477_vm12 = vcmp.gt.f32.partialorder %v1380_v10, 0.0  ;;  %v1513_v16 = vmul.f32 %v1380_v10, %v2258_v8 }
  0xb8   :  { %v211_v17 = vpop.f32.mrf.mxu0  ;;  %v590_v18 = vpop.f32.mrf.mxu1  ;;  %v793_v25 = vmax.f32 %v379_v14, %v757_v15 }
  0xb9   :  { %v1171_v21 = vsel %vm1099_vm11, %v1002_v9, %v1135_v13  ;;  %1862 = vmatmul.msk.f32.gmra.mxu2 %vm63_vm1, %v1825_v11  ;;  %1935 = vmatmul.msk.f32.gmra.mxu3 %vm63_vm1, %v1898_v12  ;;  %v212_v22 = vadd.f32 %v2247_v4, %v211_v17  ;;  %v591_v23 = vadd.f32 %v2247_v4, %v590_v18  ;;  %v1828_v18 = vld [vmem:[%s3012_s0 + $0x308] sm:$0xff] }
  0xba   :  { %v1549_v24 = vsel %vm1477_vm12, %v1380_v10, %v1513_v16 }
  0xbb   :  { %v1585_v26 = vmax.f32 %v1171_v21, %v1549_v24  ;;  %1716 = vmatmul.msk.f32.gmra.mxu0 %vm63_vm1, %v46_v19  ;;  %1789 = vmatmul.msk.f32.gmra.mxu1 %vm63_vm1, %v1752_v20  ;;  %vm307_vm13 = vcmp.gt.f32.partialorder %v212_v22, 0.0  ;;  %v344_v27 = vmul.f32 %v2258_v8, %v212_v22  ;;  %v722_v28 = vmul.f32 %v591_v23, %v2258_v8  ;;  %v1901_v19 = vld [vmem:[%s3012_s0 + $0x428] sm:$0xff] }
  0xbc   :  { %v1004_v29 = vpop.f32.mrf.mxu2  ;;  %v1382_v30 = vpop.f32.mrf.mxu3  ;;  %vm686_vm14 = vcmp.gt.f32.partialorder %v591_v23, 0.0 }
  0xbd   :  { %v1621_v31 = vmax.f32 %v793_v25, %v1585_v26  ;;  %v1005_v32 = vadd.f32 %v2247_v4, %v1004_v29  ;;  %v1383_v33 = vadd.f32 %v2247_v4, %v1382_v30  ;;  %v380_v37 = vsel %vm307_vm13, %v212_v22, %v344_v27  ;;  %v49_v26 = vld [vmem:[%s3012_s0 + $0xc8] sm:$0xff] }
  0xbe   :  { %v758_v38 = vsel %vm686_vm14, %v591_v23, %v722_v28  ;;  %v1755_v27 = vld [vmem:[%s3012_s0 + $0x1e8] sm:$0xff] }
  0xbf   :  { %1658 = vst.msk [vmem:[%s3015_s4 + $0x28] sm:$0xff] %vm1652_vm6, %v1621_v31  ;;  %vm1100_vm15 = vcmp.gt.f32.partialorder %v1005_v32, 0.0  ;;  %v1136_v36 = vmul.f32 %v1005_v32, %v2258_v8  ;;  %vm1478_vm0 = vcmp.gt.f32.partialorder %v1383_v33, 0.0  ;;  %v1514_v39 = vmul.f32 %v1383_v33, %v2258_v8 }
  0xc0   :  { %v214_v40 = vpop.f32.mrf.mxu0  ;;  %v593_v41 = vpop.f32.mrf.mxu1  ;;  %v794_v48 = vmax.f32 %v380_v37, %v758_v38 }
  0xc1   :  { %v1172_v44 = vsel %vm1100_vm15, %v1005_v32, %v1136_v36  ;;  %1863 = vmatmul.msk.f32.gmra.mxu2 %vm63_vm1, %v1826_v34  ;;  %1936 = vmatmul.msk.f32.gmra.mxu3 %vm63_vm1, %v1899_v35  ;;  %v215_v45 = vadd.f32 %v2247_v4, %v214_v40  ;;  %v594_v46 = vadd.f32 %v2247_v4, %v593_v41  ;;  %v1829_v41 = vld [vmem:[%s3012_s0 + $0x310] sm:$0xff] }
  0xc2   :  { %v1550_v47 = vsel %vm1478_vm0, %v1383_v33, %v1514_v39 }
  0xc3   :  { %v1586_v49 = vmax.f32 %v1172_v44, %v1550_v47  ;;  %1717 = vmatmul.msk.f32.gmra.mxu0 %vm63_vm1, %v47_v42  ;;  %1790 = vmatmul.msk.f32.gmra.mxu1 %vm63_vm1, %v1753_v43  ;;  %vm308_vm2 = vcmp.gt.f32.partialorder %v215_v45, 0.0  ;;  %v345_v50 = vmul.f32 %v2258_v8, %v215_v45  ;;  %v723_v51 = vmul.f32 %v594_v46, %v2258_v8  ;;  %v1902_v42 = vld [vmem:[%s3012_s0 + $0x430] sm:$0xff] }
  0xc4   :  { %v1007_v52 = vpop.f32.mrf.mxu2  ;;  %v1385_v53 = vpop.f32.mrf.mxu3  ;;  %vm687_vm3 = vcmp.gt.f32.partialorder %v594_v46, 0.0 }
  0xc5   :  { %v1622_v54 = vmax.f32 %v794_v48, %v1586_v49  ;;  %v1008_v55 = vadd.f32 %v2247_v4, %v1007_v52  ;;  %v1386_v56 = vadd.f32 %v2247_v4, %v1385_v53  ;;  %v381_v60 = vsel %vm308_vm2, %v215_v45, %v345_v50  ;;  %v50_v49 = vld [vmem:[%s3012_s0 + $0xd0] sm:$0xff] }
  0xc6   :  { %v759_v61 = vsel %vm687_vm3, %v594_v46, %v723_v51  ;;  %v1756_v50 = vld [vmem:[%s3012_s0 + $0x1f0] sm:$0xff] }
  0xc7   :  { %1659 = vst.msk [vmem:[%s3015_s4 + $0x30] sm:$0xff] %vm1652_vm6, %v1622_v54  ;;  %vm1101_vm4 = vcmp.gt.f32.partialorder %v1008_v55, 0.0  ;;  %v1137_v59 = vmul.f32 %v1008_v55, %v2258_v8  ;;  %vm1479_vm5 = vcmp.gt.f32.partialorder %v1386_v56, 0.0  ;;  %v1515_v62 = vmul.f32 %v1386_v56, %v2258_v8 }
  0xc8   :  { %v217_v63 = vpop.f32.mrf.mxu0  ;;  %v596_v0 = vpop.f32.mrf.mxu1  ;;  %v795_v9 = vmax.f32 %v381_v60, %v759_v61 }
  0xc9   :  { %v1173_v3 = vsel %vm1101_vm4, %v1008_v55, %v1137_v59  ;;  %1864 = vmatmul.msk.f32.gmra.mxu2 %vm63_vm1, %v1827_v57  ;;  %1937 = vmatmul.msk.f32.gmra.mxu3 %vm63_vm1, %v1900_v58  ;;  %v218_v5 = vadd.f32 %v2247_v4, %v217_v63  ;;  %v597_v6 = vadd.f32 %v2247_v4, %v596_v0  ;;  %v1830_v0 = vld [vmem:[%s3012_s0 + $0x318] sm:$0xff] }
  0xca   :  { %v1551_v7 = vsel %vm1479_vm5, %v1386_v56, %v1515_v62 }
  0xcb   :  { %v1587_v10 = vmax.f32 %v1173_v3, %v1551_v7  ;;  %1718 = vmatmul.msk.f32.gmra.mxu0 %vm63_vm1, %v48_v1  ;;  %1791 = vmatmul.msk.f32.gmra.mxu1 %vm63_vm1, %v1754_v2  ;;  %vm309_vm7 = vcmp.gt.f32.partialorder %v218_v5, 0.0  ;;  %v346_v11 = vmul.f32 %v2258_v8, %v218_v5  ;;  %v724_v12 = vmul.f32 %v597_v6, %v2258_v8  ;;  %v1903_v1 = vld [vmem:[%s3012_s0 + $0x438] sm:$0xff] }
  0xcc   :  { %v1010_v13 = vpop.f32.mrf.mxu2  ;;  %v1388_v14 = vpop.f32.mrf.mxu3  ;;  %vm688_vm8 = vcmp.gt.f32.partialorder %v597_v6, 0.0 }
  0xcd   :  { %v1623_v15 = vmax.f32 %v795_v9, %v1587_v10  ;;  %v1011_v16 = vadd.f32 %v2247_v4, %v1010_v13  ;;  %v1389_v17 = vadd.f32 %v2247_v4, %v1388_v14  ;;  %v382_v21 = vsel %vm309_vm7, %v218_v5, %v346_v11  ;;  %v51_v10 = vld [vmem:[%s3012_s0 + $0xd8] sm:$0xff] }
  0xce   :  { %v760_v22 = vsel %vm688_vm8, %v597_v6, %v724_v12  ;;  %v1757_v11 = vld [vmem:[%s3012_s0 + $0x1f8] sm:$0xff] }
  0xcf   :  { %1660 = vst.msk [vmem:[%s3015_s4 + $0x38] sm:$0xff] %vm1652_vm6, %v1623_v15  ;;  %vm1102_vm9 = vcmp.gt.f32.partialorder %v1011_v16, 0.0  ;;  %v1138_v20 = vmul.f32 %v1011_v16, %v2258_v8  ;;  %vm1480_vm10 = vcmp.gt.f32.partialorder %v1389_v17, 0.0  ;;  %v1516_v23 = vmul.f32 %v1389_v17, %v2258_v8 }
  0xd0   :  { %v220_v24 = vpop.f32.mrf.mxu0  ;;  %v599_v25 = vpop.f32.mrf.mxu1  ;;  %v796_v32 = vmax.f32 %v382_v21, %v760_v22 }
  0xd1   :  { %v1174_v28 = vsel %vm1102_vm9, %v1011_v16, %v1138_v20  ;;  %1865 = vmatmul.msk.f32.gmra.mxu2 %vm63_vm1, %v1828_v18  ;;  %1938 = vmatmul.msk.f32.gmra.mxu3 %vm63_vm1, %v1901_v19  ;;  %v221_v29 = vadd.f32 %v2247_v4, %v220_v24  ;;  %v600_v30 = vadd.f32 %v2247_v4, %v599_v25  ;;  %v1831_v25 = vld [vmem:[%s3012_s0 + $0x320] sm:$0xff] }
  0xd2   :  { %v1552_v31 = vsel %vm1480_vm10, %v1389_v17, %v1516_v23 }
  0xd3   :  { %v1588_v33 = vmax.f32 %v1174_v28, %v1552_v31  ;;  %1719 = vmatmul.msk.f32.gmra.mxu0 %vm63_vm1, %v49_v26  ;;  %1792 = vmatmul.msk.f32.gmra.mxu1 %vm63_vm1, %v1755_v27  ;;  %vm310_vm11 = vcmp.gt.f32.partialorder %v221_v29, 0.0  ;;  %v347_v34 = vmul.f32 %v2258_v8, %v221_v29  ;;  %v725_v35 = vmul.f32 %v600_v30, %v2258_v8  ;;  %v1904_v26 = vld [vmem:[%s3012_s0 + $0x440] sm:$0xff] }
  0xd4   :  { %v1013_v36 = vpop.f32.mrf.mxu2  ;;  %v1391_v37 = vpop.f32.mrf.mxu3  ;;  %vm689_vm12 = vcmp.gt.f32.partialorder %v600_v30, 0.0 }
  0xd5   :  { %v1624_v38 = vmax.f32 %v796_v32, %v1588_v33  ;;  %v1014_v39 = vadd.f32 %v2247_v4, %v1013_v36  ;;  %v1392_v40 = vadd.f32 %v2247_v4, %v1391_v37  ;;  %v383_v44 = vsel %vm310_vm11, %v221_v29, %v347_v34  ;;  %v52_v33 = vld [vmem:[%s3012_s0 + $0xe0] sm:$0xff] }
  0xd6   :  { %v761_v45 = vsel %vm689_vm12, %v600_v30, %v725_v35  ;;  %v1758_v34 = vld [vmem:[%s3012_s0 + $0x200] sm:$0xff] }
  0xd7   :  { %1661 = vst.msk [vmem:[%s3015_s4 + $0x40] sm:$0xff] %vm1652_vm6, %v1624_v38  ;;  %vm1103_vm13 = vcmp.gt.f32.partialorder %v1014_v39, 0.0  ;;  %v1139_v43 = vmul.f32 %v1014_v39, %v2258_v8  ;;  %vm1481_vm14 = vcmp.gt.f32.partialorder %v1392_v40, 0.0  ;;  %v1517_v46 = vmul.f32 %v1392_v40, %v2258_v8 }
  0xd8   :  { %v223_v47 = vpop.f32.mrf.mxu0  ;;  %v602_v48 = vpop.f32.mrf.mxu1  ;;  %v797_v55 = vmax.f32 %v383_v44, %v761_v45 }
  0xd9   :  { %v1175_v51 = vsel %vm1103_vm13, %v1014_v39, %v1139_v43  ;;  %1866 = vmatmul.msk.f32.gmra.mxu2 %vm63_vm1, %v1829_v41  ;;  %1939 = vmatmul.msk.f32.gmra.mxu3 %vm63_vm1, %v1902_v42  ;;  %v224_v52 = vadd.f32 %v2247_v4, %v223_v47  ;;  %v603_v53 = vadd.f32 %v2247_v4, %v602_v48  ;;  %v1832_v48 = vld [vmem:[%s3012_s0 + $0x328] sm:$0xff] }
  0xda   :  { %v1553_v54 = vsel %vm1481_vm14, %v1392_v40, %v1517_v46 }
  0xdb   :  { %v1589_v56 = vmax.f32 %v1175_v51, %v1553_v54  ;;  %1720 = vmatmul.msk.f32.gmra.mxu0 %vm63_vm1, %v50_v49  ;;  %1793 = vmatmul.msk.f32.gmra.mxu1 %vm63_vm1, %v1756_v50  ;;  %vm311_vm15 = vcmp.gt.f32.partialorder %v224_v52, 0.0  ;;  %v348_v57 = vmul.f32 %v2258_v8, %v224_v52  ;;  %v726_v58 = vmul.f32 %v603_v53, %v2258_v8  ;;  %v1905_v49 = vld [vmem:[%s3012_s0 + $0x448] sm:$0xff] }
  0xdc   :  { %v1016_v59 = vpop.f32.mrf.mxu2  ;;  %v1394_v60 = vpop.f32.mrf.mxu3  ;;  %vm690_vm0 = vcmp.gt.f32.partialorder %v603_v53, 0.0 }
  0xdd   :  { %v1625_v61 = vmax.f32 %v797_v55, %v1589_v56  ;;  %v1017_v62 = vadd.f32 %v2247_v4, %v1016_v59  ;;  %v1395_v63 = vadd.f32 %v2247_v4, %v1394_v60  ;;  %v384_v3 = vsel %vm311_vm15, %v224_v52, %v348_v57  ;;  %v53_v56 = vld [vmem:[%s3012_s0 + $0xe8] sm:$0xff] }
  0xde   :  { %v762_v5 = vsel %vm690_vm0, %v603_v53, %v726_v58  ;;  %v1759_v57 = vld [vmem:[%s3012_s0 + $0x208] sm:$0xff] }
  0xdf   :  { %1662 = vst.msk [vmem:[%s3015_s4 + $0x48] sm:$0xff] %vm1652_vm6, %v1625_v61  ;;  %vm1104_vm2 = vcmp.gt.f32.partialorder %v1017_v62, 0.0  ;;  %v1140_v2 = vmul.f32 %v1017_v62, %v2258_v8  ;;  %vm1482_vm3 = vcmp.gt.f32.partialorder %v1395_v63, 0.0  ;;  %v1518_v6 = vmul.f32 %v1395_v63, %v2258_v8 }
  0xe0   :  { %v226_v7 = vpop.f32.mrf.mxu0  ;;  %v605_v9 = vpop.f32.mrf.mxu1  ;;  %v798_v16 = vmax.f32 %v384_v3, %v762_v5 }
  0xe1   :  { %v1176_v12 = vsel %vm1104_vm2, %v1017_v62, %v1140_v2  ;;  %1867 = vmatmul.msk.f32.gmra.mxu2 %vm63_vm1, %v1830_v0  ;;  %1940 = vmatmul.msk.f32.gmra.mxu3 %vm63_vm1, %v1903_v1  ;;  %v227_v13 = vadd.f32 %v2247_v4, %v226_v7  ;;  %v606_v14 = vadd.f32 %v2247_v4, %v605_v9  ;;  %v1833_v9 = vld [vmem:[%s3012_s0 + $0x330] sm:$0xff] }
  0xe2   :  { %v1554_v15 = vsel %vm1482_vm3, %v1395_v63, %v1518_v6 }
  0xe3   :  { %v1590_v17 = vmax.f32 %v1176_v12, %v1554_v15  ;;  %1721 = vmatmul.msk.f32.gmra.mxu0 %vm63_vm1, %v51_v10  ;;  %1794 = vmatmul.msk.f32.gmra.mxu1 %vm63_vm1, %v1757_v11  ;;  %vm312_vm4 = vcmp.gt.f32.partialorder %v227_v13, 0.0  ;;  %v349_v18 = vmul.f32 %v2258_v8, %v227_v13  ;;  %v727_v19 = vmul.f32 %v606_v14, %v2258_v8  ;;  %v1906_v10 = vld [vmem:[%s3012_s0 + $0x450] sm:$0xff] }
  0xe4   :  { %v1019_v20 = vpop.f32.mrf.mxu2  ;;  %v1397_v21 = vpop.f32.mrf.mxu3  ;;  %vm691_vm5 = vcmp.gt.f32.partialorder %v606_v14, 0.0 }
  0xe5   :  { %v1626_v22 = vmax.f32 %v798_v16, %v1590_v17  ;;  %v1020_v23 = vadd.f32 %v2247_v4, %v1019_v20  ;;  %v1398_v24 = vadd.f32 %v2247_v4, %v1397_v21  ;;  %v385_v28 = vsel %vm312_vm4, %v227_v13, %v349_v18  ;;  %v54_v17 = vld [vmem:[%s3012_s0 + $0xf0] sm:$0xff] }
  0xe6   :  { %v763_v29 = vsel %vm691_vm5, %v606_v14, %v727_v19  ;;  %v1760_v18 = vld [vmem:[%s3012_s0 + $0x210] sm:$0xff] }
  0xe7   :  { %1663 = vst.msk [vmem:[%s3015_s4 + $0x50] sm:$0xff] %vm1652_vm6, %v1626_v22  ;;  %vm1105_vm7 = vcmp.gt.f32.partialorder %v1020_v23, 0.0  ;;  %v1141_v27 = vmul.f32 %v1020_v23, %v2258_v8  ;;  %vm1483_vm8 = vcmp.gt.f32.partialorder %v1398_v24, 0.0  ;;  %v1519_v30 = vmul.f32 %v1398_v24, %v2258_v8 }
  0xe8   :  { %v229_v31 = vpop.f32.mrf.mxu0  ;;  %v608_v32 = vpop.f32.mrf.mxu1  ;;  %v799_v39 = vmax.f32 %v385_v28, %v763_v29 }
  0xe9   :  { %v1177_v35 = vsel %vm1105_vm7, %v1020_v23, %v1141_v27  ;;  %1868 = vmatmul.msk.f32.gmra.mxu2 %vm63_vm1, %v1831_v25  ;;  %1941 = vmatmul.msk.f32.gmra.mxu3 %vm63_vm1, %v1904_v26  ;;  %v230_v36 = vadd.f32 %v2247_v4, %v229_v31  ;;  %v609_v37 = vadd.f32 %v2247_v4, %v608_v32  ;;  %v1834_v32 = vld [vmem:[%s3012_s0 + $0x338] sm:$0xff] }
  0xea   :  { %v1555_v38 = vsel %vm1483_vm8, %v1398_v24, %v1519_v30 }
  0xeb   :  { %v1591_v40 = vmax.f32 %v1177_v35, %v1555_v38  ;;  %1722 = vmatmul.msk.f32.gmra.mxu0 %vm63_vm1, %v52_v33  ;;  %1795 = vmatmul.msk.f32.gmra.mxu1 %vm63_vm1, %v1758_v34  ;;  %vm313_vm9 = vcmp.gt.f32.partialorder %v230_v36, 0.0  ;;  %v350_v41 = vmul.f32 %v2258_v8, %v230_v36  ;;  %v728_v42 = vmul.f32 %v609_v37, %v2258_v8  ;;  %v1907_v33 = vld [vmem:[%s3012_s0 + $0x458] sm:$0xff] }
  0xec   :  { %v1022_v43 = vpop.f32.mrf.mxu2  ;;  %v1400_v44 = vpop.f32.mrf.mxu3  ;;  %vm692_vm10 = vcmp.gt.f32.partialorder %v609_v37, 0.0 }
  0xed   :  { %v1627_v45 = vmax.f32 %v799_v39, %v1591_v40  ;;  %v1023_v46 = vadd.f32 %v2247_v4, %v1022_v43  ;;  %v1401_v47 = vadd.f32 %v2247_v4, %v1400_v44  ;;  %v386_v51 = vsel %vm313_vm9, %v230_v36, %v350_v41  ;;  %v55_v40 = vld [vmem:[%s3012_s0 + $0xf8] sm:$0xff] }
  0xee   :  { %v764_v52 = vsel %vm692_vm10, %v609_v37, %v728_v42  ;;  %v1761_v41 = vld [vmem:[%s3012_s0 + $0x218] sm:$0xff] }
  0xef   :  { %1664 = vst.msk [vmem:[%s3015_s4 + $0x58] sm:$0xff] %vm1652_vm6, %v1627_v45  ;;  %vm1106_vm11 = vcmp.gt.f32.partialorder %v1023_v46, 0.0  ;;  %v1142_v50 = vmul.f32 %v1023_v46, %v2258_v8  ;;  %vm1484_vm12 = vcmp.gt.f32.partialorder %v1401_v47, 0.0  ;;  %v1520_v53 = vmul.f32 %v1401_v47, %v2258_v8 }
  0xf0   :  { %v232_v54 = vpop.f32.mrf.mxu0  ;;  %v611_v55 = vpop.f32.mrf.mxu1  ;;  %v800_v62 = vmax.f32 %v386_v51, %v764_v52 }
  0xf1   :  { %v1178_v58 = vsel %vm1106_vm11, %v1023_v46, %v1142_v50  ;;  %1869 = vmatmul.msk.f32.gmra.mxu2 %vm63_vm1, %v1832_v48  ;;  %1942 = vmatmul.msk.f32.gmra.mxu3 %vm63_vm1, %v1905_v49  ;;  %v233_v59 = vadd.f32 %v2247_v4, %v232_v54  ;;  %v612_v60 = vadd.f32 %v2247_v4, %v611_v55  ;;  %v1835_v55 = vld [vmem:[%s3012_s0 + $0x340] sm:$0xff] }
  0xf2   :  { %v1556_v61 = vsel %vm1484_vm12, %v1401_v47, %v1520_v53 }
  0xf3   :  { %v1592_v63 = vmax.f32 %v1178_v58, %v1556_v61  ;;  %1723 = vmatmul.msk.f32.gmra.mxu0 %vm63_vm1, %v53_v56  ;;  %1796 = vmatmul.msk.f32.gmra.mxu1 %vm63_vm1, %v1759_v57  ;;  %vm314_vm13 = vcmp.gt.f32.partialorder %v233_v59, 0.0  ;;  %v351_v0 = vmul.f32 %v2258_v8, %v233_v59  ;;  %v729_v1 = vmul.f32 %v612_v60, %v2258_v8  ;;  %v1908_v56 = vld [vmem:[%s3012_s0 + $0x460] sm:$0xff] }
  0xf4   :  { %v1025_v2 = vpop.f32.mrf.mxu2  ;;  %v1403_v3 = vpop.f32.mrf.mxu3  ;;  %vm693_vm14 = vcmp.gt.f32.partialorder %v612_v60, 0.0 }
  0xf5   :  { %v1628_v5 = vmax.f32 %v800_v62, %v1592_v63  ;;  %v1026_v6 = vadd.f32 %v2247_v4, %v1025_v2  ;;  %v1404_v7 = vadd.f32 %v2247_v4, %v1403_v3  ;;  %v387_v12 = vsel %vm314_vm13, %v233_v59, %v351_v0  ;;  %v56_v62 = vld [vmem:[%s3012_s0 + $0x100] sm:$0xff] }
  0xf6   :  { %v765_v13 = vsel %vm693_vm14, %v612_v60, %v729_v1  ;;  %v1762_v63 = vld [vmem:[%s3012_s0 + $0x220] sm:$0xff] }
  0xf7   :  { %1665 = vst.msk [vmem:[%s3015_s4 + $0x60] sm:$0xff] %vm1652_vm6, %v1628_v5  ;;  %vm1107_vm15 = vcmp.gt.f32.partialorder %v1026_v6, 0.0  ;;  %v1143_v11 = vmul.f32 %v1026_v6, %v2258_v8  ;;  %vm1485_vm0 = vcmp.gt.f32.partialorder %v1404_v7, 0.0  ;;  %v1521_v14 = vmul.f32 %v1404_v7, %v2258_v8  ;;  %v2715_v1 = vld [vmem:[%s3013_s2] ss:$0 sm:$0xff] }
  0xf8   :  { %v235_v15 = vpop.f32.mrf.mxu0  ;;  %v614_v16 = vpop.f32.mrf.mxu1  ;;  %v801_v23 = vmax.f32 %v387_v12, %v765_v13 }
  0xf9   :  { %v1179_v19 = vsel %vm1107_vm15, %v1026_v6, %v1143_v11  ;;  %1870 = vmatmul.msk.f32.gmra.mxu2 %vm63_vm1, %v1833_v9  ;;  %1943 = vmatmul.msk.f32.gmra.mxu3 %vm63_vm1, %v1906_v10  ;;  %v236_v20 = vadd.f32 %v2247_v4, %v235_v15  ;;  %v615_v21 = vadd.f32 %v2247_v4, %v614_v16  ;;  %v1836_v16 = vld [vmem:[%s3012_s0 + $0x348] sm:$0xff] }
  0xfa   :  { %v1557_v22 = vsel %vm1485_vm0, %v1404_v7, %v1521_v14 }
  0xfb   :  { %v1593_v24 = vmax.f32 %v1179_v19, %v1557_v22  ;;  %1724 = vmatmul.msk.f32.gmra.mxu0 %vm63_vm1, %v54_v17  ;;  %1797 = vmatmul.msk.f32.gmra.mxu1 %vm63_vm1, %v1760_v18  ;;  %vm315_vm2 = vcmp.gt.f32.partialorder %v236_v20, 0.0  ;;  %v352_v25 = vmul.f32 %v2258_v8, %v236_v20  ;;  %v730_v26 = vmul.f32 %v615_v21, %v2258_v8  ;;  %v1909_v17 = vld [vmem:[%s3012_s0 + $0x468] sm:$0xff] }
  0xfc   :  { %v1028_v27 = vpop.f32.mrf.mxu2  ;;  %v1406_v28 = vpop.f32.mrf.mxu3  ;;  %vm694_vm3 = vcmp.gt.f32.partialorder %v615_v21, 0.0 }
  0xfd   :  { %v1629_v29 = vmax.f32 %v801_v23, %v1593_v24  ;;  %v1029_v30 = vadd.f32 %v2247_v4, %v1028_v27  ;;  %v1407_v31 = vadd.f32 %v2247_v4, %v1406_v28  ;;  %v388_v35 = vsel %vm315_vm2, %v236_v20, %v352_v25  ;;  %v57_v24 = vld [vmem:[%s3012_s0 + $0x108] sm:$0xff] }
  0xfe   :  { %v766_v36 = vsel %vm694_vm3, %v615_v21, %v730_v26  ;;  %v1763_v25 = vld [vmem:[%s3012_s0 + $0x228] sm:$0xff] }
  0xff   :  { %1666 = vst.msk [vmem:[%s3015_s4 + $0x68] sm:$0xff] %vm1652_vm6, %v1629_v29  ;;  %vm1108_vm4 = vcmp.gt.f32.partialorder %v1029_v30, 0.0  ;;  %v1144_v34 = vmul.f32 %v1029_v30, %v2258_v8  ;;  %vm1486_vm5 = vcmp.gt.f32.partialorder %v1407_v31, 0.0  ;;  %v1522_v37 = vmul.f32 %v1407_v31, %v2258_v8 }
 0x100   :  { %v238_v38 = vpop.f32.mrf.mxu0  ;;  %v617_v39 = vpop.f32.mrf.mxu1  ;;  %v802_v46 = vmax.f32 %v388_v35, %v766_v36 }
 0x101   :  { %v1180_v42 = vsel %vm1108_vm4, %v1029_v30, %v1144_v34  ;;  %1871 = vmatmul.msk.f32.gmra.mxu2 %vm63_vm1, %v1834_v32  ;;  %1944 = vmatmul.msk.f32.gmra.mxu3 %vm63_vm1, %v1907_v33  ;;  %v239_v43 = vadd.f32 %v2247_v4, %v238_v38  ;;  %v618_v44 = vadd.f32 %v2247_v4, %v617_v39  ;;  %v1837_v39 = vld [vmem:[%s3012_s0 + $0x350] sm:$0xff] }
 0x102   :  { %v1558_v45 = vsel %vm1486_vm5, %v1407_v31, %v1522_v37 }
 0x103   :  { %v1594_v47 = vmax.f32 %v1180_v42, %v1558_v45  ;;  %1725 = vmatmul.msk.f32.gmra.mxu0 %vm63_vm1, %v55_v40  ;;  %1798 = vmatmul.msk.f32.gmra.mxu1 %vm63_vm1, %v1761_v41  ;;  %vm316_vm7 = vcmp.gt.f32.partialorder %v239_v43, 0.0  ;;  %v353_v48 = vmul.f32 %v2258_v8, %v239_v43  ;;  %v731_v49 = vmul.f32 %v618_v44, %v2258_v8  ;;  %v1910_v40 = vld [vmem:[%s3012_s0 + $0x470] sm:$0xff] }
 0x104   :  { %v1031_v50 = vpop.f32.mrf.mxu2  ;;  %v1409_v51 = vpop.f32.mrf.mxu3  ;;  %vm695_vm8 = vcmp.gt.f32.partialorder %v618_v44, 0.0 }
 0x105   :  { %v1630_v52 = vmax.f32 %v802_v46, %v1594_v47  ;;  %v1032_v53 = vadd.f32 %v2247_v4, %v1031_v50  ;;  %v1410_v54 = vadd.f32 %v2247_v4, %v1409_v51  ;;  %v389_v58 = vsel %vm316_vm7, %v239_v43, %v353_v48  ;;  %v58_v47 = vld [vmem:[%s3012_s0 + $0x110] sm:$0xff] }
 0x106   :  { %v767_v59 = vsel %vm695_vm8, %v618_v44, %v731_v49  ;;  %v1764_v48 = vld [vmem:[%s3012_s0 + $0x230] sm:$0xff] }
 0x107   :  { %1667 = vst.msk [vmem:[%s3015_s4 + $0x70] sm:$0xff] %vm1652_vm6, %v1630_v52  ;;  %vm1109_vm9 = vcmp.gt.f32.partialorder %v1032_v53, 0.0  ;;  %v1145_v57 = vmul.f32 %v1032_v53, %v2258_v8  ;;  %vm1487_vm10 = vcmp.gt.f32.partialorder %v1410_v54, 0.0  ;;  %v1523_v4 = vmul.f32 %v1410_v54, %v2258_v8 }
 0x108   :  { %v241_v60 = vpop.f32.mrf.mxu0  ;;  %v620_v61 = vpop.f32.mrf.mxu1  ;;  %v803_v6 = vmax.f32 %v389_v58, %v767_v59 }
 0x109   :  { %v1181_v0 = vsel %vm1109_vm9, %v1032_v53, %v1145_v57  ;;  %1872 = vmatmul.msk.f32.gmra.mxu2 %vm63_vm1, %v1835_v55  ;;  %1945 = vmatmul.msk.f32.gmra.mxu3 %vm63_vm1, %v1908_v56  ;;  %v242_v2 = vadd.f32 %v2715_v1, %v241_v60  ;;  %v621_v3 = vadd.f32 %v2715_v1, %v620_v61  ;;  %v1838_v61 = vld [vmem:[%s3012_s0 + $0x358] sm:$0xff] }
 0x10a   :  { %v1559_v5 = vsel %vm1487_vm10, %v1410_v54, %v1523_v4 }
 0x10b   :  { %v1595_v7 = vmax.f32 %v1181_v0, %v1559_v5  ;;  %1726 = vmatmul.msk.f32.gmra.mxu0 %vm63_vm1, %v56_v62  ;;  %1799 = vmatmul.msk.f32.gmra.mxu1 %vm63_vm1, %v1762_v63  ;;  %vm317_vm11 = vcmp.gt.f32.partialorder %v242_v2, 0.0  ;;  %v354_v9 = vmul.f32 %v2258_v8, %v242_v2  ;;  %v732_v10 = vmul.f32 %v621_v3, %v2258_v8  ;;  %v1911_v62 = vld [vmem:[%s3012_s0 + $0x478] sm:$0xff] }
 0x10c   :  { %v1034_v11 = vpop.f32.mrf.mxu2  ;;  %v1412_v12 = vpop.f32.mrf.mxu3  ;;  %vm696_vm12 = vcmp.gt.f32.partialorder %v621_v3, 0.0 }
 0x10d   :  { %v1631_v13 = vmax.f32 %v803_v6, %v1595_v7  ;;  %v1035_v14 = vadd.f32 %v2715_v1, %v1034_v11  ;;  %v1413_v15 = vadd.f32 %v2715_v1, %v1412_v12  ;;  %v390_v19 = vsel %vm317_vm11, %v242_v2, %v354_v9  ;;  %v59_v7 = vld [vmem:[%s3012_s0 + $0x118] sm:$0xff] }
 0x10e   :  { %v768_v20 = vsel %vm696_vm12, %v621_v3, %v732_v10  ;;  %v1765_v9 = vld [vmem:[%s3012_s0 + $0x238] sm:$0xff] }
 0x10f   :  { %1668 = vst.msk [vmem:[%s3015_s4 + $0x78] sm:$0xff] %vm1652_vm6, %v1631_v13  ;;  %vm1110_vm13 = vcmp.gt.f32.partialorder %v1035_v14, 0.0  ;;  %v1146_v18 = vmul.f32 %v1035_v14, %v2258_v8  ;;  %vm1488_vm14 = vcmp.gt.f32.partialorder %v1413_v15, 0.0  ;;  %v1524_v21 = vmul.f32 %v1413_v15, %v2258_v8 }
 0x110   :  { %v244_v22 = vpop.f32.mrf.mxu0  ;;  %v623_v23 = vpop.f32.mrf.mxu1  ;;  %v804_v30 = vmax.f32 %v390_v19, %v768_v20 }
 0x111   :  { %v1182_v26 = vsel %vm1110_vm13, %v1035_v14, %v1146_v18  ;;  %1873 = vmatmul.msk.f32.gmra.mxu2 %vm63_vm1, %v1836_v16  ;;  %1946 = vmatmul.msk.f32.gmra.mxu3 %vm63_vm1, %v1909_v17  ;;  %v245_v27 = vadd.f32 %v2715_v1, %v244_v22  ;;  %v624_v28 = vadd.f32 %v2715_v1, %v623_v23 }
 0x112   :  { %v1560_v29 = vsel %vm1488_vm14, %v1413_v15, %v1524_v21 }
 0x113   :  { %v1596_v31 = vmax.f32 %v1182_v26, %v1560_v29  ;;  %1727 = vmatmul.msk.f32.gmra.mxu0 %vm63_vm1, %v57_v24  ;;  %1800 = vmatmul.msk.f32.gmra.mxu1 %vm63_vm1, %v1763_v25  ;;  %vm318_vm15 = vcmp.gt.f32.partialorder %v245_v27, 0.0  ;;  %v355_v32 = vmul.f32 %v2258_v8, %v245_v27  ;;  %v733_v33 = vmul.f32 %v624_v28, %v2258_v8 }
 0x114   :  { %v1037_v34 = vpop.f32.mrf.mxu2  ;;  %v1415_v35 = vpop.f32.mrf.mxu3  ;;  %vm697_vm0 = vcmp.gt.f32.partialorder %v624_v28, 0.0 }
 0x115   :  { %v1632_v36 = vmax.f32 %v804_v30, %v1596_v31  ;;  %v1038_v37 = vadd.f32 %v2715_v1, %v1037_v34  ;;  %v1416_v38 = vadd.f32 %v2715_v1, %v1415_v35  ;;  %v391_v42 = vsel %vm318_vm15, %v245_v27, %v355_v32 }
 0x116   :  { %v769_v43 = vsel %vm697_vm0, %v624_v28, %v733_v33 }
 0x117   :  { %1669 = vst.msk [vmem:[%s3015_s4 + $0x80] sm:$0xff] %vm1652_vm6, %v1632_v36  ;;  %vm1111_vm2 = vcmp.gt.f32.partialorder %v1038_v37, 0.0  ;;  %v1147_v41 = vmul.f32 %v1038_v37, %v2258_v8  ;;  %vm1489_vm3 = vcmp.gt.f32.partialorder %v1416_v38, 0.0  ;;  %v1525_v44 = vmul.f32 %v1416_v38, %v2258_v8 }
 0x118   :  { %v247_v45 = vpop.f32.mrf.mxu0  ;;  %v626_v46 = vpop.f32.mrf.mxu1  ;;  %v805_v53 = vmax.f32 %v391_v42, %v769_v43 }
 0x119   :  { %v1183_v49 = vsel %vm1111_vm2, %v1038_v37, %v1147_v41  ;;  %1874 = vmatmul.msk.f32.gmra.mxu2 %vm63_vm1, %v1837_v39  ;;  %1947 = vmatmul.msk.f32.gmra.mxu3 %vm63_vm1, %v1910_v40  ;;  %v248_v50 = vadd.f32 %v2715_v1, %v247_v45  ;;  %v627_v51 = vadd.f32 %v2715_v1, %v626_v46 }
 0x11a   :  { %v1561_v52 = vsel %vm1489_vm3, %v1416_v38, %v1525_v44 }
 0x11b   :  { %v1597_v54 = vmax.f32 %v1183_v49, %v1561_v52  ;;  %1728 = vmatmul.msk.f32.gmra.mxu0 %vm63_vm1, %v58_v47  ;;  %1801 = vmatmul.msk.f32.gmra.mxu1 %vm63_vm1, %v1764_v48  ;;  %vm319_vm4 = vcmp.gt.f32.partialorder %v248_v50, 0.0  ;;  %v356_v55 = vmul.f32 %v2258_v8, %v248_v50  ;;  %v734_v56 = vmul.f32 %v627_v51, %v2258_v8 }
 0x11c   :  { %v1040_v57 = vpop.f32.mrf.mxu2  ;;  %v1418_v58 = vpop.f32.mrf.mxu3  ;;  %vm698_vm5 = vcmp.gt.f32.partialorder %v627_v51, 0.0 }
 0x11d   :  { %v1633_v59 = vmax.f32 %v805_v53, %v1597_v54  ;;  %v1041_v4 = vadd.f32 %v2715_v1, %v1040_v57  ;;  %v1419_v60 = vadd.f32 %v2715_v1, %v1418_v58  ;;  %v392_v0 = vsel %vm319_vm4, %v248_v50, %v356_v55 }
 0x11e   :  { %v770_v2 = vsel %vm698_vm5, %v627_v51, %v734_v56 }
 0x11f   :  { %1670 = vst.msk [vmem:[%s3015_s4 + $0x88] sm:$0xff] %vm1652_vm6, %v1633_v59  ;;  %vm1112_vm7 = vcmp.gt.f32.partialorder %v1041_v4, 0.0  ;;  %v1148_v63 = vmul.f32 %v1041_v4, %v2258_v8  ;;  %vm1490_vm8 = vcmp.gt.f32.partialorder %v1419_v60, 0.0  ;;  %v1526_v3 = vmul.f32 %v1419_v60, %v2258_v8 }
 0x120   :  { %v250_v5 = vpop.f32.mrf.mxu0  ;;  %v629_v6 = vpop.f32.mrf.mxu1  ;;  %v806_v14 = vmax.f32 %v392_v0, %v770_v2 }
 0x121   :  { %v1184_v10 = vsel %vm1112_vm7, %v1041_v4, %v1148_v63  ;;  %1875 = vmatmul.msk.f32.gmra.mxu2 %vm63_vm1, %v1838_v61  ;;  %1948 = vmatmul.msk.f32.gmra.mxu3 %vm63_vm1, %v1911_v62  ;;  %v251_v11 = vadd.f32 %v2715_v1, %v250_v5  ;;  %v630_v12 = vadd.f32 %v2715_v1, %v629_v6 }
 0x122   :  { %v1562_v13 = vsel %vm1490_vm8, %v1419_v60, %v1526_v3 }
 0x123   :  { %v1598_v15 = vmax.f32 %v1184_v10, %v1562_v13  ;;  %1729 = vmatmul.msk.f32.gmra.mxu0 %vm63_vm1, %v59_v7  ;;  %1802 = vmatmul.msk.f32.gmra.mxu1 %vm63_vm1, %v1765_v9  ;;  %vm320_vm9 = vcmp.gt.f32.partialorder %v251_v11, 0.0  ;;  %v357_v16 = vmul.f32 %v2258_v8, %v251_v11  ;;  %v735_v17 = vmul.f32 %v630_v12, %v2258_v8 }
 0x124   :  { %v1043_v18 = vpop.f32.mrf.mxu2  ;;  %v1421_v19 = vpop.f32.mrf.mxu3  ;;  %vm699_vm10 = vcmp.gt.f32.partialorder %v630_v12, 0.0 }
 0x125   :  { %v1634_v20 = vmax.f32 %v806_v14, %v1598_v15  ;;  %v1044_v21 = vadd.f32 %v2715_v1, %v1043_v18  ;;  %v1422_v22 = vadd.f32 %v2715_v1, %v1421_v19  ;;  %v393_v24 = vsel %vm320_vm9, %v251_v11, %v357_v16 }
 0x126   :  { %v771_v25 = vsel %vm699_vm10, %v630_v12, %v735_v17 }
 0x127   :  { %1671 = vst.msk [vmem:[%s3015_s4 + $0x90] sm:$0xff] %vm1652_vm6, %v1634_v20  ;;  %vm1113_vm11 = vcmp.gt.f32.partialorder %v1044_v21, 0.0  ;;  %v1149_v23 = vmul.f32 %v1044_v21, %v2258_v8  ;;  %vm1491_vm1 = vcmp.gt.f32.partialorder %v1422_v22, 0.0  ;;  %v1527_v26 = vmul.f32 %v1422_v22, %v2258_v8 }
 0x128   :  { %v253_v27 = vpop.f32.mrf.mxu0  ;;  %v632_v28 = vpop.f32.mrf.mxu1  ;;  %v807_v33 = vmax.f32 %v393_v24, %v771_v25 }
 0x129   :  { %v1185_v29 = vsel %vm1113_vm11, %v1044_v21, %v1149_v23  ;;  %v254_v30 = vadd.f32 %v2715_v1, %v253_v27  ;;  %v633_v31 = vadd.f32 %v2715_v1, %v632_v28  ;;  %v1563_v32 = vsel %vm1491_vm1, %v1422_v22, %v1527_v26 }
 0x12a   :  { %v1599_v34 = vmax.f32 %v1185_v29, %v1563_v32 }
 0x12b   :  { %vm321_vm12 = vcmp.gt.f32.partialorder %v254_v30, 0.0  ;;  %v358_v35 = vmul.f32 %v2258_v8, %v254_v30  ;;  %v736_v36 = vmul.f32 %v633_v31, %v2258_v8  ;;  %vm700_vm13 = vcmp.gt.f32.partialorder %v633_v31, 0.0 }
 0x12c   :  { %v1046_v37 = vpop.f32.mrf.mxu2  ;;  %v1424_v38 = vpop.f32.mrf.mxu3  ;;  %v1635_v39 = vmax.f32 %v807_v33, %v1599_v34 }
 0x12d   :  { %v1047_v40 = vadd.f32 %v2715_v1, %v1046_v37  ;;  %v1425_v41 = vadd.f32 %v2715_v1, %v1424_v38  ;;  %v394_v43 = vsel %vm321_vm12, %v254_v30, %v358_v35  ;;  %v772_v44 = vsel %vm700_vm13, %v633_v31, %v736_v36 }
 0x12e   :  { %1672 = vst.msk [vmem:[%s3015_s4 + $0x98] sm:$0xff] %vm1652_vm6, %v1635_v39  ;;  %v808_v52 = vmax.f32 %v394_v43, %v772_v44 }
 0x12f   :  { %vm1114_vm14 = vcmp.gt.f32.partialorder %v1047_v40, 0.0  ;;  %v1150_v42 = vmul.f32 %v1047_v40, %v2258_v8  ;;  %vm1492_vm15 = vcmp.gt.f32.partialorder %v1425_v41, 0.0  ;;  %v1528_v45 = vmul.f32 %v1425_v41, %v2258_v8 }
 0x130   :  { %v256_v46 = vpop.f32.mrf.mxu0  ;;  %v635_v47 = vpop.f32.mrf.mxu1 }
 0x131   :  { %v1186_v48 = vsel %vm1114_vm14, %v1047_v40, %v1150_v42  ;;  %v257_v49 = vadd.f32 %v2715_v1, %v256_v46  ;;  %v636_v50 = vadd.f32 %v2715_v1, %v635_v47  ;;  %v1564_v51 = vsel %vm1492_vm15, %v1425_v41, %v1528_v45 }
 0x132   :  { %v1600_v53 = vmax.f32 %v1186_v48, %v1564_v51 }
 0x133   :  { %vm322_vm0 = vcmp.gt.f32.partialorder %v257_v49, 0.0  ;;  %v359_v54 = vmul.f32 %v2258_v8, %v257_v49  ;;  %v737_v55 = vmul.f32 %v636_v50, %v2258_v8  ;;  %vm701_vm2 = vcmp.gt.f32.partialorder %v636_v50, 0.0 }
 0x134   :  { %v1049_v56 = vpop.f32.mrf.mxu2  ;;  %v1427_v57 = vpop.f32.mrf.mxu3  ;;  %v1636_v58 = vmax.f32 %v808_v52, %v1600_v53 }
 0x135   :  { %v1050_v59 = vadd.f32 %v2715_v1, %v1049_v56  ;;  %v1428_v4 = vadd.f32 %v2715_v1, %v1427_v57  ;;  %v395_v61 = vsel %vm322_vm0, %v257_v49, %v359_v54  ;;  %v773_v62 = vsel %vm701_vm2, %v636_v50, %v737_v55 }
 0x136   :  { %1673 = vst.msk [vmem:[%s3015_s4 + $0xa0] sm:$0xff] %vm1652_vm6, %v1636_v58  ;;  %v809_v9 = vmax.f32 %v395_v61, %v773_v62 }
 0x137   :  { %vm1115_vm3 = vcmp.gt.f32.partialorder %v1050_v59, 0.0  ;;  %v1151_v60 = vmul.f32 %v1050_v59, %v2258_v8  ;;  %vm1493_vm4 = vcmp.gt.f32.partialorder %v1428_v4, 0.0  ;;  %v1529_v63 = vmul.f32 %v1428_v4, %v2258_v8 }
 0x138   :  { %v259_v0 = vpop.f32.mrf.mxu0  ;;  %v638_v2 = vpop.f32.mrf.mxu1 }
 0x139   :  { %v1187_v3 = vsel %vm1115_vm3, %v1050_v59, %v1151_v60  ;;  %v260_v5 = vadd.f32 %v2715_v1, %v259_v0  ;;  %v639_v6 = vadd.f32 %v2715_v1, %v638_v2  ;;  %v1565_v7 = vsel %vm1493_vm4, %v1428_v4, %v1529_v63 }
 0x13a   :  { %v1601_v10 = vmax.f32 %v1187_v3, %v1565_v7 }
 0x13b   :  { %vm323_vm5 = vcmp.gt.f32.partialorder %v260_v5, 0.0  ;;  %v360_v11 = vmul.f32 %v2258_v8, %v260_v5  ;;  %v738_v12 = vmul.f32 %v639_v6, %v2258_v8  ;;  %vm702_vm7 = vcmp.gt.f32.partialorder %v639_v6, 0.0 }
 0x13c   :  { %v1052_v13 = vpop.f32.mrf.mxu2  ;;  %v1430_v14 = vpop.f32.mrf.mxu3  ;;  %v1637_v15 = vmax.f32 %v809_v9, %v1601_v10 }
 0x13d   :  { %v1053_v16 = vadd.f32 %v2715_v1, %v1052_v13  ;;  %v1431_v17 = vadd.f32 %v2715_v1, %v1430_v14  ;;  %v396_v19 = vsel %vm323_vm5, %v260_v5, %v360_v11  ;;  %v774_v20 = vsel %vm702_vm7, %v639_v6, %v738_v12 }
 0x13e   :  { %1674 = vst.msk [vmem:[%s3015_s4 + $0xa8] sm:$0xff] %vm1652_vm6, %v1637_v15  ;;  %v810_v28 = vmax.f32 %v396_v19, %v774_v20 }
 0x13f   :  { %vm1116_vm8 = vcmp.gt.f32.partialorder %v1053_v16, 0.0  ;;  %v1152_v18 = vmul.f32 %v1053_v16, %v2258_v8  ;;  %vm1494_vm9 = vcmp.gt.f32.partialorder %v1431_v17, 0.0  ;;  %v1530_v21 = vmul.f32 %v1431_v17, %v2258_v8 }
 0x140   :  { %v262_v22 = vpop.f32.mrf.mxu0  ;;  %v641_v23 = vpop.f32.mrf.mxu1 }
 0x141   :  { %v1188_v24 = vsel %vm1116_vm8, %v1053_v16, %v1152_v18  ;;  %v263_v25 = vadd.f32 %v2715_v1, %v262_v22  ;;  %v642_v26 = vadd.f32 %v2715_v1, %v641_v23  ;;  %v1566_v27 = vsel %vm1494_vm9, %v1431_v17, %v1530_v21 }
 0x142   :  { %v1602_v29 = vmax.f32 %v1188_v24, %v1566_v27 }
 0x143   :  { %vm324_vm10 = vcmp.gt.f32.partialorder %v263_v25, 0.0  ;;  %v361_v30 = vmul.f32 %v2258_v8, %v263_v25  ;;  %v739_v31 = vmul.f32 %v642_v26, %v2258_v8  ;;  %vm703_vm11 = vcmp.gt.f32.partialorder %v642_v26, 0.0 }
 0x144   :  { %v1055_v32 = vpop.f32.mrf.mxu2  ;;  %v1433_v33 = vpop.f32.mrf.mxu3  ;;  %v1638_v34 = vmax.f32 %v810_v28, %v1602_v29 }
 0x145   :  { %v1056_v35 = vadd.f32 %v2715_v1, %v1055_v32  ;;  %v1434_v36 = vadd.f32 %v2715_v1, %v1433_v33  ;;  %v397_v38 = vsel %vm324_vm10, %v263_v25, %v361_v30  ;;  %v775_v39 = vsel %vm703_vm11, %v642_v26, %v739_v31 }
 0x146   :  { %1675 = vst.msk [vmem:[%s3015_s4 + $0xb0] sm:$0xff] %vm1652_vm6, %v1638_v34  ;;  %v811_v47 = vmax.f32 %v397_v38, %v775_v39 }
 0x147   :  { %vm1117_vm1 = vcmp.gt.f32.partialorder %v1056_v35, 0.0  ;;  %v1153_v37 = vmul.f32 %v1056_v35, %v2258_v8  ;;  %vm1495_vm12 = vcmp.gt.f32.partialorder %v1434_v36, 0.0  ;;  %v1531_v40 = vmul.f32 %v1434_v36, %v2258_v8 }
 0x148   :  { %v265_v41 = vpop.f32.mrf.mxu0  ;;  %v644_v42 = vpop.f32.mrf.mxu1 }
 0x149   :  { %v1189_v43 = vsel %vm1117_vm1, %v1056_v35, %v1153_v37  ;;  %v266_v44 = vadd.f32 %v2715_v1, %v265_v41  ;;  %v645_v45 = vadd.f32 %v2715_v1, %v644_v42  ;;  %v1567_v46 = vsel %vm1495_vm12, %v1434_v36, %v1531_v40 }
 0x14a   :  { %v1603_v48 = vmax.f32 %v1189_v43, %v1567_v46 }
 0x14b   :  { %vm325_vm13 = vcmp.gt.f32.partialorder %v266_v44, 0.0  ;;  %v362_v49 = vmul.f32 %v2258_v8, %v266_v44  ;;  %v740_v50 = vmul.f32 %v645_v45, %v2258_v8  ;;  %vm704_vm14 = vcmp.gt.f32.partialorder %v645_v45, 0.0 }
 0x14c   :  { %v1058_v51 = vpop.f32.mrf.mxu2  ;;  %v1436_v52 = vpop.f32.mrf.mxu3  ;;  %v1639_v53 = vmax.f32 %v811_v47, %v1603_v48 }
 0x14d   :  { %v1059_v54 = vadd.f32 %v2715_v1, %v1058_v51  ;;  %v1437_v55 = vadd.f32 %v2715_v1, %v1436_v52  ;;  %v398_v57 = vsel %vm325_vm13, %v266_v44, %v362_v49  ;;  %v776_v58 = vsel %vm704_vm14, %v645_v45, %v740_v50 }
 0x14e   :  { %1676 = vst.msk [vmem:[%s3015_s4 + $0xb8] sm:$0xff] %vm1652_vm6, %v1639_v53  ;;  %v812_v2 = vmax.f32 %v398_v57, %v776_v58 }
 0x14f   :  { %vm1118_vm15 = vcmp.gt.f32.partialorder %v1059_v54, 0.0  ;;  %v1154_v56 = vmul.f32 %v1059_v54, %v2258_v8  ;;  %vm1496_vm0 = vcmp.gt.f32.partialorder %v1437_v55, 0.0  ;;  %v1532_v59 = vmul.f32 %v1437_v55, %v2258_v8 }
 0x150   :  { %v268_v4 = vpop.f32.mrf.mxu0  ;;  %v647_v60 = vpop.f32.mrf.mxu1 }
 0x151   :  { %v1190_v61 = vsel %vm1118_vm15, %v1059_v54, %v1154_v56  ;;  %v269_v62 = vadd.f32 %v2715_v1, %v268_v4  ;;  %v648_v63 = vadd.f32 %v2715_v1, %v647_v60  ;;  %v1568_v0 = vsel %vm1496_vm0, %v1437_v55, %v1532_v59 }
 0x152   :  { %v1604_v3 = vmax.f32 %v1190_v61, %v1568_v0 }
 0x153   :  { %vm326_vm2 = vcmp.gt.f32.partialorder %v269_v62, 0.0  ;;  %v363_v5 = vmul.f32 %v2258_v8, %v269_v62  ;;  %v741_v6 = vmul.f32 %v648_v63, %v2258_v8  ;;  %vm705_vm3 = vcmp.gt.f32.partialorder %v648_v63, 0.0 }
 0x154   :  { %v1061_v7 = vpop.f32.mrf.mxu2  ;;  %v1439_v9 = vpop.f32.mrf.mxu3  ;;  %v1640_v10 = vmax.f32 %v812_v2, %v1604_v3 }
 0x155   :  { %v1062_v11 = vadd.f32 %v2715_v1, %v1061_v7  ;;  %v1440_v12 = vadd.f32 %v2715_v1, %v1439_v9  ;;  %v399_v14 = vsel %vm326_vm2, %v269_v62, %v363_v5  ;;  %v777_v15 = vsel %vm705_vm3, %v648_v63, %v741_v6 }
 0x156   :  { %1677 = vst.msk [vmem:[%s3015_s4 + $0xc0] sm:$0xff] %vm1652_vm6, %v1640_v10  ;;  %v813_v23 = vmax.f32 %v399_v14, %v777_v15 }
 0x157   :  { %vm1119_vm4 = vcmp.gt.f32.partialorder %v1062_v11, 0.0  ;;  %v1155_v13 = vmul.f32 %v1062_v11, %v2258_v8  ;;  %vm1497_vm5 = vcmp.gt.f32.partialorder %v1440_v12, 0.0  ;;  %v1533_v16 = vmul.f32 %v1440_v12, %v2258_v8 }
 0x158   :  { %v271_v17 = vpop.f32.mrf.mxu0  ;;  %v650_v18 = vpop.f32.mrf.mxu1 }
 0x159   :  { %v1191_v19 = vsel %vm1119_vm4, %v1062_v11, %v1155_v13  ;;  %v272_v20 = vadd.f32 %v2715_v1, %v271_v17  ;;  %v651_v21 = vadd.f32 %v2715_v1, %v650_v18  ;;  %v1569_v22 = vsel %vm1497_vm5, %v1440_v12, %v1533_v16 }
 0x15a   :  { %v1605_v24 = vmax.f32 %v1191_v19, %v1569_v22 }
 0x15b   :  { %vm327_vm7 = vcmp.gt.f32.partialorder %v272_v20, 0.0  ;;  %v364_v25 = vmul.f32 %v2258_v8, %v272_v20  ;;  %v742_v26 = vmul.f32 %v651_v21, %v2258_v8  ;;  %vm706_vm8 = vcmp.gt.f32.partialorder %v651_v21, 0.0 }
 0x15c   :  { %v1064_v27 = vpop.f32.mrf.mxu2  ;;  %v1442_v28 = vpop.f32.mrf.mxu3  ;;  %v1641_v29 = vmax.f32 %v813_v23, %v1605_v24 }
 0x15d   :  { %v1065_v30 = vadd.f32 %v2715_v1, %v1064_v27  ;;  %v1443_v31 = vadd.f32 %v2715_v1, %v1442_v28  ;;  %v400_v33 = vsel %vm327_vm7, %v272_v20, %v364_v25  ;;  %v778_v34 = vsel %vm706_vm8, %v651_v21, %v742_v26 }
 0x15e   :  { %1678 = vst.msk [vmem:[%s3015_s4 + $0xc8] sm:$0xff] %vm1652_vm6, %v1641_v29  ;;  %v814_v42 = vmax.f32 %v400_v33, %v778_v34 }
 0x15f   :  { %vm1120_vm9 = vcmp.gt.f32.partialorder %v1065_v30, 0.0  ;;  %v1156_v32 = vmul.f32 %v1065_v30, %v2258_v8  ;;  %vm1498_vm10 = vcmp.gt.f32.partialorder %v1443_v31, 0.0  ;;  %v1534_v35 = vmul.f32 %v1443_v31, %v2258_v8 }
 0x160   :  { %v274_v36 = vpop.f32.mrf.mxu0  ;;  %v653_v37 = vpop.f32.mrf.mxu1 }
 0x161   :  { %v1192_v38 = vsel %vm1120_vm9, %v1065_v30, %v1156_v32  ;;  %v275_v39 = vadd.f32 %v2715_v1, %v274_v36  ;;  %v654_v40 = vadd.f32 %v2715_v1, %v653_v37  ;;  %v1570_v41 = vsel %vm1498_vm10, %v1443_v31, %v1534_v35 }
 0x162   :  { %v1606_v43 = vmax.f32 %v1192_v38, %v1570_v41 }
 0x163   :  { %vm328_vm11 = vcmp.gt.f32.partialorder %v275_v39, 0.0  ;;  %v365_v44 = vmul.f32 %v2258_v8, %v275_v39  ;;  %v743_v45 = vmul.f32 %v654_v40, %v2258_v8  ;;  %vm707_vm1 = vcmp.gt.f32.partialorder %v654_v40, 0.0 }
 0x164   :  { %v1067_v46 = vpop.f32.mrf.mxu2  ;;  %v1445_v47 = vpop.f32.mrf.mxu3  ;;  %v1642_v48 = vmax.f32 %v814_v42, %v1606_v43 }
 0x165   :  { %v1068_v49 = vadd.f32 %v2715_v1, %v1067_v46  ;;  %v1446_v50 = vadd.f32 %v2715_v1, %v1445_v47  ;;  %v401_v52 = vsel %vm328_vm11, %v275_v39, %v365_v44  ;;  %v779_v53 = vsel %vm707_vm1, %v654_v40, %v743_v45 }
 0x166   :  { %1679 = vst.msk [vmem:[%s3015_s4 + $0xd0] sm:$0xff] %vm1652_vm6, %v1642_v48  ;;  %v815_v60 = vmax.f32 %v401_v52, %v779_v53 }
 0x167   :  { %vm1121_vm12 = vcmp.gt.f32.partialorder %v1068_v49, 0.0  ;;  %v1157_v51 = vmul.f32 %v1068_v49, %v2258_v8  ;;  %vm1499_vm13 = vcmp.gt.f32.partialorder %v1446_v50, 0.0  ;;  %v1535_v54 = vmul.f32 %v1446_v50, %v2258_v8 }
 0x168   :  { %v277_v55 = vpop.f32.mrf.mxu0  ;;  %v656_v56 = vpop.f32.mrf.mxu1 }
 0x169   :  { %v1193_v57 = vsel %vm1121_vm12, %v1068_v49, %v1157_v51  ;;  %v278_v58 = vadd.f32 %v2715_v1, %v277_v55  ;;  %v657_v59 = vadd.f32 %v2715_v1, %v656_v56  ;;  %v1571_v4 = vsel %vm1499_vm13, %v1446_v50, %v1535_v54 }
 0x16a   :  { %v1607_v61 = vmax.f32 %v1193_v57, %v1571_v4 }
 0x16b   :  { %vm329_vm14 = vcmp.gt.f32.partialorder %v278_v58, 0.0  ;;  %v366_v62 = vmul.f32 %v2258_v8, %v278_v58  ;;  %v744_v63 = vmul.f32 %v657_v59, %v2258_v8  ;;  %vm708_vm15 = vcmp.gt.f32.partialorder %v657_v59, 0.0 }
 0x16c   :  { %v1070_v0 = vpop.f32.mrf.mxu2  ;;  %v1448_v2 = vpop.f32.mrf.mxu3  ;;  %v1643_v3 = vmax.f32 %v815_v60, %v1607_v61 }
 0x16d   :  { %v1071_v5 = vadd.f32 %v2715_v1, %v1070_v0  ;;  %v1449_v6 = vadd.f32 %v2715_v1, %v1448_v2  ;;  %v402_v9 = vsel %vm329_vm14, %v278_v58, %v366_v62  ;;  %v780_v10 = vsel %vm708_vm15, %v657_v59, %v744_v63 }
 0x16e   :  { %1680 = vst.msk [vmem:[%s3015_s4 + $0xd8] sm:$0xff] %vm1652_vm6, %v1643_v3  ;;  %v816_v18 = vmax.f32 %v402_v9, %v780_v10 }
 0x16f   :  { %vm1122_vm0 = vcmp.gt.f32.partialorder %v1071_v5, 0.0  ;;  %v1158_v7 = vmul.f32 %v1071_v5, %v2258_v8  ;;  %vm1500_vm2 = vcmp.gt.f32.partialorder %v1449_v6, 0.0  ;;  %v1536_v11 = vmul.f32 %v1449_v6, %v2258_v8 }
 0x170   :  { %v280_v12 = vpop.f32.mrf.mxu0  ;;  %v659_v13 = vpop.f32.mrf.mxu1 }
 0x171   :  { %v1194_v14 = vsel %vm1122_vm0, %v1071_v5, %v1158_v7  ;;  %v281_v15 = vadd.f32 %v2715_v1, %v280_v12  ;;  %v660_v16 = vadd.f32 %v2715_v1, %v659_v13  ;;  %v1572_v17 = vsel %vm1500_vm2, %v1449_v6, %v1536_v11 }
 0x172   :  { %v1608_v19 = vmax.f32 %v1194_v14, %v1572_v17 }
 0x173   :  { %vm330_vm3 = vcmp.gt.f32.partialorder %v281_v15, 0.0  ;;  %v367_v20 = vmul.f32 %v2258_v8, %v281_v15  ;;  %v745_v21 = vmul.f32 %v660_v16, %v2258_v8  ;;  %vm709_vm4 = vcmp.gt.f32.partialorder %v660_v16, 0.0 }
 0x174   :  { %v1073_v22 = vpop.f32.mrf.mxu2  ;;  %v1451_v23 = vpop.f32.mrf.mxu3  ;;  %v1644_v24 = vmax.f32 %v816_v18, %v1608_v19 }
 0x175   :  { %v1074_v25 = vadd.f32 %v2715_v1, %v1073_v22  ;;  %v1452_v26 = vadd.f32 %v2715_v1, %v1451_v23  ;;  %v403_v28 = vsel %vm330_vm3, %v281_v15, %v367_v20  ;;  %v781_v29 = vsel %vm709_vm4, %v660_v16, %v745_v21 }
 0x176   :  { %1681 = vst.msk [vmem:[%s3015_s4 + $0xe0] sm:$0xff] %vm1652_vm6, %v1644_v24  ;;  %v817_v37 = vmax.f32 %v403_v28, %v781_v29 }
 0x177   :  { %vm1123_vm5 = vcmp.gt.f32.partialorder %v1074_v25, 0.0  ;;  %v1159_v27 = vmul.f32 %v1074_v25, %v2258_v8  ;;  %vm1501_vm7 = vcmp.gt.f32.partialorder %v1452_v26, 0.0  ;;  %v1537_v30 = vmul.f32 %v1452_v26, %v2258_v8 }
 0x178   :  { %v283_v31 = vpop.f32.mrf.mxu0  ;;  %v662_v32 = vpop.f32.mrf.mxu1 }
 0x179   :  { %v1195_v33 = vsel %vm1123_vm5, %v1074_v25, %v1159_v27  ;;  %v284_v34 = vadd.f32 %v2715_v1, %v283_v31  ;;  %v663_v35 = vadd.f32 %v2715_v1, %v662_v32  ;;  %v1573_v36 = vsel %vm1501_vm7, %v1452_v26, %v1537_v30 }
 0x17a   :  { %v1609_v38 = vmax.f32 %v1195_v33, %v1573_v36 }
 0x17b   :  { %vm331_vm8 = vcmp.gt.f32.partialorder %v284_v34, 0.0  ;;  %v368_v39 = vmul.f32 %v2258_v8, %v284_v34  ;;  %v746_v40 = vmul.f32 %v663_v35, %v2258_v8  ;;  %vm710_vm9 = vcmp.gt.f32.partialorder %v663_v35, 0.0 }
 0x17c   :  { %v1076_v41 = vpop.f32.mrf.mxu2  ;;  %v1454_v42 = vpop.f32.mrf.mxu3  ;;  %v1645_v43 = vmax.f32 %v817_v37, %v1609_v38 }
 0x17d   :  { %v1077_v44 = vadd.f32 %v2715_v1, %v1076_v41  ;;  %v1455_v45 = vadd.f32 %v2715_v1, %v1454_v42  ;;  %v404_v47 = vsel %vm331_vm8, %v284_v34, %v368_v39  ;;  %v782_v48 = vsel %vm710_vm9, %v663_v35, %v746_v40 }
 0x17e   :  { %1682 = vst.msk [vmem:[%s3015_s4 + $0xe8] sm:$0xff] %vm1652_vm6, %v1645_v43  ;;  %v818_v56 = vmax.f32 %v404_v47, %v782_v48 }
 0x17f   :  { %vm1124_vm10 = vcmp.gt.f32.partialorder %v1077_v44, 0.0  ;;  %v1160_v46 = vmul.f32 %v1077_v44, %v2258_v8  ;;  %vm1502_vm11 = vcmp.gt.f32.partialorder %v1455_v45, 0.0  ;;  %v1538_v49 = vmul.f32 %v1455_v45, %v2258_v8 }
 0x180   :  { %v286_v50 = vpop.f32.mrf.mxu0  ;;  %v665_v51 = vpop.f32.mrf.mxu1 }
 0x181   :  { %v1196_v52 = vsel %vm1124_vm10, %v1077_v44, %v1160_v46  ;;  %v287_v53 = vadd.f32 %v2715_v1, %v286_v50  ;;  %v666_v54 = vadd.f32 %v2715_v1, %v665_v51  ;;  %v1574_v55 = vsel %vm1502_vm11, %v1455_v45, %v1538_v49 }
 0x182   :  { %v1610_v57 = vmax.f32 %v1196_v52, %v1574_v55 }
 0x183   :  { %vm332_vm1 = vcmp.gt.f32.partialorder %v287_v53, 0.0  ;;  %v369_v58 = vmul.f32 %v2258_v8, %v287_v53  ;;  %v747_v59 = vmul.f32 %v666_v54, %v2258_v8  ;;  %vm711_vm12 = vcmp.gt.f32.partialorder %v666_v54, 0.0 }
 0x184   :  { %v1079_v4 = vpop.f32.mrf.mxu2  ;;  %v1457_v60 = vpop.f32.mrf.mxu3  ;;  %v1646_v61 = vmax.f32 %v818_v56, %v1610_v57 }
 0x185   :  { %v1080_v62 = vadd.f32 %v2715_v1, %v1079_v4  ;;  %v1458_v63 = vadd.f32 %v2715_v1, %v1457_v60  ;;  %v405_v2 = vsel %vm332_vm1, %v287_v53, %v369_v58  ;;  %v783_v3 = vsel %vm711_vm12, %v666_v54, %v747_v59 }
 0x186   :  { %1683 = vst.msk [vmem:[%s3015_s4 + $0xf0] sm:$0xff] %vm1652_vm6, %v1646_v61  ;;  %v819_v13 = vmax.f32 %v405_v2, %v783_v3 }
 0x187   :  { %vm1125_vm13 = vcmp.gt.f32.partialorder %v1080_v62, 0.0  ;;  %v1161_v0 = vmul.f32 %v1080_v62, %v2258_v8  ;;  %vm1503_vm14 = vcmp.gt.f32.partialorder %v1458_v63, 0.0  ;;  %v1539_v5 = vmul.f32 %v1458_v63, %v2258_v8 }
 0x188   :  { %v289_v6 = vpop.f32.mrf.mxu0  ;;  %v668_v7 = vpop.f32.mrf.mxu1 }
 0x189   :  { %v1197_v9 = vsel %vm1125_vm13, %v1080_v62, %v1161_v0  ;;  %v290_v10 = vadd.f32 %v2715_v1, %v289_v6  ;;  %v669_v11 = vadd.f32 %v2715_v1, %v668_v7  ;;  %v1575_v12 = vsel %vm1503_vm14, %v1458_v63, %v1539_v5 }
 0x18a   :  { %v1611_v14 = vmax.f32 %v1197_v9, %v1575_v12 }
 0x18b   :  { %vm333_vm15 = vcmp.gt.f32.partialorder %v290_v10, 0.0  ;;  %v370_v15 = vmul.f32 %v2258_v8, %v290_v10  ;;  %v748_v16 = vmul.f32 %v669_v11, %v2258_v8  ;;  %vm712_vm0 = vcmp.gt.f32.partialorder %v669_v11, 0.0 }
 0x18c   :  { %v1082_v17 = vpop.f32.mrf.mxu2  ;;  %v1460_v18 = vpop.f32.mrf.mxu3  ;;  %v1647_v19 = vmax.f32 %v819_v13, %v1611_v14 }
 0x18d   :  { %v1083_v20 = vadd.f32 %v2715_v1, %v1082_v17  ;;  %v1461_v21 = vadd.f32 %v2715_v1, %v1460_v18  ;;  %v406_v23 = vsel %vm333_vm15, %v290_v10, %v370_v15  ;;  %v784_v24 = vsel %vm712_vm0, %v669_v11, %v748_v16 }
 0x18e   :  { %1684 = vst.msk [vmem:[%s3015_s4 + $0xf8] sm:$0xff] %vm1652_vm6, %v1647_v19  ;;  %v820_v32 = vmax.f32 %v406_v23, %v784_v24 }
 0x18f   :  { %vm1126_vm2 = vcmp.gt.f32.partialorder %v1083_v20, 0.0  ;;  %v1162_v22 = vmul.f32 %v1083_v20, %v2258_v8  ;;  %vm1504_vm3 = vcmp.gt.f32.partialorder %v1461_v21, 0.0  ;;  %v1540_v25 = vmul.f32 %v1461_v21, %v2258_v8 }
 0x190   :  { %v292_v26 = vpop.f32.mrf.mxu0  ;;  %v671_v27 = vpop.f32.mrf.mxu1 }
 0x191   :  { %v1198_v28 = vsel %vm1126_vm2, %v1083_v20, %v1162_v22  ;;  %v293_v29 = vadd.f32 %v2715_v1, %v292_v26  ;;  %v672_v30 = vadd.f32 %v2715_v1, %v671_v27  ;;  %v1576_v31 = vsel %vm1504_vm3, %v1461_v21, %v1540_v25 }
 0x192   :  { %v1612_v33 = vmax.f32 %v1198_v28, %v1576_v31 }
 0x193   :  { %vm334_vm4 = vcmp.gt.f32.partialorder %v293_v29, 0.0  ;;  %v371_v34 = vmul.f32 %v2258_v8, %v293_v29  ;;  %v749_v35 = vmul.f32 %v672_v30, %v2258_v8  ;;  %vm713_vm5 = vcmp.gt.f32.partialorder %v672_v30, 0.0 }
 0x194   :  { %v1085_v36 = vpop.f32.mrf.mxu2  ;;  %v1463_v37 = vpop.f32.mrf.mxu3  ;;  %v1648_v38 = vmax.f32 %v820_v32, %v1612_v33 }
 0x195   :  { %v1086_v39 = vadd.f32 %v2715_v1, %v1085_v36  ;;  %v1464_v40 = vadd.f32 %v2715_v1, %v1463_v37  ;;  %v407_v42 = vsel %vm334_vm4, %v293_v29, %v371_v34  ;;  %v785_v43 = vsel %vm713_vm5, %v672_v30, %v749_v35 }
 0x196   :  { %1685 = vst.msk [vmem:[%s3015_s4 + $0x100] sm:$0xff] %vm1652_vm6, %v1648_v38  ;;  %v821_v51 = vmax.f32 %v407_v42, %v785_v43 }
 0x197   :  { %vm1127_vm7 = vcmp.gt.f32.partialorder %v1086_v39, 0.0  ;;  %v1163_v41 = vmul.f32 %v1086_v39, %v2258_v8  ;;  %vm1505_vm8 = vcmp.gt.f32.partialorder %v1464_v40, 0.0  ;;  %v1541_v44 = vmul.f32 %v1464_v40, %v2258_v8 }
 0x198   :  { %v295_v45 = vpop.f32.mrf.mxu0  ;;  %v674_v46 = vpop.f32.mrf.mxu1 }
 0x199   :  { %v1199_v47 = vsel %vm1127_vm7, %v1086_v39, %v1163_v41  ;;  %v296_v48 = vadd.f32 %v2715_v1, %v295_v45  ;;  %v675_v49 = vadd.f32 %v2715_v1, %v674_v46  ;;  %v1577_v50 = vsel %vm1505_vm8, %v1464_v40, %v1541_v44 }
 0x19a   :  { %v1613_v52 = vmax.f32 %v1199_v47, %v1577_v50 }
 0x19b   :  { %vm335_vm9 = vcmp.gt.f32.partialorder %v296_v48, 0.0  ;;  %v372_v53 = vmul.f32 %v2258_v8, %v296_v48  ;;  %v750_v54 = vmul.f32 %v675_v49, %v2258_v8  ;;  %vm714_vm10 = vcmp.gt.f32.partialorder %v675_v49, 0.0 }
 0x19c   :  { %v1088_v55 = vpop.f32.mrf.mxu2  ;;  %v1466_v56 = vpop.f32.mrf.mxu3  ;;  %v1649_v57 = vmax.f32 %v821_v51, %v1613_v52 }
 0x19d   :  { %v1089_v58 = vadd.f32 %v2715_v1, %v1088_v55  ;;  %v1467_v59 = vadd.f32 %v2715_v1, %v1466_v56  ;;  %v408_v60 = vsel %vm335_vm9, %v296_v48, %v372_v53  ;;  %v786_v61 = vsel %vm714_vm10, %v675_v49, %v750_v54 }
 0x19e   :  { %1686 = vst.msk [vmem:[%s3015_s4 + $0x108] sm:$0xff] %vm1652_vm6, %v1649_v57  ;;  %v822_v7 = vmax.f32 %v408_v60, %v786_v61 }
 0x19f   :  { %vm1128_vm11 = vcmp.gt.f32.partialorder %v1089_v58, 0.0  ;;  %v1164_v4 = vmul.f32 %v1089_v58, %v2258_v8  ;;  %vm1506_vm1 = vcmp.gt.f32.partialorder %v1467_v59, 0.0  ;;  %v1542_v62 = vmul.f32 %v1467_v59, %v2258_v8 }
 0x1a0   :  { %v298_v63 = vpop.f32.mrf.mxu0  ;;  %v677_v0 = vpop.f32.mrf.mxu1 }
 0x1a1   :  { %v1200_v2 = vsel %vm1128_vm11, %v1089_v58, %v1164_v4  ;;  %v299_v3 = vadd.f32 %v2715_v1, %v298_v63  ;;  %v678_v5 = vadd.f32 %v2715_v1, %v677_v0  ;;  %v1578_v6 = vsel %vm1506_vm1, %v1467_v59, %v1542_v62 }
 0x1a2   :  { %v1614_v9 = vmax.f32 %v1200_v2, %v1578_v6 }
 0x1a3   :  { %vm336_vm12 = vcmp.gt.f32.partialorder %v299_v3, 0.0  ;;  %v373_v10 = vmul.f32 %v2258_v8, %v299_v3  ;;  %v751_v11 = vmul.f32 %v678_v5, %v2258_v8  ;;  %vm715_vm13 = vcmp.gt.f32.partialorder %v678_v5, 0.0 }
 0x1a4   :  { %v1091_v12 = vpop.f32.mrf.mxu2  ;;  %v1469_v13 = vpop.f32.mrf.mxu3  ;;  %v1650_v14 = vmax.f32 %v822_v7, %v1614_v9 }
 0x1a5   :  { %v1092_v15 = vadd.f32 %v2715_v1, %v1091_v12  ;;  %v1470_v16 = vadd.f32 %v2715_v1, %v1469_v13  ;;  %v409_v18 = vsel %vm336_vm12, %v299_v3, %v373_v10  ;;  %v787_v19 = vsel %vm715_vm13, %v678_v5, %v751_v11 }
 0x1a6   :  { %1687 = vst.msk [vmem:[%s3015_s4 + $0x110] sm:$0xff] %vm1652_vm6, %v1650_v14  ;;  %v823_v23 = vmax.f32 %v409_v18, %v787_v19 }
 0x1a7   :  { %vm1129_vm14 = vcmp.gt.f32.partialorder %v1092_v15, 0.0  ;;  %v1165_v17 = vmul.f32 %v1092_v15, %v2258_v8  ;;  %vm1507_vm15 = vcmp.gt.f32.partialorder %v1470_v16, 0.0  ;;  %v1543_v20 = vmul.f32 %v1470_v16, %v2258_v8 }
 0x1a9   :  { %v1201_v21 = vsel %vm1129_vm14, %v1092_v15, %v1165_v17  ;;  %v1579_v22 = vsel %vm1507_vm15, %v1470_v16, %v1543_v20 }
 0x1aa   :  { %v1615_v24 = vmax.f32 %v1201_v21, %v1579_v22 }
 0x1ac   :  { %v1651_v25 = vmax.f32 %v823_v23, %v1615_v24 }
 0x1ae   :  { %1688 = vst.msk [vmem:[%s3015_s4 + $0x118] sm:$0xff] %vm1652_vm6, %v1651_v25 }

// kernel: embedding_net_l2.4
= control target key start
LH: loop header
LB: loop body
LE: loop exit
PB: predicated region body
PF: predicated region fallthrough
CT: control target
= control target key end

     0   :  { %vm151_vm0 = vcmask 261120   ;;  %vm1160_vm11 = vcmask 523264   ;;  %s3060_s1 = inlined_call_operand.vmem [shape: f32[800,64], index: 1, kind: input, shape index: {}]   ;;  %s3061_s0 = inlined_call_operand.vmem [shape: f32[4,32,800], index: 0, kind: input, shape index: {}]   ;;  %s3062_s2 = inlined_call_operand.vmem [shape: f32[1,64], index: 2, kind: input, shape index: {}]   ;;  %s3063_s3 = inlined_call_operand.<no memory space> [shape: f32[1], index: 3, kind: input, shape index: {}]   ;;  %s3064_s4 = inlined_call_operand.vmem [shape: f32[32,64], index: 4, kind: output, shape index: {}]  }
   0x1   :  { %v1398_v0 = vld [vmem:[%s3060_s1 + $0x78] sm:$0xff]  ;;  %v1408_v2 = vld [vmem:[%s3060_s1 + $0x70] sm:$0xff]  ;;  %v1432_v6 = vld [vmem:[%s3060_s1 + $0x68] sm:$0xff] }
   0x2   :  { %3137 = vst [vmem:[#allocation3_spill] sm:$0xff] %v1398_v0  ;;  %v1403_v1 = vld [vmem:[%s3060_s1 + $0x178] sm:$0xff]  ;;  %164 = vmatpush.msra.mxu0 %v1398_v0  ;;  %v1420_v4 = vld [vmem:[%s3060_s1 + $0x170] sm:$0xff]  ;;  %v1442_v8 = vld [vmem:[%s3060_s1 + $0x168] sm:$0xff] }
   0x3   :  { %3138 = vst [vmem:[#allocation4_spill] sm:$0xff] %v1408_v2  ;;  %222 = vmatpush.msra.mxu2 %v1403_v1  ;;  %v1415_v3 = vld [vmem:[%s3060_s1 + $0xf8] sm:$0xff]  ;;  %v1437_v7 = vld [vmem:[%s3060_s1 + $0xf0] sm:$0xff]  ;;  %v1454_v10 = vld [vmem:[%s3060_s1 + $0xe8] sm:$0xff] }
   0x4   :  { %v1425_v5 = vld [vmem:[%s3060_s1 + $0x1f8] sm:$0xff]  ;;  %193 = vmatpush.msra.mxu1 %v1415_v3  ;;  %3140 = vst [vmem:[#allocation6_spill] sm:$0xff] %v1432_v6  ;;  %165 = vmatpush.msra.mxu0 %v1408_v2  ;;  %v1449_v9 = vld [vmem:[%s3060_s1 + $0x1f0] sm:$0xff]  ;;  %v1461_v11 = vld [vmem:[%s3060_s1 + $0x60] sm:$0xff] }
   0x5   :  { %3139 = vst [vmem:[#allocation5_spill] sm:$0xff] %v1425_v5  ;;  %251 = vmatpush.msra.mxu3 %v1425_v5  ;;  %223 = vmatpush.msra.mxu2 %v1420_v4  ;;  %v1466_v12 = vld [vmem:[%s3060_s1 + $0x160] sm:$0xff]  ;;  %v1471_v13 = vld [vmem:[%s3060_s1 + $0x1e8] sm:$0xff]  ;;  %v1490_v16 = vld [vmem:[%s3060_s1 + $0x58] sm:$0xff] }
   0x6   :  { %3141 = vst [vmem:[#allocation7_spill] sm:$0xff] %v1449_v9  ;;  %194 = vmatpush.msra.mxu1 %v1437_v7  ;;  %166 = vmatpush.msra.mxu0 %v1432_v6  ;;  %v1478_v14 = vld [vmem:[%s3060_s1 + $0xe0] sm:$0xff]  ;;  %v1495_v17 = vld [vmem:[%s3060_s1 + $0x158] sm:$0xff]  ;;  %v1514_v20 = vld [vmem:[%s3060_s1 + $0x50] sm:$0xff] }
   0x7   :  { %252 = vmatpush.msra.mxu3 %v1449_v9  ;;  %3142 = vst [vmem:[#allocation8_spill] sm:$0xff] %v1461_v11  ;;  %224 = vmatpush.msra.mxu2 %v1442_v8  ;;  %v1483_v15 = vld [vmem:[%s3060_s1 + $0x1e0] sm:$0xff]  ;;  %v1502_v18 = vld [vmem:[%s3060_s1 + $0xd8] sm:$0xff]  ;;  %v1519_v21 = vld [vmem:[%s3060_s1 + $0x150] sm:$0xff] }
   0x8   :  { %3143 = vst [vmem:[#allocation9_spill] sm:$0xff] %v1471_v13  ;;  %195 = vmatpush.msra.mxu1 %v1454_v10  ;;  %167 = vmatpush.msra.mxu0 %v1461_v11  ;;  %v1507_v19 = vld [vmem:[%s3060_s1 + $0x1d8] sm:$0xff]  ;;  %v1526_v22 = vld [vmem:[%s3060_s1 + $0xd0] sm:$0xff]  ;;  %v1538_v24 = vld [vmem:[%s3060_s1 + $0x48] sm:$0xff] }
   0x9   :  { %3144 = vst [vmem:[#allocation10_spill] sm:$0xff] %v1483_v15  ;;  %253 = vmatpush.msra.mxu3 %v1471_v13  ;;  %225 = vmatpush.msra.mxu2 %v1466_v12  ;;  %v1531_v23 = vld [vmem:[%s3060_s1 + $0x1d0] sm:$0xff]  ;;  %v1543_v25 = vld [vmem:[%s3060_s1 + $0x148] sm:$0xff]  ;;  %v1562_v28 = vld [vmem:[%s3060_s1 + $0x40] sm:$0xff] }
   0xa   :  { %3145 = vst [vmem:[#allocation11_spill] sm:$0xff] %v1490_v16  ;;  %196 = vmatpush.msra.mxu1 %v1478_v14  ;;  %168 = vmatpush.msra.mxu0 %v1490_v16  ;;  %v1550_v26 = vld [vmem:[%s3060_s1 + $0xc8] sm:$0xff]  ;;  %v1567_v29 = vld [vmem:[%s3060_s1 + $0x140] sm:$0xff]  ;;  %v1586_v32 = vld [vmem:[%s3060_s1 + $0x38] sm:$0xff] }
   0xb   :  { %3146 = vst [vmem:[#allocation12_spill] sm:$0xff] %v1507_v19  ;;  %254 = vmatpush.msra.mxu3 %v1483_v15  ;;  %226 = vmatpush.msra.mxu2 %v1495_v17  ;;  %v1555_v27 = vld [vmem:[%s3060_s1 + $0x1c8] sm:$0xff]  ;;  %v1574_v30 = vld [vmem:[%s3060_s1 + $0xc0] sm:$0xff]  ;;  %v1591_v33 = vld [vmem:[%s3060_s1 + $0x138] sm:$0xff] }
   0xc   :  { %3147 = vst [vmem:[#allocation13_spill] sm:$0xff] %v1514_v20  ;;  %197 = vmatpush.msra.mxu1 %v1502_v18  ;;  %169 = vmatpush.msra.mxu0 %v1514_v20  ;;  %v1579_v31 = vld [vmem:[%s3060_s1 + $0x1c0] sm:$0xff]  ;;  %v1598_v34 = vld [vmem:[%s3060_s1 + $0xb8] sm:$0xff]  ;;  %v1610_v36 = vld [vmem:[%s3060_s1 + $0x30] sm:$0xff] }
   0xd   :  { %255 = vmatpush.msra.mxu3 %v1507_v19  ;;  %3148 = vst [vmem:[#allocation14_spill] sm:$0xff] %v1538_v24  ;;  %227 = vmatpush.msra.mxu2 %v1519_v21  ;;  %v1603_v35 = vld [vmem:[%s3060_s1 + $0x1b8] sm:$0xff]  ;;  %v1615_v37 = vld [vmem:[%s3060_s1 + $0x130] sm:$0xff]  ;;  %v1634_v40 = vld [vmem:[%s3060_s1 + $0x28] sm:$0xff] }
   0xe   :  { %198 = vmatpush.msra.mxu1 %v1526_v22  ;;  %170 = vmatpush.msra.mxu0 %v1538_v24  ;;  %3149 = vst [vmem:[#allocation15_spill] sm:$0xff] %v1586_v32  ;;  %v1622_v38 = vld [vmem:[%s3060_s1 + $0xb0] sm:$0xff]  ;;  %v1639_v41 = vld [vmem:[%s3060_s1 + $0x128] sm:$0xff]  ;;  %v1658_v44 = vld [vmem:[%s3060_s1 + $0x20] sm:$0xff] }
   0xf   :  { %256 = vmatpush.msra.mxu3 %v1531_v23  ;;  %228 = vmatpush.msra.mxu2 %v1543_v25  ;;  %3150 = vst [vmem:[#allocation16_spill] sm:$0xff] %v1610_v36  ;;  %v1627_v39 = vld [vmem:[%s3060_s1 + $0x1b0] sm:$0xff]  ;;  %v1646_v42 = vld [vmem:[%s3060_s1 + $0xa8] sm:$0xff]  ;;  %v1663_v45 = vld [vmem:[%s3060_s1 + $0x120] sm:$0xff] }
  0x10   :  { %199 = vmatpush.msra.mxu1 %v1550_v26  ;;  %171 = vmatpush.msra.mxu0 %v1562_v28  ;;  %3151 = vst [vmem:[#allocation17_spill] sm:$0xff] %v1634_v40  ;;  %v1651_v43 = vld [vmem:[%s3060_s1 + $0x1a8] sm:$0xff]  ;;  %v1670_v46 = vld [vmem:[%s3060_s1 + $0xa0] sm:$0xff]  ;;  %v1682_v48 = vld [vmem:[%s3060_s1 + $0x18] sm:$0xff] }
  0x11   :  { %257 = vmatpush.msra.mxu3 %v1555_v27  ;;  %229 = vmatpush.msra.mxu2 %v1567_v29  ;;  %3152 = vst [vmem:[#allocation18_spill] sm:$0xff] %v1651_v43  ;;  %v1675_v47 = vld [vmem:[%s3060_s1 + $0x1a0] sm:$0xff]  ;;  %v1687_v49 = vld [vmem:[%s3060_s1 + $0x118] sm:$0xff]  ;;  %v1706_v52 = vld [vmem:[%s3060_s1 + $0x10] sm:$0xff] }
  0x12   :  { %200 = vmatpush.msra.mxu1 %v1574_v30  ;;  %172 = vmatpush.msra.mxu0 %v1586_v32  ;;  %3153 = vst [vmem:[#allocation19_spill] sm:$0xff] %v1663_v45  ;;  %v1694_v50 = vld [vmem:[%s3060_s1 + $0x98] sm:$0xff]  ;;  %v1711_v53 = vld [vmem:[%s3060_s1 + $0x110] sm:$0xff]  ;;  %v1730_v56 = vld [vmem:[%s3060_s1 + $0x8] sm:$0xff] }
  0x13   :  { %258 = vmatpush.msra.mxu3 %v1579_v31  ;;  %230 = vmatpush.msra.mxu2 %v1591_v33  ;;  %3154 = vst [vmem:[#allocation20_spill] sm:$0xff] %v1675_v47  ;;  %v1699_v51 = vld [vmem:[%s3060_s1 + $0x198] sm:$0xff]  ;;  %v1718_v54 = vld [vmem:[%s3060_s1 + $0x90] sm:$0xff]  ;;  %v1735_v57 = vld [vmem:[%s3060_s1 + $0x108] sm:$0xff] }
  0x14   :  { %201 = vmatpush.msra.mxu1 %v1598_v34  ;;  %173 = vmatpush.msra.mxu0 %v1610_v36  ;;  %3155 = vst [vmem:[#allocation21_spill] sm:$0xff] %v1682_v48  ;;  %v1723_v55 = vld [vmem:[%s3060_s1 + $0x190] sm:$0xff]  ;;  %v1742_v58 = vld [vmem:[%s3060_s1 + $0x88] sm:$0xff]  ;;  %v1754_v60 = vld [vmem:[%s3060_s1] sm:$0xff] }
  0x15   :  { %259 = vmatpush.msra.mxu3 %v1603_v35  ;;  %231 = vmatpush.msra.mxu2 %v1615_v37  ;;  %3156 = vst [vmem:[#allocation22_spill] sm:$0xff] %v1687_v49  ;;  %v1747_v59 = vld [vmem:[%s3060_s1 + $0x188] sm:$0xff]  ;;  %v1759_v61 = vld [vmem:[%s3060_s1 + $0x100] sm:$0xff]  ;;  %v122_v63 = vld [vmem:[%s3061_s0 + $0x10] sm:$0xff] }
  0x16   :  { %202 = vmatpush.msra.mxu1 %v1622_v38  ;;  %174 = vmatpush.msra.mxu0 %v1634_v40  ;;  %3157 = vst [vmem:[#allocation23_spill] sm:$0xff] %v1699_v51  ;;  %v120_v62 = vld [vmem:[%s3061_s0] sm:$0xff] }
  0x17   :  { %260 = vmatpush.msra.mxu3 %v1627_v39  ;;  %232 = vmatpush.msra.mxu2 %v1639_v41  ;;  %3158 = vst [vmem:[#allocation24_spill] sm:$0xff] %v1711_v53 }
  0x18   :  { %203 = vmatpush.msra.mxu1 %v1646_v42  ;;  %175 = vmatpush.msra.mxu0 %v1658_v44  ;;  %3159 = vst [vmem:[#allocation25_spill] sm:$0xff] %v1718_v54 }
  0x19   :  { %261 = vmatpush.msra.mxu3 %v1651_v43  ;;  %233 = vmatpush.msra.mxu2 %v1663_v45  ;;  %3160 = vst [vmem:[#allocation26_spill] sm:$0xff] %v1723_v55 }
  0x1a   :  { %204 = vmatpush.msra.mxu1 %v1670_v46  ;;  %176 = vmatpush.msra.mxu0 %v1682_v48  ;;  %3161 = vst [vmem:[#allocation27_spill] sm:$0xff] %v1735_v57 }
  0x1b   :  { %262 = vmatpush.msra.mxu3 %v1675_v47  ;;  %234 = vmatpush.msra.mxu2 %v1687_v49  ;;  %3162 = vst [vmem:[#allocation28_spill] sm:$0xff] %v1742_v58  ;;  %v121_v49 = vld [vmem:[%s3061_s0 + $0x8] sm:$0xff] }
  0x1c   :  { %205 = vmatpush.msra.mxu1 %v1694_v50  ;;  %177 = vmatpush.msra.mxu0 %v1706_v52  ;;  %3163 = vst [vmem:[#allocation29_spill] sm:$0xff] %v1747_v59 }
  0x1d   :  { %263 = vmatpush.msra.mxu3 %v1699_v51  ;;  %235 = vmatpush.msra.mxu2 %v1711_v53  ;;  %3164 = vst [vmem:[#allocation30_spill] sm:$0xff] %v1759_v61  ;;  %v1774_v53 = vld [vmem:[%s3060_s1 + $0x318] sm:$0xff] }
  0x1e   :  { %206 = vmatpush.msra.mxu1 %v1718_v54  ;;  %178 = vmatpush.msra.mxu0 %v1730_v56  ;;  %3165 = vst [vmem:[#allocation31_spill] sm:$0xff] %v1774_v53  ;;  %v1804_v54 = vld [vmem:[%s3060_s1 + $0x270] sm:$0xff] }
  0x1f   :  { %264 = vmatpush.msra.mxu3 %v1723_v55  ;;  %236 = vmatpush.msra.mxu2 %v1735_v57  ;;  %v1779_v57 = vld [vmem:[%s3060_s1 + $0x80] sm:$0xff] }
  0x20   :  { %207 = vmatpush.msra.mxu1 %v1742_v58  ;;  %3166 = vst [vmem:[#allocation32_spill] sm:$0xff] %v1779_v57  ;;  %179 = vmatpush.msra.mxu0 %v1754_v60  ;;  %v1786_v58 = vld [vmem:[%s3060_s1 + $0x180] sm:$0xff] }
  0x21   :  { %265 = vmatpush.msra.mxu3 %v1747_v59  ;;  %237 = vmatpush.msra.mxu2 %v1759_v61  ;;  %3167 = vst [vmem:[#allocation33_spill] sm:$0xff] %v1786_v58  ;;  %v1791_v59 = vld [vmem:[%s3060_s1 + $0x278] sm:$0xff] }
  0x22   :  { %180 = vmatmul.f32.vlgmr.msra.gmra.mxu0 %v120_v62  ;;  %238 = vmatmul.f32.vlgmr.msra.gmra.mxu2 %v122_v63  ;;  %v123_v61 = vld [vmem:[%s3061_s0 + $0x18] sm:$0xff]  ;;  %v1816_v63 = vld [vmem:[%s3060_s1 + $0x310] sm:$0xff] }
  0x23   :  { %350 = vmatpush.msrb.mxu2 %v1774_v53  ;;  %208 = vmatpush.msra.mxu1 %v1779_v57  ;;  %v1811_v62 = vld [vmem:[%s3060_s1 + $0x2f8] sm:$0xff]  ;;  %3169 = vst [vmem:[#allocation35_spill] sm:$0xff] %v1816_v63  ;;  %v1821_v53 = vld [vmem:[%s3060_s1 + $0x268] sm:$0xff]  ;;  %v1828_v57 = vld [vmem:[%s3060_s1 + $0x2f0] sm:$0xff] }
  0x24   :  { %266 = vmatpush.msra.mxu3 %v1786_v58  ;;  %280 = vmatpush.msrb.mxu0 %v1791_v59  ;;  %3168 = vst [vmem:[#allocation34_spill] sm:$0xff] %v1811_v62  ;;  %v1833_v58 = vld [vmem:[%s3060_s1 + $0x308] sm:$0xff] }
  0x25   :  { %209 = vmatmul.f32.vlgmr.msra.gmra.mxu1 %v121_v49  ;;  %267 = vmatmul.f32.vlgmr.msra.gmra.mxu3 %v123_v61  ;;  %3170 = vst [vmem:[#allocation36_spill] sm:$0xff] %v1828_v57  ;;  %v1839_v49 = vld [vmem:[%s3060_s1 + $0x260] sm:$0xff]  ;;  %v1847_v61 = vld [vmem:[%s3060_s1 + $0x2e8] sm:$0xff] }
  0x26   :  { %421 = vmatpush.msrb.mxu3 %v1398_v0  ;;  %281 = vmatpush.msrb.mxu0 %v1804_v54  ;;  %3171 = vst [vmem:[#allocation37_spill] sm:$0xff] %v1833_v58  ;;  %v129_v0 = vld [vmem:[%s3061_s0 + $0x48] sm:$0xff] }
  0x27   :  { %309 = vmatpush.msrb.mxu1 %v1811_v62  ;;  %351 = vmatpush.msrb.mxu2 %v1816_v63  ;;  %v127_v62 = vld [vmem:[%s3061_s0 + $0x38] sm:$0xff] }
  0x28   :  { %422 = vmatpush.msrb.mxu3 %v1408_v2  ;;  %282 = vmatpush.msrb.mxu0 %v1821_v53  ;;  %v1862_v63 = vld [vmem:[%s3060_s1 + $0x258] sm:$0xff]  ;;  %v1867_v2 = vld [vmem:[%s3060_s1 + $0x2e0] sm:$0xff] }
  0x29   :  { %310 = vmatpush.msrb.mxu1 %v1828_v57  ;;  %352 = vmatpush.msrb.mxu2 %v1833_v58  ;;  %3172 = vst [vmem:[#allocation38_spill] sm:$0xff] %v1867_v2  ;;  %v128_v58 = vld [vmem:[%s3061_s0 + $0x40] sm:$0xff]  ;;  %v1880_v57 = vld [vmem:[%s3060_s1 + $0x250] sm:$0xff] }
  0x2a   :  { %423 = vmatpush.msrb.mxu3 %v1432_v6  ;;  %283 = vmatpush.msrb.mxu0 %v1839_v49  ;;  %v130_v6 = vld [vmem:[%s3061_s0 + $0x50] sm:$0xff] }
  0x2b   :  { %311 = vmatpush.msrb.mxu1 %v1847_v61  ;;  %183 = vmatmul.f32.gmra.mxu0 %v127_v62  ;;  %v1887_v62 = vld [vmem:[%s3060_s1 + $0x2d8] sm:$0xff] }
  0x2c   :  { %241 = vmatmul.f32.gmra.mxu2 %v129_v0  ;;  %424 = vmatpush.msrb.mxu3 %v1461_v11  ;;  %3173 = vst [vmem:[#allocation39_spill] sm:$0xff] %v1887_v62  ;;  %v1892_v0 = vld [vmem:[%s3060_s1 + $0x300] sm:$0xff]  ;;  %v1897_v11 = vld [vmem:[%s3060_s1 + $0x248] sm:$0xff] }
  0x2d   :  { %284 = vmatpush.msrb.mxu0 %v1862_v63  ;;  %312 = vmatpush.msrb.mxu1 %v1867_v2  ;;  %3174 = vst [vmem:[#allocation40_spill] sm:$0xff] %v1892_v0  ;;  %v1904_v2 = vld [vmem:[%s3060_s1 + $0x2d0] sm:$0xff] }
  0x2e   :  { %212 = vmatmul.f32.gmra.mxu1 %v128_v58  ;;  %270 = vmatmul.f32.gmra.mxu3 %v130_v6  ;;  %3175 = vst [vmem:[#allocation41_spill] sm:$0xff] %v1904_v2  ;;  %v1910_v6 = vld [vmem:[%s3060_s1 + $0x240] sm:$0xff]  ;;  %v1918_v58 = vld [vmem:[%s3060_s1 + $0x2c8] sm:$0xff] }
  0x2f   :  { %425 = vmatpush.msrb.mxu3 %v1490_v16  ;;  %285 = vmatpush.msrb.mxu0 %v1880_v57  ;;  %v136_v16 = vld [vmem:[%s3061_s0 + $0x80] sm:$0xff] }
  0x30   :  { %313 = vmatpush.msrb.mxu1 %v1887_v62  ;;  %353 = vmatpush.msrb.mxu2 %v1892_v0  ;;  %v134_v62 = vld [vmem:[%s3061_s0 + $0x70] sm:$0xff]  ;;  %v1933_v0 = vld [vmem:[%s3060_s1 + $0x238] sm:$0xff] }
  0x31   :  { %426 = vmatpush.msrb.mxu3 %v1514_v20  ;;  %286 = vmatpush.msrb.mxu0 %v1897_v11  ;;  %v1938_v20 = vld [vmem:[%s3060_s1 + $0x2c0] sm:$0xff] }
  0x32   :  { %314 = vmatpush.msrb.mxu1 %v1904_v2  ;;  %508 = vmatpush.msra.mxu2 %v1425_v5  ;;  %3176 = vst [vmem:[#allocation42_spill] sm:$0xff] %v1938_v20  ;;  %v135_v5 = vld [vmem:[%s3061_s0 + $0x78] sm:$0xff]  ;;  %v1951_v2 = vld [vmem:[%s3060_s1 + $0x230] sm:$0xff] }
  0x33   :  { %427 = vmatpush.msrb.mxu3 %v1538_v24  ;;  %287 = vmatpush.msrb.mxu0 %v1910_v6  ;;  %v137_v24 = vld [vmem:[%s3061_s0 + $0x88] sm:$0xff] }
  0x34   :  { %315 = vmatpush.msrb.mxu1 %v1918_v58  ;;  %186 = vmatmul.f32.gmra.mxu0 %v134_v62  ;;  %v1958_v62 = vld [vmem:[%s3060_s1 + $0x2b8] sm:$0xff] }
  0x35   :  { %244 = vmatmul.f32.gmra.mxu2 %v136_v16  ;;  %428 = vmatpush.msrb.mxu3 %v1562_v28  ;;  %3177 = vst [vmem:[#allocation43_spill] sm:$0xff] %v1958_v62  ;;  %v1963_v16 = vld [vmem:[%s3060_s1 + $0x228] sm:$0xff] }
  0x36   :  { %288 = vmatpush.msrb.mxu0 %v1933_v0  ;;  %316 = vmatpush.msrb.mxu1 %v1938_v20  ;;  %v1970_v20 = vld [vmem:[%s3060_s1 + $0x2b0] sm:$0xff] }
  0x37   :  { %215 = vmatmul.f32.gmra.mxu1 %v135_v5  ;;  %273 = vmatmul.f32.gmra.mxu3 %v137_v24  ;;  %3178 = vst [vmem:[#allocation44_spill] sm:$0xff] %v1970_v20  ;;  %v1976_v5 = vld [vmem:[%s3060_s1 + $0x220] sm:$0xff]  ;;  %v1984_v24 = vld [vmem:[%s3060_s1 + $0x2a8] sm:$0xff] }
  0x38   :  { %429 = vmatpush.msrb.mxu3 %v1586_v32  ;;  %289 = vmatpush.msrb.mxu0 %v1951_v2  ;;  %v143_v32 = vld [vmem:[%s3061_s0 + $0xb8] sm:$0xff] }
  0x39   :  { %317 = vmatpush.msrb.mxu1 %v1958_v62  ;;  %509 = vmatpush.msra.mxu2 %v1449_v9  ;;  %v141_v62 = vld [vmem:[%s3061_s0 + $0xa8] sm:$0xff]  ;;  %v1999_v9 = vld [vmem:[%s3060_s1 + $0x218] sm:$0xff] }
  0x3a   :  { %430 = vmatpush.msrb.mxu3 %v1610_v36  ;;  %290 = vmatpush.msrb.mxu0 %v1963_v16  ;;  %3179 = vst [vmem:[#allocation45_spill] sm:$0xff] %v1999_v9  ;;  %v2004_v36 = vld [vmem:[%s3060_s1 + $0x2a0] sm:$0xff] }
  0x3b   :  { %318 = vmatpush.msrb.mxu1 %v1970_v20  ;;  %510 = vmatpush.msra.mxu2 %v1471_v13  ;;  %3180 = vst [vmem:[#allocation46_spill] sm:$0xff] %v2004_v36  ;;  %v142_v13 = vld [vmem:[%s3061_s0 + $0xb0] sm:$0xff] }
  0x3c   :  { %431 = vmatpush.msrb.mxu3 %v1634_v40  ;;  %291 = vmatpush.msrb.mxu0 %v1976_v5  ;;  %v144_v40 = vld [vmem:[%s3061_s0 + $0xc0] sm:$0xff]  ;;  %v2017_v20 = vld [vmem:[%s3060_s1 + $0x210] sm:$0xff] }
  0x3d   :  { %319 = vmatpush.msrb.mxu1 %v1984_v24  ;;  %189 = vmatmul.f32.gmra.mxu0 %v141_v62  ;;  %3181 = vst [vmem:[#allocation47_spill] sm:$0xff] %v2017_v20  ;;  %v2024_v62 = vld [vmem:[%s3060_s1 + $0x298] sm:$0xff] }
  0x3e   :  { %247 = vmatmul.f32.gmra.mxu2 %v143_v32  ;;  %432 = vmatpush.msrb.mxu3 %v1658_v44  ;;  %3182 = vst [vmem:[#allocation48_spill] sm:$0xff] %v2024_v62  ;;  %v2029_v32 = vld [vmem:[%s3060_s1 + $0x208] sm:$0xff] }
  0x3f   :  { %292 = vmatpush.msrb.mxu0 %v1999_v9  ;;  %320 = vmatpush.msrb.mxu1 %v2004_v36  ;;  %3183 = vst [vmem:[#allocation49_spill] sm:$0xff] %v2029_v32  ;;  %v2036_v36 = vld [vmem:[%s3060_s1 + $0x290] sm:$0xff] }
  0x40   :  { %218 = vmatmul.f32.gmra.mxu1 %v142_v13  ;;  %276 = vmatmul.f32.gmra.mxu3 %v144_v40  ;;  %3184 = vst [vmem:[#allocation50_spill] sm:$0xff] %v2036_v36  ;;  %v2042_v13 = vld [vmem:[%s3060_s1 + $0x200] sm:$0xff]  ;;  %v2050_v40 = vld [vmem:[%s3060_s1 + $0x288] sm:$0xff] }
  0x41   :  { %433 = vmatpush.msrb.mxu3 %v1682_v48  ;;  %293 = vmatpush.msrb.mxu0 %v2017_v20  ;;  %v126_v48 = vld [vmem:[%s3061_s0 + $0x30] sm:$0xff] }
  0x42   :  { %321 = vmatpush.msrb.mxu1 %v2024_v62  ;;  %511 = vmatpush.msra.mxu2 %v1483_v15  ;;  %v124_v62 = vld [vmem:[%s3061_s0 + $0x20] sm:$0xff] }
  0x43   :  { %434 = vmatpush.msrb.mxu3 %v1706_v52  ;;  %294 = vmatpush.msrb.mxu0 %v2029_v32  ;;  %v2065_v15 = vld [vmem:[%s3060_s1 + $0x280] sm:$0xff] }
  0x44   :  { %322 = vmatpush.msrb.mxu1 %v2036_v36  ;;  %512 = vmatpush.msra.mxu2 %v1507_v19  ;;  %v125_v36 = vld [vmem:[%s3061_s0 + $0x28] sm:$0xff]  ;;  %v1173_v19 = vld [vmem:[%s3061_s0 + $0xe0] sm:$0xff] }
  0x45   :  { %435 = vmatpush.msrb.mxu3 %v1730_v56  ;;  %295 = vmatpush.msrb.mxu0 %v2042_v13 }
  0x46   :  { %323 = vmatpush.msrb.mxu1 %v2050_v40  ;;  %296 = vmatmul.f32.vlgmr.msrb.gmra.mxu0 %v124_v62  ;;  %v1180_v62 = vld [vmem:[%s3061_s0 + $0x118] sm:$0xff] }
  0x47   :  { %1169 = vmatmul.msk.f32.vlgmr.msrb.gmra.mxu2 %vm151_vm0, %v126_v48  ;;  %436 = vmatpush.msrb.mxu3 %v1754_v60  ;;  %v131_v48 = vld [vmem:[%s3061_s0 + $0x58] sm:$0xff] }
  0x48   :  { %324 = vmatpush.msrb.mxu1 %v2065_v15  ;;  %450 = vmatpush.msra.mxu0 %v1415_v3 }
  0x49   :  { %325 = vmatmul.f32.vlgmr.msrb.gmra.mxu1 %v125_v36  ;;  %437 = vmatmul.f32.vlgmr.msrb.gmra.mxu3 %v1173_v19  ;;  %v133_v19 = vld [vmem:[%s3061_s0 + $0x68] sm:$0xff]  ;;  %v132_v36 = vld [vmem:[%s3061_s0 + $0x60] sm:$0xff] }
  0x4a   :  { %537 = vmatpush.msra.mxu3 %v1791_v59  ;;  %451 = vmatpush.msra.mxu0 %v1437_v7 }
  0x4b   :  { %479 = vmatpush.msra.mxu1 %v1403_v1  ;;  %513 = vmatpush.msra.mxu2 %v1531_v23 }
  0x4c   :  { %538 = vmatpush.msra.mxu3 %v1804_v54  ;;  %452 = vmatpush.msra.mxu0 %v1454_v10 }
  0x4d   :  { %480 = vmatpush.msra.mxu1 %v1420_v4  ;;  %514 = vmatpush.msra.mxu2 %v1555_v27 }
  0x4e   :  { %539 = vmatpush.msra.mxu3 %v1821_v53  ;;  %453 = vmatpush.msra.mxu0 %v1478_v14 }
  0x4f   :  { %481 = vmatpush.msra.mxu1 %v1442_v8  ;;  %299 = vmatmul.f32.gmra.mxu0 %v131_v48  ;;  %v138_v48 = vld [vmem:[%s3061_s0 + $0x90] sm:$0xff] }
  0x50   :  { %1170 = vmatmul.msk.f32.gmra.mxu2 %vm151_vm0, %v133_v19  ;;  %540 = vmatpush.msra.mxu3 %v1839_v49  ;;  %v140_v19 = vld [vmem:[%s3061_s0 + $0xa0] sm:$0xff] }
  0x51   :  { %454 = vmatpush.msra.mxu0 %v1502_v18  ;;  %482 = vmatpush.msra.mxu1 %v1466_v12 }
  0x52   :  { %328 = vmatmul.f32.gmra.mxu1 %v132_v36  ;;  %440 = vmatmul.f32.gmra.mxu3 %v1180_v62  ;;  %v139_v36 = vld [vmem:[%s3061_s0 + $0x98] sm:$0xff]  ;;  %v1187_v62 = vld [vmem:[%s3061_s0 + $0x150] sm:$0xff] }
  0x53   :  { %541 = vmatpush.msra.mxu3 %v1862_v63  ;;  %455 = vmatpush.msra.mxu0 %v1526_v22 }
  0x54   :  { %483 = vmatpush.msra.mxu1 %v1495_v17  ;;  %515 = vmatpush.msra.mxu2 %v1579_v31 }
  0x55   :  { %542 = vmatpush.msra.mxu3 %v1880_v57  ;;  %456 = vmatpush.msra.mxu0 %v1550_v26 }
  0x56   :  { %484 = vmatpush.msra.mxu1 %v1519_v21  ;;  %516 = vmatpush.msra.mxu2 %v1603_v35 }
  0x57   :  { %543 = vmatpush.msra.mxu3 %v1897_v11  ;;  %457 = vmatpush.msra.mxu0 %v1574_v30 }
  0x58   :  { %485 = vmatpush.msra.mxu1 %v1543_v25  ;;  %302 = vmatmul.f32.gmra.mxu0 %v138_v48  ;;  %v145_v48 = vld [vmem:[%s3061_s0 + $0xc8] sm:$0xff] }
  0x59   :  { %1171 = vmatmul.msk.f32.gmra.mxu2 %vm151_vm0, %v140_v19  ;;  %544 = vmatpush.msra.mxu3 %v1910_v6  ;;  %v147_v19 = vld [vmem:[%s3061_s0 + $0xd8] sm:$0xff] }
  0x5a   :  { %458 = vmatpush.msra.mxu0 %v1598_v34  ;;  %486 = vmatpush.msra.mxu1 %v1567_v29 }
  0x5b   :  { %331 = vmatmul.f32.gmra.mxu1 %v139_v36  ;;  %443 = vmatmul.f32.gmra.mxu3 %v1187_v62  ;;  %v146_v36 = vld [vmem:[%s3061_s0 + $0xd0] sm:$0xff]  ;;  %v1194_v62 = vld [vmem:[%s3061_s0 + $0x188] sm:$0xff] }
  0x5c   :  { %517 = vmatpush.msra.mxu2 %v1627_v39  ;;  %545 = vmatpush.msra.mxu3 %v1933_v0 }
  0x5d   :  { %459 = vmatpush.msra.mxu0 %v1622_v38  ;;  %487 = vmatpush.msra.mxu1 %v1591_v33 }
  0x5e   :  { %518 = vmatpush.msra.mxu2 %v1651_v43  ;;  %546 = vmatpush.msra.mxu3 %v1951_v2  ;;  %v3189_v43 = vld [vmem:[#allocation24_spill] sm:$0xff] }
  0x5f   :  { %460 = vmatpush.msra.mxu0 %v1646_v42  ;;  %488 = vmatpush.msra.mxu1 %v1615_v37 }
  0x60   :  { %519 = vmatpush.msra.mxu2 %v1675_v47  ;;  %547 = vmatpush.msra.mxu3 %v1963_v16  ;;  %v3187_v47 = vld [vmem:[#allocation29_spill] sm:$0xff] }
  0x61   :  { %461 = vmatpush.msra.mxu0 %v1670_v46  ;;  %489 = vmatpush.msra.mxu1 %v1639_v41 }
  0x62   :  { %305 = vmatmul.f32.gmra.mxu0 %v145_v48  ;;  %1172 = vmatmul.msk.f32.gmra.mxu2 %vm151_vm0, %v147_v19  ;;  %v3185_v48 = vld [vmem:[#allocation25_spill] sm:$0xff]  ;;  %v3186_v19 = vld [vmem:[#allocation22_spill] sm:$0xff] }
  0x63   :  { %520 = vmatpush.msra.mxu2 %v1699_v51  ;;  %548 = vmatpush.msra.mxu3 %v1976_v5  ;;  %v3188_v51 = vld [vmem:[#allocation28_spill] sm:$0xff] }
  0x64   :  { %462 = vmatpush.msra.mxu0 %v1694_v50  ;;  %490 = vmatpush.msra.mxu1 %v1663_v45  ;;  %v3199_v45 = vld [vmem:[#allocation6_spill] sm:$0xff] }
  0x65   :  { %334 = vmatmul.f32.gmra.mxu1 %v146_v36  ;;  %446 = vmatmul.f32.gmra.mxu3 %v1194_v62  ;;  %v1174_v36 = vld [vmem:[%s3061_s0 + $0xe8] sm:$0xff]  ;;  %v1176_v62 = vld [vmem:[%s3061_s0 + $0xf8] sm:$0xff] }
  0x66   :  { %521 = vmatpush.msra.mxu2 %v1723_v55  ;;  %549 = vmatpush.msra.mxu3 %v1999_v9  ;;  %v3190_v55 = vld [vmem:[#allocation33_spill] sm:$0xff]  ;;  %v3193_v9 = vld [vmem:[#allocation3_spill] sm:$0xff] }
  0x67   :  { %463 = vmatpush.msra.mxu0 %v3185_v48  ;;  %491 = vmatpush.msra.mxu1 %v3186_v19  ;;  %v3191_v19 = vld [vmem:[#allocation32_spill] sm:$0xff] }
  0x68   :  { %522 = vmatpush.msra.mxu2 %v3187_v47  ;;  %550 = vmatpush.msra.mxu3 %v2017_v20  ;;  %v3192_v47 = vld [vmem:[#allocation27_spill] sm:$0xff] }
  0x69   :  { %464 = vmatpush.msra.mxu0 %v3188_v51  ;;  %492 = vmatpush.msra.mxu1 %v3189_v43  ;;  %v1175_v43 = vld [vmem:[%s3061_s0 + $0xf0] sm:$0xff]  ;;  %v1177_v20 = vld [vmem:[%s3061_s0 + $0x100] sm:$0xff] }
  0x6a   :  { %523 = vmatpush.msra.mxu2 %v3190_v55  ;;  %551 = vmatpush.msra.mxu3 %v2029_v32  ;;  %v3194_v55 = vld [vmem:[#allocation30_spill] sm:$0xff] }
  0x6b   :  { %465 = vmatpush.msra.mxu0 %v3191_v19  ;;  %493 = vmatpush.msra.mxu1 %v3192_v47  ;;  %v3195_v32 = vld [vmem:[#allocation34_spill] sm:$0xff]  ;;  %v3198_v47 = vld [vmem:[#allocation31_spill] sm:$0xff] }
  0x6c   :  { %466 = vmatmul.f32.vlgmr.msra.gmra.mxu0 %v1174_v36  ;;  %524 = vmatmul.f32.vlgmr.msra.gmra.mxu2 %v1176_v62  ;;  %v3196_v36 = vld [vmem:[#allocation4_spill] sm:$0xff] }
  0x6d   :  { %552 = vmatpush.msra.mxu3 %v2042_v13  ;;  %681 = vmatpush.msrb.mxu2 %v3193_v9  ;;  %v3197_v62 = vld [vmem:[#allocation36_spill] sm:$0xff]  ;;  %v1183_v9 = vld [vmem:[%s3061_s0 + $0x130] sm:$0xff] }
  0x6e   :  { %494 = vmatpush.msra.mxu1 %v3194_v55  ;;  %566 = vmatpush.msrb.mxu0 %v3195_v32  ;;  %v3208_v55 = vld [vmem:[#allocation14_spill] sm:$0xff] }
  0x6f   :  { %495 = vmatmul.f32.vlgmr.msra.gmra.mxu1 %v1175_v43  ;;  %553 = vmatmul.f32.vlgmr.msra.gmra.mxu3 %v1177_v20  ;;  %v1181_v20 = vld [vmem:[%s3061_s0 + $0x120] sm:$0xff] }
  0x70   :  { %682 = vmatpush.msrb.mxu2 %v3196_v36  ;;  %710 = vmatpush.msrb.mxu3 %v1415_v3  ;;  %v3200_v43 = vld [vmem:[#allocation35_spill] sm:$0xff]  ;;  %v3201_v3 = vld [vmem:[#allocation8_spill] sm:$0xff]  ;;  %v3202_v36 = vld [vmem:[#allocation38_spill] sm:$0xff] }
  0x71   :  { %567 = vmatpush.msrb.mxu0 %v3197_v62  ;;  %607 = vmatpush.msrb.mxu1 %v3198_v47  ;;  %v3203_v47 = vld [vmem:[#allocation11_spill] sm:$0xff] }
  0x72   :  { %683 = vmatpush.msrb.mxu2 %v3199_v45  ;;  %711 = vmatpush.msrb.mxu3 %v1437_v7  ;;  %v1182_v7 = vld [vmem:[%s3061_s0 + $0x128] sm:$0xff]  ;;  %v1184_v45 = vld [vmem:[%s3061_s0 + $0x138] sm:$0xff] }
  0x73   :  { %568 = vmatpush.msrb.mxu0 %v1847_v61  ;;  %608 = vmatpush.msrb.mxu1 %v3200_v43  ;;  %v3204_v43 = vld [vmem:[#allocation39_spill] sm:$0xff] }
  0x74   :  { %684 = vmatpush.msrb.mxu2 %v3201_v3  ;;  %712 = vmatpush.msrb.mxu3 %v1454_v10  ;;  %v3205_v10 = vld [vmem:[#allocation13_spill] sm:$0xff] }
  0x75   :  { %569 = vmatpush.msrb.mxu0 %v3202_v36  ;;  %527 = vmatmul.f32.gmra.mxu2 %v1183_v9  ;;  %v3206_v9 = vld [vmem:[#allocation41_spill] sm:$0xff] }
  0x76   :  { %469 = vmatmul.f32.gmra.mxu0 %v1181_v20  ;;  %685 = vmatpush.msrb.mxu2 %v3203_v47  ;;  %v3207_v3 = vld [vmem:[#allocation37_spill] sm:$0xff]  ;;  %v1188_v47 = vld [vmem:[%s3061_s0 + $0x158] sm:$0xff]  ;;  %v3209_v20 = vld [vmem:[#allocation40_spill] sm:$0xff] }
  0x77   :  { %713 = vmatpush.msrb.mxu3 %v1478_v14  ;;  %570 = vmatpush.msrb.mxu0 %v3204_v43  ;;  %v1190_v14 = vld [vmem:[%s3061_s0 + $0x168] sm:$0xff] }
  0x78   :  { %498 = vmatmul.f32.gmra.mxu1 %v1182_v7  ;;  %556 = vmatmul.f32.gmra.mxu3 %v1184_v45  ;;  %v3211_v7 = vld [vmem:[#allocation15_spill] sm:$0xff] }
  0x79   :  { %686 = vmatpush.msrb.mxu2 %v3205_v10  ;;  %714 = vmatpush.msrb.mxu3 %v1502_v18  ;;  %v3210_v18 = vld [vmem:[#allocation42_spill] sm:$0xff]  ;;  %v3212_v45 = vld [vmem:[#allocation43_spill] sm:$0xff]  ;;  %v3215_v10 = vld [vmem:[#allocation5_spill] sm:$0xff] }
  0x7a   :  { %571 = vmatpush.msrb.mxu0 %v3206_v9  ;;  %609 = vmatpush.msrb.mxu1 %v3207_v3 }
  0x7b   :  { %687 = vmatpush.msrb.mxu2 %v3208_v55  ;;  %715 = vmatpush.msrb.mxu3 %v1526_v22  ;;  %v1189_v22 = vld [vmem:[%s3061_s0 + $0x160] sm:$0xff]  ;;  %v1191_v55 = vld [vmem:[%s3061_s0 + $0x170] sm:$0xff] }
  0x7c   :  { %572 = vmatpush.msrb.mxu0 %v1918_v58  ;;  %610 = vmatpush.msrb.mxu1 %v3209_v20 }
  0x7d   :  { %688 = vmatpush.msrb.mxu2 %v1562_v28  ;;  %716 = vmatpush.msrb.mxu3 %v1550_v26  ;;  %v3213_v26 = vld [vmem:[#allocation16_spill] sm:$0xff] }
  0x7e   :  { %573 = vmatpush.msrb.mxu0 %v3210_v18  ;;  %530 = vmatmul.f32.gmra.mxu2 %v1190_v14  ;;  %v3214_v28 = vld [vmem:[#allocation44_spill] sm:$0xff]  ;;  %v3216_v14 = vld [vmem:[#allocation17_spill] sm:$0xff] }
  0x7f   :  { %472 = vmatmul.f32.gmra.mxu0 %v1188_v47  ;;  %689 = vmatpush.msrb.mxu2 %v3211_v7  ;;  %v1195_v47 = vld [vmem:[%s3061_s0 + $0x190] sm:$0xff] }
  0x80   :  { %717 = vmatpush.msrb.mxu3 %v1574_v30  ;;  %574 = vmatpush.msrb.mxu0 %v3212_v45  ;;  %v1197_v30 = vld [vmem:[%s3061_s0 + $0x1a0] sm:$0xff]  ;;  %v3219_v7 = vld [vmem:[#allocation21_spill] sm:$0xff] }
  0x81   :  { %501 = vmatmul.f32.gmra.mxu1 %v1189_v22  ;;  %559 = vmatmul.f32.gmra.mxu3 %v1191_v55  ;;  %v3217_v22 = vld [vmem:[#allocation7_spill] sm:$0xff]  ;;  %v1198_v55 = vld [vmem:[%s3061_s0 + $0x1a8] sm:$0xff] }
  0x82   :  { %690 = vmatpush.msrb.mxu2 %v3213_v26  ;;  %718 = vmatpush.msrb.mxu3 %v1598_v34  ;;  %v3218_v34 = vld [vmem:[#allocation46_spill] sm:$0xff]  ;;  %v3220_v26 = vld [vmem:[#allocation48_spill] sm:$0xff] }
  0x83   :  { %575 = vmatpush.msrb.mxu0 %v3214_v28  ;;  %768 = vmatpush.msra.mxu1 %v3215_v10  ;;  %v3223_v10 = vld [vmem:[#allocation10_spill] sm:$0xff] }
  0x84   :  { %691 = vmatpush.msrb.mxu2 %v3216_v14  ;;  %719 = vmatpush.msrb.mxu3 %v1622_v38  ;;  %v1196_v38 = vld [vmem:[%s3061_s0 + $0x198] sm:$0xff]  ;;  %v3239_v14 = vld [vmem:[#allocation31_spill] sm:$0xff] }
  0x85   :  { %576 = vmatpush.msrb.mxu0 %v1984_v24  ;;  %769 = vmatpush.msra.mxu1 %v3217_v22 }
  0x86   :  { %692 = vmatpush.msrb.mxu2 %v1658_v44  ;;  %720 = vmatpush.msrb.mxu3 %v1646_v42  ;;  %v3221_v42 = vld [vmem:[#allocation50_spill] sm:$0xff]  ;;  %v3222_v44 = vld [vmem:[#allocation9_spill] sm:$0xff] }
  0x87   :  { %577 = vmatpush.msrb.mxu0 %v3218_v34  ;;  %533 = vmatmul.f32.gmra.mxu2 %v1197_v30 }
  0x88   :  { %475 = vmatmul.f32.gmra.mxu0 %v1195_v47  ;;  %693 = vmatpush.msrb.mxu2 %v3219_v7  ;;  %v1271_v47 = vld [vmem:[%s3060_s1 + $0xf0] sm:$0xff]  ;;  %v1274_v7 = vld [vmem:[%s3060_s1 + $0xe8] sm:$0xff] }
  0x89   :  { %721 = vmatpush.msrb.mxu3 %v1670_v46  ;;  %578 = vmatpush.msrb.mxu0 %v3220_v26  ;;  %v1205_v46 = vld [vmem:[%s3061_s0 + $0x1c0] sm:$0xff] }
  0x8a   :  { %504 = vmatmul.f32.gmra.mxu1 %v1196_v38  ;;  %562 = vmatmul.f32.gmra.mxu3 %v1198_v55  ;;  %v1273_v38 = vld [vmem:[%s3060_s1 + $0x78] sm:$0xff]  ;;  %v3240_v55 = vld [vmem:[#allocation35_spill] sm:$0xff] }
  0x8b   :  { %694 = vmatpush.msrb.mxu2 %v1706_v52  ;;  %722 = vmatpush.msrb.mxu3 %v1694_v50  ;;  %v1178_v52 = vld [vmem:[%s3061_s0 + $0x108] sm:$0xff]  ;;  %v1179_v50 = vld [vmem:[%s3061_s0 + $0x110] sm:$0xff] }
  0x8c   :  { %579 = vmatpush.msrb.mxu0 %v3221_v42  ;;  %770 = vmatpush.msra.mxu1 %v3222_v44  ;;  %v1276_v44 = vld [vmem:[%s3060_s1 + $0x70] sm:$0xff] }
  0x8d   :  { %695 = vmatpush.msrb.mxu2 %v1730_v56  ;;  %723 = vmatpush.msrb.mxu3 %v3185_v48  ;;  %v1206_v56 = vld [vmem:[%s3061_s0 + $0x1c8] sm:$0xff]  ;;  %v1207_v48 = vld [vmem:[%s3061_s0 + $0x1d0] sm:$0xff] }
  0x8e   :  { %580 = vmatpush.msrb.mxu0 %v2050_v40  ;;  %771 = vmatpush.msra.mxu1 %v3223_v10 }
  0x8f   :  { %696 = vmatpush.msrb.mxu2 %v1754_v60  ;;  %724 = vmatpush.msrb.mxu3 %v3188_v51  ;;  %v3224_v51 = vld [vmem:[#allocation12_spill] sm:$0xff] }
  0x90   :  { %581 = vmatpush.msrb.mxu0 %v2065_v15  ;;  %697 = vmatmul.f32.vlgmr.msrb.gmra.mxu2 %v1205_v46  ;;  %v3229_v60 = vld [vmem:[#allocation20_spill] sm:$0xff]  ;;  %v1216_v46 = vld [vmem:[%s3061_s0 + $0x218] sm:$0xff] }
  0x91   :  { %582 = vmatmul.f32.vlgmr.msrb.gmra.mxu0 %v1178_v52  ;;  %725 = vmatpush.msrb.mxu3 %v3191_v19  ;;  %v1209_v19 = vld [vmem:[%s3061_s0 + $0x1e0] sm:$0xff] }
  0x92   :  { %797 = vmatpush.msra.mxu2 %v1791_v59  ;;  %739 = vmatpush.msra.mxu0 %v1403_v1  ;;  %v1212_v59 = vld [vmem:[%s3061_s0 + $0x1f8] sm:$0xff]  ;;  %v1185_v1 = vld [vmem:[%s3061_s0 + $0x140] sm:$0xff] }
  0x93   :  { %1201 = vmatmul.msk.f32.vlgmr.msrb.gmra.mxu1 %vm151_vm0, %v1179_v50  ;;  %726 = vmatmul.f32.vlgmr.msrb.gmra.mxu3 %v1206_v56  ;;  %v1277_v50 = vld [vmem:[%s3060_s1 + $0xe0] sm:$0xff]  ;;  %v1278_v56 = vld [vmem:[%s3060_s1 + $0x168] sm:$0xff] }
  0x94   :  { %798 = vmatpush.msra.mxu2 %v1804_v54  ;;  %826 = vmatpush.msra.mxu3 %v3195_v32  ;;  %v3227_v54 = vld [vmem:[#allocation45_spill] sm:$0xff]  ;;  %v3235_v32 = vld [vmem:[#allocation26_spill] sm:$0xff] }
  0x95   :  { %740 = vmatpush.msra.mxu0 %v1420_v4  ;;  %772 = vmatpush.msra.mxu1 %v3224_v51  ;;  %v1186_v4 = vld [vmem:[%s3061_s0 + $0x148] sm:$0xff] }
  0x96   :  { %799 = vmatpush.msra.mxu2 %v1821_v53  ;;  %827 = vmatpush.msra.mxu3 %v3197_v62 }
  0x97   :  { %741 = vmatpush.msra.mxu0 %v1442_v8  ;;  %773 = vmatpush.msra.mxu1 %v1531_v23  ;;  %v1213_v8 = vld [vmem:[%s3061_s0 + $0x200] sm:$0xff]  ;;  %v1192_v23 = vld [vmem:[%s3061_s0 + $0x178] sm:$0xff] }
  0x98   :  { %800 = vmatpush.msra.mxu2 %v1839_v49  ;;  %828 = vmatpush.msra.mxu3 %v1847_v61  ;;  %v3230_v49 = vld [vmem:[#allocation47_spill] sm:$0xff]  ;;  %v3231_v61 = vld [vmem:[#allocation24_spill] sm:$0xff] }
  0x99   :  { %742 = vmatpush.msra.mxu0 %v1466_v12  ;;  %700 = vmatmul.f32.gmra.mxu2 %v1212_v59  ;;  %v1219_v12 = vld [vmem:[%s3061_s0 + $0x230] sm:$0xff] }
  0x9a   :  { %585 = vmatmul.f32.gmra.mxu0 %v1185_v1  ;;  %801 = vmatpush.msra.mxu2 %v1862_v63  ;;  %v1215_v59 = vld [vmem:[%s3061_s0 + $0x210] sm:$0xff]  ;;  %v1217_v1 = vld [vmem:[%s3061_s0 + $0x220] sm:$0xff] }
  0x9b   :  { %829 = vmatpush.msra.mxu3 %v3202_v36  ;;  %743 = vmatpush.msra.mxu0 %v1495_v17  ;;  %v3237_v36 = vld [vmem:[#allocation29_spill] sm:$0xff] }
  0x9c   :  { %1202 = vmatmul.msk.f32.gmra.mxu1 %vm151_vm0, %v1186_v4  ;;  %729 = vmatmul.f32.gmra.mxu3 %v1213_v8  ;;  %v1280_v4 = vld [vmem:[%s3060_s1 + $0x160] sm:$0xff]  ;;  %v1281_v8 = vld [vmem:[%s3060_s1 + $0xd8] sm:$0xff] }
  0x9d   :  { %802 = vmatpush.msra.mxu2 %v1880_v57  ;;  %830 = vmatpush.msra.mxu3 %v3204_v43  ;;  %v3228_v57 = vld [vmem:[#allocation22_spill] sm:$0xff] }
  0x9e   :  { %744 = vmatpush.msra.mxu0 %v1519_v21  ;;  %774 = vmatpush.msra.mxu1 %v1555_v27  ;;  %v1220_v21 = vld [vmem:[%s3061_s0 + $0x238] sm:$0xff] }
  0x9f   :  { %803 = vmatpush.msra.mxu2 %v1897_v11  ;;  %831 = vmatpush.msra.mxu3 %v3206_v9  ;;  %v2330_v17 = vpop.f32.mrf.mxu0  ;;  %v1193_v11 = vld [vmem:[%s3061_s0 + $0x180] sm:$0xff]  ;;  %v3236_v43 = vld [vmem:[#allocation30_spill] sm:$0xff]  ;;  %v1210_v9 = vld [vmem:[%s3061_s0 + $0x1e8] sm:$0xff] }
  0xa0   :  { %745 = vmatpush.msra.mxu0 %v1543_v25  ;;  %775 = vmatpush.msra.mxu1 %v1579_v31 }
  0xa1   :  { %804 = vmatpush.msra.mxu2 %v1910_v6  ;;  %832 = vmatpush.msra.mxu3 %v1918_v58 }
  0xa2   :  { %746 = vmatpush.msra.mxu0 %v1567_v29  ;;  %703 = vmatmul.f32.gmra.mxu2 %v1219_v12  ;;  %v2346_v25 = vpop.f32.mrf.mxu1  ;;  %v1282_v12 = vld [vmem:[%s3060_s1 + $0x60] sm:$0xff] }
  0xa3   :  { %588 = vmatmul.f32.gmra.mxu0 %v1192_v23  ;;  %805 = vmatpush.msra.mxu2 %v1933_v0  ;;  %v3232_v0 = vld [vmem:[#allocation23_spill] sm:$0xff] }
  0xa4   :  { %833 = vmatpush.msra.mxu3 %v3210_v18  ;;  %747 = vmatpush.msra.mxu0 %v1591_v33  ;;  %v1226_v33 = vld [vmem:[%s3061_s0 + $0x268] sm:$0xff] }
  0xa5   :  { %1203 = vmatmul.msk.f32.gmra.mxu1 %vm151_vm0, %v1193_v11  ;;  %732 = vmatmul.f32.gmra.mxu3 %v1220_v21  ;;  %v2352_v27 = vpop.f32.mrf.mxu2  ;;  %v1283_v21 = vld [vmem:[%s3060_s1 + $0xd0] sm:$0xff] }
  0xa6   :  { %806 = vmatpush.msra.mxu2 %v1951_v2  ;;  %834 = vmatpush.msra.mxu3 %v3212_v45  ;;  %v1199_v2 = vld [vmem:[%s3061_s0 + $0x1b0] sm:$0xff] }
  0xa7   :  { %748 = vmatpush.msra.mxu0 %v1615_v37  ;;  %776 = vmatpush.msra.mxu1 %v1603_v35  ;;  %v3225_v35 = vld [vmem:[#allocation19_spill] sm:$0xff]  ;;  %v3226_v37 = vld [vmem:[#allocation18_spill] sm:$0xff]  ;;  %v3238_v45 = vld [vmem:[#allocation33_spill] sm:$0xff] }
  0xa8   :  { %807 = vmatpush.msra.mxu2 %v1963_v16  ;;  %835 = vmatpush.msra.mxu3 %v3214_v28  ;;  %v2360_v29 = vpop.f32.mrf.mxu0  ;;  %v2362_v31 = vpop.f32.mrf.mxu3  ;;  %v3233_v16 = vld [vmem:[#allocation49_spill] sm:$0xff] }
  0xa9   :  { %749 = vmatpush.msra.mxu0 %v1639_v41  ;;  %777 = vmatpush.msra.mxu1 %v1627_v39  ;;  %v1200_v39 = vld [vmem:[%s3061_s0 + $0x1b8] sm:$0xff]  ;;  %v1227_v41 = vld [vmem:[%s3061_s0 + $0x270] sm:$0xff] }
  0xaa   :  { %808 = vmatpush.msra.mxu2 %v1976_v5  ;;  %836 = vmatpush.msra.mxu3 %v1984_v24  ;;  %v2404_v5 = vld [vmem:[%s3062_s2] ss:$0 sm:$0xff] }
  0xab   :  { %750 = vmatpush.msra.mxu0 %v3225_v35  ;;  %778 = vmatpush.msra.mxu1 %v3226_v37  ;;  %v2376_v53 = vpop.f32.mrf.mxu1  ;;  %v3234_v24 = vld [vmem:[#allocation27_spill] sm:$0xff]  ;;  %v182_v18 = vadd.f32 %v2404_v5, %v2330_v17  ;;  %v185_v51 = vadd.f32 %v2404_v5, %v2360_v29  ;;  %v1287_v35 = vld [vmem:[%s3060_s1 + $0x150] sm:$0xff] }
  0xac   :  { %591 = vmatmul.f32.gmra.mxu0 %v1199_v2  ;;  %706 = vmatmul.f32.gmra.mxu2 %v1226_v33  ;;  %v1286_v33 = vld [vmem:[%s3060_s1 + $0xc8] sm:$0xff]  ;;  %v1221_v37 = vld [vmem:[%s3061_s0 + $0x240] sm:$0xff] }
  0xad   :  { %809 = vmatpush.msra.mxu2 %v3227_v54  ;;  %837 = vmatpush.msra.mxu3 %v3218_v34  ;;  %v211_v30 = vadd.f32 %v2346_v25, %v182_v18  ;;  %v214_v11 = vadd.f32 %v2376_v53, %v185_v51  ;;  %v1284_v25 = vld [vmem:[%s3060_s1 + $0x158] sm:$0xff]  ;;  %v1288_v53 = vld [vmem:[%s3060_s1 + $0x50] sm:$0xff]  ;;  %v1307_v51 = vld [vmem:[%s3060_s1 + $0x120] sm:$0xff] }
  0xae   :  { %751 = vmatpush.msra.mxu0 %v3228_v57  ;;  %779 = vmatpush.msra.mxu1 %v3229_v60  ;;  %v1290_v57 = vld [vmem:[%s3060_s1 + $0xc0] sm:$0xff]  ;;  %v1291_v60 = vld [vmem:[%s3060_s1 + $0x148] sm:$0xff]  ;;  %v1297_v18 = vld [vmem:[%s3060_s1 + $0x138] sm:$0xff] }
  0xaf   :  { %1204 = vmatmul.msk.f32.gmra.mxu1 %vm151_vm0, %v1200_v39  ;;  %735 = vmatmul.f32.gmra.mxu3 %v1227_v41  ;;  %v2389_v63 = vpop.f32.mrf.mxu2  ;;  %v240_v10 = vadd.f32 %v2352_v27, %v211_v30  ;;  %v1289_v41 = vld [vmem:[%s3060_s1 + $0x1f8] sm:$0xff]  ;;  %v1301_v30 = vld [vmem:[%s3060_s1 + $0x130] sm:$0xff] }
  0xb0   :  { %810 = vmatpush.msra.mxu2 %v3230_v49  ;;  %838 = vmatpush.msra.mxu3 %v3220_v26  ;;  %v1275_v26 = vld [vmem:[%s3060_s1 + $0x170] sm:$0xff]  ;;  %v243_v54 = vadd.f32 %v2389_v63, %v214_v11  ;;  %v1222_v63 = vld [vmem:[%s3061_s0 + $0x248] sm:$0xff] }
  0xb1   :  { %752 = vmatpush.msra.mxu0 %v3231_v61  ;;  %780 = vmatpush.msra.mxu1 %v3232_v0  ;;  %v2395_v6 = vpop.f32.mrf.mxu0  ;;  %v2397_v58 = vpop.f32.mrf.mxu3  ;;  %v269_v23 = vadd.f32 %v2362_v31, %v240_v10  ;;  %v1285_v31 = vld [vmem:[%s3060_s1 + $0x58] sm:$0xff]  ;;  %v1292_v0 = vld [vmem:[%s3060_s1 + $0x48] sm:$0xff] }
  0xb2   :  { %811 = vmatpush.msra.mxu2 %v3233_v16  ;;  %839 = vmatpush.msra.mxu3 %v3221_v42  ;;  %v1214_v42 = vld [vmem:[%s3061_s0 + $0x208] sm:$0xff]  ;;  %v188_v61 = vadd.f32 %v2404_v5, %v2395_v6  ;;  %v1224_v16 = vld [vmem:[%s3061_s0 + $0x258] sm:$0xff] }
  0xb3   :  { %753 = vmatpush.msra.mxu0 %v3234_v24  ;;  %781 = vmatpush.msra.mxu1 %v3235_v32  ;;  %v1293_v24 = vld [vmem:[%s3060_s1 + $0x140] sm:$0xff]  ;;  %v1294_v6 = vld [vmem:[%s3060_s1 + $0xb8] sm:$0xff]  ;;  %v1306_v10 = vld [vmem:[%s3060_s1 + $0x28] sm:$0xff] }
  0xb4   :  { %812 = vmatpush.msra.mxu2 %v2042_v13  ;;  %840 = vmatpush.msra.mxu3 %v2050_v40  ;;  %v2416_v62 = vpop.f32.mrf.mxu1  ;;  %v1208_v13 = vld [vmem:[%s3061_s0 + $0x1d8] sm:$0xff]  ;;  %v1295_v32 = vld [vmem:[%s3060_s1 + $0x40] sm:$0xff] }
  0xb5   :  { %754 = vmatpush.msra.mxu0 %v3236_v43  ;;  %782 = vmatpush.msra.mxu1 %v3237_v36  ;;  %v1270_v40 = vld [vmem:[%s3060_s1 + $0xf8] sm:$0xff]  ;;  %v217_v36 = vadd.f32 %v2416_v62, %v188_v61  ;;  %v1299_v62 = vld [vmem:[%s3060_s1 + $0x1f0] sm:$0xff] }
  0xb6   :  { %755 = vmatmul.f32.vlgmr.msra.gmra.mxu0 %v1207_v48  ;;  %813 = vmatmul.f32.vlgmr.msra.gmra.mxu2 %v1209_v19  ;;  %v272_v19 = vadd.f32 %v2397_v58, %v243_v54  ;;  %v1298_v58 = vld [vmem:[%s3060_s1 + $0x38] sm:$0xff] }
  0xb7   :  { %841 = vmatpush.msra.mxu3 %v2065_v15  ;;  %966 = vmatpush.msrb.mxu2 %v1270_v40  ;;  %v1272_v15 = vld [vmem:[%s3060_s1 + $0x178] sm:$0xff] }
  0xb8   :  { %783 = vmatpush.msra.mxu1 %v3238_v45  ;;  %842 = vmatmul.f32.vlgmr.msra.gmra.mxu3 %v1210_v9  ;;  %v2433_v28 = vpop.f32.mrf.mxu2  ;;  %v1296_v9 = vld [vmem:[%s3060_s1 + $0xb0] sm:$0xff]  ;;  %v1322_v61 = vld [vmem:[%s3060_s1 + $0x2f8] sm:$0xff] }
  0xb9   :  { %784 = vmatmul.f32.vlgmr.msra.gmra.mxu1 %v1208_v13  ;;  %867 = vmatpush.msrb.mxu0 %v3239_v14  ;;  %v1300_v14 = vld [vmem:[%s3060_s1 + $0xa8] sm:$0xff] }
  0xba   :  { %967 = vmatpush.msrb.mxu2 %v1271_v47  ;;  %995 = vmatpush.msrb.mxu3 %v1272_v15  ;;  %v2443_v22 = vpop.f32.mrf.mxu0  ;;  %v2445_v34 = vpop.f32.mrf.mxu3  ;;  %v1228_v47 = vld [vmem:[%s3061_s0 + $0x278] sm:$0xff]  ;;  %v1302_v15 = vld [vmem:[%s3060_s1 + $0x30] sm:$0xff] }
  0xbb   :  { %937 = vmatpush.msrb.mxu1 %v1273_v38  ;;  %868 = vmatpush.msrb.mxu0 %v3240_v55  ;;  %v1230_v38 = vld [vmem:[%s3061_s0 + $0x288] sm:$0xff] }
  0xbc   :  { %968 = vmatpush.msrb.mxu2 %v1274_v7  ;;  %996 = vmatpush.msrb.mxu3 %v1275_v26  ;;  %v1303_v55 = vld [vmem:[%s3060_s1 + $0x1e8] sm:$0xff]  ;;  %v246_v26 = vadd.f32 %v2433_v28, %v217_v36  ;;  %v1229_v28 = vld [vmem:[%s3061_s0 + $0x280] sm:$0xff]  ;;  %v1327_v36 = vld [vmem:[%s3060_s1 + $0x1d0] sm:$0xff] }
  0xbd   :  { %938 = vmatpush.msrb.mxu1 %v1276_v44  ;;  %869 = vmatpush.msrb.mxu0 %v3207_v3  ;;  %v2467_v52 = vpop.f32.mrf.mxu1  ;;  %v1279_v3 = vld [vmem:[%s3060_s1 + $0x68] sm:$0xff] }
  0xbe   :  { %969 = vmatpush.msrb.mxu2 %v1277_v50  ;;  %997 = vmatpush.msrb.mxu3 %v1278_v56  ;;  %v1305_v44 = vld [vmem:[%s3060_s1 + $0x128] sm:$0xff]  ;;  %v1231_v50 = vld [vmem:[%s3061_s0 + $0x290] sm:$0xff]  ;;  %v191_v56 = vadd.f32 %v2404_v5, %v2443_v22 }
  0xbf   :  { %939 = vmatpush.msrb.mxu1 %v1279_v3  ;;  %758 = vmatmul.f32.gmra.mxu0 %v1214_v42  ;;  %v1304_v42 = vld [vmem:[%s3060_s1 + $0xa0] sm:$0xff]  ;;  %v1308_v3 = vld [vmem:[%s3060_s1 + $0x98] sm:$0xff] }
  0xc0   :  { %816 = vmatmul.f32.gmra.mxu2 %v1216_v46  ;;  %998 = vmatpush.msrb.mxu3 %v1280_v4  ;;  %v275_v4 = vadd.f32 %v2445_v34, %v246_v26  ;;  %v1312_v34 = vld [vmem:[%s3060_s1 + $0x18] sm:$0xff] }
  0xc1   :  { %970 = vmatpush.msrb.mxu2 %v1281_v8  ;;  %940 = vmatpush.msrb.mxu1 %v1282_v12  ;;  %v2496_v17 = vpop.f32.mrf.mxu2  ;;  %v1310_v8 = vld [vmem:[%s3060_s1 + $0x90] sm:$0xff]  ;;  %v1311_v12 = vld [vmem:[%s3060_s1 + $0x118] sm:$0xff] }
  0xc2   :  { %787 = vmatmul.f32.gmra.mxu1 %v1215_v59  ;;  %845 = vmatmul.f32.gmra.mxu3 %v1217_v1  ;;  %v1309_v59 = vld [vmem:[%s3060_s1 + $0x20] sm:$0xff]  ;;  %v1334_v26 = vld [vmem:[%s3060_s1 + $0x2d8] sm:$0xff] }
  0xc3   :  { %971 = vmatpush.msrb.mxu2 %v1283_v21  ;;  %999 = vmatpush.msrb.mxu3 %v1284_v25  ;;  %v2506_v27 = vpop.f32.mrf.mxu3  ;;  %v297_v29 = vpop.f32.mrf.mxu0  ;;  %v220_v21 = vadd.f32 %v2467_v52, %v191_v56  ;;  %v1313_v25 = vld [vmem:[%s3060_s1 + $0x1e0] sm:$0xff]  ;;  %v1315_v52 = vld [vmem:[%s3060_s1 + $0x110] sm:$0xff] }
  0xc4   :  { %941 = vmatpush.msrb.mxu1 %v1285_v31  ;;  %870 = vmatpush.msrb.mxu0 %v3209_v20  ;;  %v298_v2 = vadd.f32 %v297_v29, %v269_v23  ;;  %v1223_v20 = vld [vmem:[%s3061_s0 + $0x250] sm:$0xff]  ;;  %v1314_v31 = vld [vmem:[%s3060_s1 + $0x88] sm:$0xff]  ;;  %v1225_v56 = vld [vmem:[%s3061_s0 + $0x260] sm:$0xff] }
  0xc5   :  { %972 = vmatpush.msrb.mxu2 %v1286_v33  ;;  %1000 = vmatpush.msrb.mxu3 %v1287_v35  ;;  %v1316_v33 = vld [vmem:[%s3060_s1 + $0x10] sm:$0xff]  ;;  %v1238_v35 = vld [vmem:[%s3061_s0 + $0x2a8] sm:$0xff]  ;;  %v249_v54 = vadd.f32 %v2496_v17, %v220_v21  ;;  %v1321_v17 = vld [vmem:[%s3060_s1 + $0x100] sm:$0xff] }
  0xc6   :  { %942 = vmatpush.msrb.mxu1 %v1288_v53  ;;  %v326_v39 = vpop.f32.mrf.mxu1  ;;  %1024 = vmatpush.msra.mxu0 %v1289_v41  ;;  %v1344_v21 = vld [vmem:[%s3060_s1 + $0x2c0] sm:$0xff] }
  0xc7   :  { %973 = vmatpush.msrb.mxu2 %v1290_v57  ;;  %1001 = vmatpush.msrb.mxu3 %v1291_v60  ;;  %v327_v49 = vadd.f32 %v326_v39, %v298_v2  ;;  %v1211_v2 = vld [vmem:[%s3061_s0 + $0x1f0] sm:$0xff]  ;;  %v1319_v39 = vld [vmem:[%s3060_s1 + $0x108] sm:$0xff]  ;;  %v1237_v60 = vld [vmem:[%s3061_s0 + $0x2a0] sm:$0xff] }
  0xc8   :  { %943 = vmatpush.msrb.mxu1 %v1292_v0  ;;  %761 = vmatmul.f32.gmra.mxu0 %v1221_v37  ;;  %v1317_v37 = vld [vmem:[%s3060_s1 + $0x1d8] sm:$0xff]  ;;  %v1320_v57 = vld [vmem:[%s3060_s1 + $0x8] sm:$0xff]  ;;  %v1323_v0 = vld [vmem:[%s3060_s1] sm:$0xff] }
  0xc9   :  { %819 = vmatmul.f32.gmra.mxu2 %v1223_v20  ;;  %1002 = vmatpush.msrb.mxu3 %v1293_v24  ;;  %v1318_v20 = vld [vmem:[%s3060_s1 + $0x80] sm:$0xff]  ;;  %v278_v24 = vadd.f32 %v2506_v27, %v249_v54  ;;  %v1218_v27 = vld [vmem:[%s3061_s0 + $0x228] sm:$0xff] }
  0xca   :  { %974 = vmatpush.msrb.mxu2 %v1294_v6  ;;  %944 = vmatpush.msrb.mxu1 %v1295_v32  ;;  %v355_v48 = vpop.f32.mrf.mxu2  ;;  %v1324_v6 = vld [vmem:[%s3060_s1 + $0x2f0] sm:$0xff]  ;;  %v1325_v32 = vld [vmem:[%s3060_s1 + $0x318] sm:$0xff] }
  0xcb   :  { %790 = vmatmul.f32.gmra.mxu1 %v1222_v63  ;;  %848 = vmatmul.f32.gmra.mxu3 %v1224_v16  ;;  %v2558_v43 = vadd.f32 %v355_v48, %v327_v49  ;;  %v1239_v49 = vld [vmem:[%s3061_s0 + $0x2b0] sm:$0xff] }
  0xcc   :  { %975 = vmatpush.msrb.mxu2 %v1296_v9  ;;  %1003 = vmatpush.msrb.mxu3 %v1297_v18  ;;  %v300_v13 = vpop.f32.mrf.mxu0  ;;  %v2567_v40 = vpop.f32.mrf.mxu3  ;;  %v1328_v18 = vld [vmem:[%s3060_s1 + $0x2e8] sm:$0xff] }
  0xcd   :  { %945 = vmatpush.msrb.mxu1 %v1298_v58  ;;  %1025 = vmatpush.msra.mxu0 %v1299_v62  ;;  %v301_v45 = vadd.f32 %v300_v13, %v272_v19  ;;  %v1326_v19 = vld [vmem:[%s3060_s1 + $0x278] sm:$0xff]  ;;  %v1245_v13 = vld [vmem:[%s3061_s0 + $0x2e0] sm:$0xff]  ;;  %v1329_v58 = vld [vmem:[%s3060_s1 + $0x310] sm:$0xff]  ;;  %vm367_vm1 = vcmp.gt.f32.partialorder %v2558_v43, 0.0 }
  0xce   :  { %976 = vmatpush.msrb.mxu2 %v1300_v14  ;;  %1004 = vmatpush.msrb.mxu3 %v1301_v30  ;;  %v1331_v14 = vld [vmem:[%s3060_s1 + $0x1c8] sm:$0xff]  ;;  %v1332_v30 = vld [vmem:[%s3060_s1 + $0x2e0] sm:$0xff] }
  0xcf   :  { %946 = vmatpush.msrb.mxu1 %v1302_v15  ;;  %1026 = vmatpush.msra.mxu0 %v1303_v55  ;;  %v329_v7 = vpop.f32.mrf.mxu1  ;;  %v1244_v55 = vld [vmem:[%s3061_s0 + $0x2d8] sm:$0xff] }
  0xd0   :  { %977 = vmatpush.msrb.mxu2 %v1304_v42  ;;  %1005 = vmatpush.msrb.mxu3 %v1305_v44  ;;  %v330_v46 = vadd.f32 %v329_v7, %v301_v45  ;;  %v1330_v45 = vld [vmem:[%s3060_s1 + $0x270] sm:$0xff]  ;;  %v1335_v42 = vld [vmem:[%s3060_s1 + $0x1c0] sm:$0xff] }
  0xd1   :  { %947 = vmatpush.msrb.mxu1 %v1306_v10  ;;  %764 = vmatmul.f32.gmra.mxu0 %v1228_v47  ;;  %v1246_v47 = vld [vmem:[%s3061_s0 + $0x2e8] sm:$0xff]  ;;  %v1336_v44 = vld [vmem:[%s3060_s1 + $0x260] sm:$0xff]  ;;  %v1337_v10 = vld [vmem:[%s3060_s1 + $0x2d0] sm:$0xff] }
  0xd2   :  { %822 = vmatmul.f32.gmra.mxu2 %v1230_v38  ;;  %1006 = vmatpush.msrb.mxu3 %v1307_v51  ;;  %v1333_v38 = vld [vmem:[%s3060_s1 + $0x268] sm:$0xff]  ;;  %v1339_v51 = vld [vmem:[%s3060_s1 + $0x1b8] sm:$0xff] }
  0xd3   :  { %978 = vmatpush.msrb.mxu2 %v1308_v3  ;;  %948 = vmatpush.msrb.mxu1 %v1309_v59  ;;  %v358_v1 = vpop.f32.mrf.mxu2  ;;  %v439_v3 = vadd.f32 %v2404_v5, %v2567_v40  ;;  %v1340_v59 = vld [vmem:[%s3060_s1 + $0x2c8] sm:$0xff]  ;;  %v1342_v40 = vld [vmem:[%s3060_s1 + $0x250] sm:$0xff] }
  0xd4   :  { %793 = vmatmul.f32.gmra.mxu1 %v1229_v28  ;;  %851 = vmatmul.f32.gmra.mxu3 %v1231_v50  ;;  %v2621_v22 = vadd.f32 %v358_v1, %v330_v46  ;;  %v1338_v50 = vld [vmem:[%s3060_s1 + $0x258] sm:$0xff] }
  0xd5   :  { %979 = vmatpush.msrb.mxu2 %v1310_v8  ;;  %1007 = vmatpush.msrb.mxu3 %v1311_v12  ;;  %v303_v23 = vpop.f32.mrf.mxu0  ;;  %v2629_v11 = vpop.f32.mrf.mxu3  ;;  %v1252_v1 = vld [vmem:[%s3061_s0 + $0x318] sm:$0xff]  ;;  %v1343_v12 = vld [vmem:[%s3060_s1 + $0x1b0] sm:$0xff] }
  0xd6   :  { %949 = vmatpush.msrb.mxu1 %v1312_v34  ;;  %1027 = vmatpush.msra.mxu0 %v1313_v25  ;;  %v304_v29 = vadd.f32 %v303_v23, %v275_v4  ;;  %v1341_v4 = vld [vmem:[%s3060_s1 + $0x308] sm:$0xff]  ;;  %v1253_v34 = vld [vmem:[%s3061_s0 + $0x320] sm:$0xff]  ;;  %vm368_vm3 = vcmp.gt.f32.partialorder %v2621_v22, 0.0 }
  0xd7   :  { %980 = vmatpush.msrb.mxu2 %v1314_v31  ;;  %1008 = vmatpush.msrb.mxu3 %v1315_v52  ;;  %v1251_v31 = vld [vmem:[%s3061_s0 + $0x310] sm:$0xff]  ;;  %v1346_v52 = vld [vmem:[%s3060_s1 + $0x2b8] sm:$0xff] }
  0xd8   :  { %950 = vmatpush.msrb.mxu1 %v1316_v33  ;;  %1028 = vmatpush.msra.mxu0 %v1317_v37  ;;  %v332_v53 = vpop.f32.mrf.mxu1 }
  0xd9   :  { %981 = vmatpush.msrb.mxu2 %v1318_v20  ;;  %1009 = vmatpush.msrb.mxu3 %v1319_v39  ;;  %v333_v41 = vadd.f32 %v332_v53, %v304_v29  ;;  %v1345_v29 = vld [vmem:[%s3060_s1 + $0x248] sm:$0xff]  ;;  %v1349_v53 = vld [vmem:[%s3060_s1 + $0x2b0] sm:$0xff]  ;;  %v1350_v20 = vld [vmem:[%s3060_s1 + $0x238] sm:$0xff] }
  0xda   :  { %951 = vmatpush.msrb.mxu1 %v1320_v57  ;;  %1233 = vmatmul.msk.f32.vlgmr.msrb.gmra.mxu0 %vm151_vm0, %v1211_v2  ;;  %v1347_v2 = vld [vmem:[%s3060_s1 + $0x1a8] sm:$0xff]  ;;  %v1351_v39 = vld [vmem:[%s3060_s1 + $0x1a0] sm:$0xff] }
  0xdb   :  { %982 = vmatmul.f32.vlgmr.msrb.gmra.mxu2 %v1238_v35  ;;  %1010 = vmatpush.msrb.mxu3 %v1321_v17  ;;  %v1348_v35 = vld [vmem:[%s3060_s1 + $0x240] sm:$0xff]  ;;  %v1352_v57 = vld [vmem:[%s3060_s1 + $0x2a8] sm:$0xff] }
  0xdc   :  { %1082 = vmatpush.msra.mxu2 %v1322_v61  ;;  %952 = vmatpush.msrb.mxu1 %v1323_v0  ;;  %v361_v63 = vpop.f32.mrf.mxu2  ;;  %v1354_v61 = vld [vmem:[%s3060_s1 + $0x230] sm:$0xff]  ;;  %v1355_v0 = vld [vmem:[%s3060_s1 + $0x198] sm:$0xff] }
  0xdd   :  { %953 = vmatmul.f32.vlgmr.msrb.gmra.mxu1 %v1237_v60  ;;  %1011 = vmatmul.f32.vlgmr.msrb.gmra.mxu3 %v1239_v49  ;;  %v2682_v16 = vadd.f32 %v361_v63, %v333_v41  ;;  %v1232_v41 = vld [vmem:[%s3061_s0 + $0x298] sm:$0xff]  ;;  %v1259_v60 = vld [vmem:[%s3061_s0 + $0x350] sm:$0xff]  ;;  %v1353_v49 = vld [vmem:[%s3060_s1 + $0x300] sm:$0xff]  ;;  %v442_v63 = vadd.f32 %v2404_v5, %v2629_v11 }
  0xde   :  { %1083 = vmatpush.msra.mxu2 %v1324_v6  ;;  %1123 = vmatpush.msra.mxu3 %v1325_v32  ;;  %v2691_v48 = vpop.f32.mrf.mxu3  ;;  %v1260_v6 = vld [vmem:[%s3061_s0 + $0x358] sm:$0xff]  ;;  %v1258_v11 = vld [vmem:[%s3061_s0 + $0x348] sm:$0xff] }
  0xdf   :  { %1053 = vmatpush.msra.mxu1 %v1326_v19  ;;  %1029 = vmatpush.msra.mxu0 %v1327_v36  ;;  %v306_v9 = vpop.f32.mrf.mxu0  ;;  %v1357_v19 = vld [vmem:[%s3060_s1 + $0x228] sm:$0xff]  ;;  %vm369_vm5 = vcmp.gt.f32.partialorder %v2682_v16, 0.0 }
  0xe0   :  { %1084 = vmatpush.msra.mxu2 %v1328_v18  ;;  %1124 = vmatpush.msra.mxu3 %v1329_v58  ;;  %v307_v62 = vadd.f32 %v306_v9, %v278_v24  ;;  %v1356_v24 = vld [vmem:[%s3060_s1 + $0x2a0] sm:$0xff]  ;;  %v1358_v9 = vld [vmem:[%s3060_s1 + $0x298] sm:$0xff]  ;;  %v1359_v18 = vld [vmem:[%s3060_s1 + $0x190] sm:$0xff] }
  0xe1   :  { %1054 = vmatpush.msra.mxu1 %v1330_v45  ;;  %1030 = vmatpush.msra.mxu0 %v1331_v14  ;;  %v1360_v58 = vld [vmem:[%s3060_s1 + $0x220] sm:$0xff]  ;;  %v1361_v45 = vld [vmem:[%s3060_s1 + $0x290] sm:$0xff] }
  0xe2   :  { %1085 = vmatpush.msra.mxu2 %v1332_v30  ;;  %1234 = vmatmul.msk.f32.gmra.mxu0 %vm151_vm0, %v1218_v27  ;;  %v335_v15 = vpop.f32.mrf.mxu1  ;;  %v1362_v30 = vld [vmem:[%s3060_s1 + $0x218] sm:$0xff] }
  0xe3   :  { %1055 = vmatpush.msra.mxu1 %v1333_v38  ;;  %985 = vmatmul.f32.gmra.mxu2 %v1245_v13  ;;  %v336_v7 = vadd.f32 %v335_v15, %v307_v62  ;;  %v1240_v15 = vld [vmem:[%s3061_s0 + $0x2b8] sm:$0xff]  ;;  %v1364_v38 = vld [vmem:[%s3060_s1 + $0x288] sm:$0xff] }
  0xe4   :  { %1086 = vmatpush.msra.mxu2 %v1334_v26  ;;  %1031 = vmatpush.msra.mxu0 %v1335_v42  ;;  %v1365_v26 = vld [vmem:[%s3060_s1 + $0x210] sm:$0xff]  ;;  %v1366_v42 = vld [vmem:[%s3060_s1 + $0x180] sm:$0xff] }
  0xe5   :  { %1056 = vmatpush.msra.mxu1 %v1336_v44  ;;  %1014 = vmatmul.f32.gmra.mxu3 %v1246_v47  ;;  %v364_v46 = vpop.f32.mrf.mxu2  ;;  %v1363_v47 = vld [vmem:[%s3060_s1 + $0x188] sm:$0xff] }
  0xe6   :  { %956 = vmatmul.f32.gmra.mxu1 %v1244_v55  ;;  %1087 = vmatpush.msra.mxu2 %v1337_v10  ;;  %v2742_v28 = vadd.f32 %v364_v46, %v336_v7  ;;  %v1242_v55 = vld [vmem:[%s3061_s0 + $0x2c8] sm:$0xff]  ;;  %v1367_v46 = vld [vmem:[%s3060_s1 + $0x280] sm:$0xff]  ;;  %v1243_v10 = vld [vmem:[%s3061_s0 + $0x2d0] sm:$0xff] }
  0xe7   :  { %1057 = vmatpush.msra.mxu1 %v1338_v50  ;;  %1032 = vmatpush.msra.mxu0 %v1339_v51  ;;  %v445_v50 = vadd.f32 %v2404_v5, %v2691_v48  ;;  %v1241_v51 = vld [vmem:[%s3061_s0 + $0x2c0] sm:$0xff] }
  0xe8   :  { %1088 = vmatpush.msra.mxu2 %v1340_v59  ;;  %1125 = vmatpush.msra.mxu3 %v1341_v4  ;;  %v2764_v8 = vpop.f32.mrf.mxu3  ;;  %v1369_v4 = vld [vmem:[%s3060_s1 + $0x200] sm:$0xff]  ;;  %vm370_vm7 = vcmp.gt.f32.partialorder %v2742_v28, 0.0 }
  0xe9   :  { %1058 = vmatpush.msra.mxu1 %v1342_v40  ;;  %1033 = vmatpush.msra.mxu0 %v1343_v12  ;;  %v467_v23 = vpop.f32.mrf.mxu0  ;;  %v1247_v12 = vld [vmem:[%s3061_s0 + $0x2f0] sm:$0xff] }
  0xea   :  { %1089 = vmatpush.msra.mxu2 %v1344_v21  ;;  %1235 = vmatmul.msk.f32.gmra.mxu0 %vm151_vm0, %v1225_v56  ;;  %v468_v25 = vadd.f32 %v467_v23, %v439_v3  ;;  %v1368_v56 = vld [vmem:[%s3060_s1 + $0x208] sm:$0xff]  ;;  %v1249_v21 = vld [vmem:[%s3061_s0 + $0x300] sm:$0xff] }
  0xeb   :  { %1059 = vmatpush.msra.mxu1 %v1345_v29  ;;  %988 = vmatmul.f32.gmra.mxu2 %v1252_v1 }
  0xec   :  { %1090 = vmatpush.msra.mxu2 %v1346_v52  ;;  %1034 = vmatpush.msra.mxu0 %v1347_v2  ;;  %v496_v33 = vpop.f32.mrf.mxu1  ;;  %v448_v52 = vadd.f32 %v2404_v5, %v2764_v8  ;;  %v1257_v8 = vld [vmem:[%s3061_s0 + $0x340] sm:$0xff] }
  0xed   :  { %1060 = vmatpush.msra.mxu1 %v1348_v35  ;;  %1017 = vmatmul.f32.gmra.mxu3 %v1253_v34  ;;  %v497_v37 = vadd.f32 %v496_v33, %v468_v25  ;;  %v1250_v25 = vld [vmem:[%s3061_s0 + $0x308] sm:$0xff] }
  0xee   :  { %959 = vmatmul.f32.gmra.mxu1 %v1251_v31  ;;  %1091 = vmatpush.msra.mxu2 %v1349_v53  ;;  %v1248_v31 = vld [vmem:[%s3061_s0 + $0x2f8] sm:$0xff]  ;;  %v1254_v53 = vld [vmem:[%s3061_s0 + $0x328] sm:$0xff] }
  0xef   :  { %1061 = vmatpush.msra.mxu1 %v1350_v20  ;;  %1035 = vmatpush.msra.mxu0 %v1351_v39  ;;  %v525_v54 = vpop.f32.mrf.mxu2  ;;  %v1256_v39 = vld [vmem:[%s3061_s0 + $0x338] sm:$0xff] }
  0xf0   :  { %1092 = vmatpush.msra.mxu2 %v1352_v57  ;;  %1126 = vmatpush.msra.mxu3 %v1353_v49  ;;  %v526_v17 = vadd.f32 %v525_v54, %v497_v37  ;;  %v1255_v57 = vld [vmem:[%s3061_s0 + $0x330] sm:$0xff] }
  0xf1   :  { %1062 = vmatpush.msra.mxu1 %v1354_v61  ;;  %1036 = vmatpush.msra.mxu0 %v1355_v0 }
  0xf2   :  { %1093 = vmatpush.msra.mxu2 %v1356_v24  ;;  %1236 = vmatmul.msk.f32.gmra.mxu0 %vm151_vm0, %v1232_v41  ;;  %v554_v32 = vpop.f32.mrf.mxu3 }
  0xf3   :  { %1063 = vmatpush.msra.mxu1 %v1357_v19  ;;  %991 = vmatmul.f32.gmra.mxu2 %v1259_v60  ;;  %v470_v27 = vpop.f32.mrf.mxu0  ;;  %v2836_v36 = vadd.f32 %v554_v32, %v526_v17  ;;  %v2922_v17 = vstv %s3063_s3 }
  0xf4   :  { %1094 = vmatpush.msra.mxu2 %v1358_v9  ;;  %1037 = vmatpush.msra.mxu0 %v1359_v18  ;;  %v471_v13 = vadd.f32 %v470_v27, %v442_v63  ;;  %v1261_v63 = vld [vmem:[%s3061_s0 + $0x360] sm:$0xff]  ;;  %v372_v19 = vmul.f32 %v2922_v17, %v2558_v43  ;;  %v1264_v27 = vld [vmem:[%s3061_s0 + $0x378] sm:$0xff] }
  0xf5   :  { %1064 = vmatpush.msra.mxu1 %v1360_v58  ;;  %1020 = vmatmul.f32.gmra.mxu3 %v1260_v6  ;;  %v499_v62 = vpop.f32.mrf.mxu1  ;;  %v1263_v6 = vld [vmem:[%s3061_s0 + $0x370] sm:$0xff] }
  0xf6   :  { %962 = vmatmul.f32.gmra.mxu1 %v1258_v11  ;;  %1095 = vmatpush.msra.mxu2 %v1361_v45  ;;  %v500_v14 = vadd.f32 %v499_v62, %v471_v13  ;;  %v2943_v58 = vsel %vm367_vm1, %v2558_v43, %v372_v19 }
  0xf7   :  { %1065 = vmatpush.msra.mxu1 %v1362_v30  ;;  %1038 = vmatpush.msra.mxu0 %v1363_v47 }
  0xf8   :  { %1096 = vmatpush.msra.mxu2 %v1364_v38  ;;  %v528_v7 = vpop.f32.mrf.mxu2 }
  0xf9   :  { %1066 = vmatpush.msra.mxu1 %v1365_v26  ;;  %1039 = vmatpush.msra.mxu0 %v1366_v42  ;;  %v529_v44 = vadd.f32 %v528_v7, %v500_v14 }
  0xfa   :  { %1097 = vmatpush.msra.mxu2 %v1367_v46  ;;  %1040 = vmatmul.f32.vlgmr.msra.gmra.mxu0 %v1240_v15 }
  0xfb   :  { %1067 = vmatpush.msra.mxu1 %v1368_v56  ;;  %1098 = vmatmul.f32.vlgmr.msra.gmra.mxu2 %v1242_v55  ;;  %v557_v3 = vpop.f32.mrf.mxu3  ;;  %v373_v55 = vmul.f32 %v2922_v17, %v2621_v22 }
  0xfc   :  { %v473_v59 = vpop.f32.mrf.mxu0  ;;  %v2885_v1 = vadd.f32 %v557_v3, %v529_v44 }
  0xfd   :  { %1068 = vmatpush.msra.mxu1 %v1369_v4  ;;  %1265 = vmatmul.msk.f32.vlgmr.msra.gmra.mxu3 %vm151_vm0, %v1243_v10  ;;  %v474_v48 = vadd.f32 %v473_v59, %v445_v50  ;;  %v2959_v44 = vsel %vm368_vm3, %v2621_v22, %v373_v55 }
  0xfe   :  { %1069 = vmatmul.f32.vlgmr.msra.gmra.mxu1 %v1241_v51  ;;  %v502_v40 = vpop.f32.mrf.mxu1 }
  0xff   :  { %v503_v23 = vadd.f32 %v502_v40, %v474_v48 }
 0x101   :  { %v531_v34 = vpop.f32.mrf.mxu2 }
 0x102   :  { %1043 = vmatmul.f32.gmra.mxu0 %v1247_v12  ;;  %v532_v29 = vadd.f32 %v531_v34, %v503_v23 }
 0x103   :  { %1101 = vmatmul.f32.gmra.mxu2 %v1249_v21 }
 0x104   :  { %v560_v2 = vpop.f32.mrf.mxu3 }
 0x105   :  { %1266 = vmatmul.msk.f32.gmra.mxu3 %vm151_vm0, %v1250_v25  ;;  %v476_v33 = vpop.f32.mrf.mxu0  ;;  %v561_v35 = vadd.f32 %v560_v2, %v532_v29  ;;  %v375_v2 = vmul.f32 %v2922_v17, %v2742_v28 }
 0x106   :  { %1072 = vmatmul.f32.gmra.mxu1 %v1248_v31  ;;  %v477_v37 = vadd.f32 %v476_v33, %v448_v52 }
 0x107   :  { %v505_v20 = vpop.f32.mrf.mxu1 }
 0x108   :  { %v506_v41 = vadd.f32 %v505_v20, %v477_v37 }
 0x10a   :  { %1046 = vmatmul.f32.gmra.mxu0 %v1254_v53  ;;  %v534_v54 = vpop.f32.mrf.mxu2  ;;  %v2987_v53 = vsel %vm370_vm7, %v2742_v28, %v375_v2 }
 0x10b   :  { %1104 = vmatmul.f32.gmra.mxu2 %v1256_v39  ;;  %v535_v60 = vadd.f32 %v534_v54, %v506_v41 }
 0x10d   :  { %1267 = vmatmul.msk.f32.gmra.mxu3 %vm151_vm0, %v1257_v8  ;;  %v563_v49 = vpop.f32.mrf.mxu3 }
 0x10e   :  { %1075 = vmatmul.f32.gmra.mxu1 %v1255_v57  ;;  %v564_v61 = vadd.f32 %v563_v49, %v535_v60  ;;  %v583_v0 = vpop.f32.mrf.mxu0 }
 0x10f   :  { %v584_v24 = vadd.f32 %v583_v0, %v2836_v36  ;;  %v1262_v36 = vld [vmem:[%s3061_s0 + $0x368] sm:$0xff] }
 0x110   :  { %v612_v32 = vpop.f32.mrf.mxu1 }
 0x111   :  { %v613_v11 = vadd.f32 %v612_v32, %v584_v24 }
 0x112   :  { %1049 = vmatmul.f32.gmra.mxu0 %v1261_v63 }
 0x113   :  { %1107 = vmatmul.f32.gmra.mxu2 %v1263_v6  ;;  %vm624_vm2 = vcmp.gt.f32.partialorder %v613_v11, 0.0  ;;  %v628_v9 = vmul.f32 %v613_v11, %v2922_v17  ;;  %v698_v18 = vpop.f32.mrf.mxu2 }
 0x114   :  { %v699_v13 = vadd.f32 %v2404_v5, %v698_v18 }
 0x115   :  { %1268 = vmatmul.msk.f32.gmra.mxu3 %vm151_vm0, %v1264_v27  ;;  %v2946_v62 = vsel %vm624_vm2, %v613_v11, %v628_v9 }
 0x116   :  { %1078 = vmatmul.f32.gmra.mxu1 %v1262_v36  ;;  %v636_v45 = vmax.f32 %v2943_v58, %v2946_v62  ;;  %v727_v14 = vpop.f32.mrf.mxu3 }
 0x117   :  { %v586_v30 = vpop.f32.mrf.mxu0  ;;  %v2950_v47 = vadd.f32 %v727_v14, %v699_v13 }
 0x118   :  { %v587_v15 = vadd.f32 %v586_v30, %v2885_v1  ;;  %v374_v1 = vmul.f32 %v2922_v17, %v2682_v16 }
 0x119   :  { %v615_v38 = vpop.f32.mrf.mxu1 }
 0x11a   :  { %v616_v43 = vadd.f32 %v615_v38, %v587_v15  ;;  %v2973_v12 = vsel %vm369_vm5, %v2682_v16, %v374_v1 }
 0x11c   :  { %vm625_vm4 = vcmp.gt.f32.partialorder %v616_v43, 0.0  ;;  %v629_v7 = vmul.f32 %v616_v43, %v2922_v17  ;;  %v701_v26 = vpop.f32.mrf.mxu2 }
 0x11d   :  { %v702_v42 = vadd.f32 %v2404_v5, %v701_v26 }
 0x11e   :  { %v2961_v46 = vsel %vm625_vm4, %v616_v43, %v629_v7 }
 0x11f   :  { %v637_v10 = vmax.f32 %v2959_v44, %v2961_v46  ;;  %v730_v50 = vpop.f32.mrf.mxu3 }
 0x120   :  { %v589_v56 = vpop.f32.mrf.mxu0  ;;  %v2965_v51 = vadd.f32 %v730_v50, %v702_v42 }
 0x121   :  { %v590_v3 = vadd.f32 %v589_v56, %v561_v35 }
 0x122   :  { %v618_v59 = vpop.f32.mrf.mxu1 }
 0x123   :  { %v619_v4 = vadd.f32 %v618_v59, %v590_v3 }
 0x125   :  { %vm626_vm6 = vcmp.gt.f32.partialorder %v619_v4, 0.0  ;;  %v630_v22 = vmul.f32 %v619_v4, %v2922_v17  ;;  %v704_v48 = vpop.f32.mrf.mxu2 }
 0x126   :  { %v705_v40 = vadd.f32 %v2404_v5, %v704_v48 }
 0x127   :  { %v2975_v23 = vsel %vm626_vm6, %v619_v4, %v630_v22 }
 0x128   :  { %v638_v21 = vmax.f32 %v2973_v12, %v2975_v23  ;;  %v733_v34 = vpop.f32.mrf.mxu3 }
 0x129   :  { %v592_v25 = vpop.f32.mrf.mxu0  ;;  %v2979_v29 = vadd.f32 %v733_v34, %v705_v40 }
 0x12a   :  { %v593_v31 = vadd.f32 %v592_v25, %v564_v61 }
 0x12c   :  { %v621_v52 = vpop.f32.mrf.mxu1 }
 0x12d   :  { %v622_v33 = vadd.f32 %v621_v52, %v593_v31 }
 0x12f   :  { %vm627_vm8 = vcmp.gt.f32.partialorder %v622_v33, 0.0  ;;  %v631_v16 = vmul.f32 %v622_v33, %v2922_v17  ;;  %v707_v35 = vpop.f32.mrf.mxu2 }
 0x130   :  { %v708_v37 = vadd.f32 %v2404_v5, %v707_v35 }
 0x131   :  { %v2989_v20 = vsel %vm627_vm8, %v622_v33, %v631_v16 }
 0x132   :  { %v736_v41 = vpop.f32.mrf.mxu3  ;;  %v3241_v12 = vmax.f32 %v2987_v53, %v2989_v20 }
 0x133   :  { %v2993_v8 = vadd.f32 %v736_v41, %v708_v37  ;;  %v756_v54 = vpop.f32.mrf.mxu0 }
 0x134   :  { %v757_v59 = vadd.f32 %v756_v54, %v2950_v47 }
 0x136   :  { %v785_v57 = vpop.f32.mrf.mxu1 }
 0x137   :  { %v786_v22 = vadd.f32 %v785_v57, %v757_v59 }
 0x139   :  { %v814_v60 = vpop.f32.mrf.mxu2 }
 0x13a   :  { %v815_v40 = vadd.f32 %v814_v60, %v786_v22 }
 0x13b   :  { %v843_v49 = vpop.f32.mrf.mxu3 }
 0x13c   :  { %v759_v61 = vpop.f32.mrf.mxu0  ;;  %v844_v16 = vadd.f32 %v843_v49, %v815_v40 }
 0x13d   :  { %v760_v2 = vadd.f32 %v759_v61, %v2965_v51 }
 0x13f   :  { %v788_v0 = vpop.f32.mrf.mxu1 }
 0x140   :  { %v789_v41 = vadd.f32 %v788_v0, %v760_v2 }
 0x143   :  { %v817_v63 = vpop.f32.mrf.mxu2 }
 0x144   :  { %v818_v54 = vadd.f32 %v817_v63, %v789_v41 }
 0x145   :  { %v762_v24 = vpop.f32.mrf.mxu0  ;;  %v846_v6 = vpop.f32.mrf.mxu3 }
 0x146   :  { %v847_v49 = vadd.f32 %v846_v6, %v818_v54 }
 0x148   :  { %v791_v32 = vpop.f32.mrf.mxu1 }
 0x14c   :  { %v820_v28 = vpop.f32.mrf.mxu2 }
 0x14e   :  { %v2995_v19 = vpop.f32.mrf.mxu0  ;;  %v2997_v11 = vpop.f32.mrf.mxu3 }
 0x14f   :  { %v766_v6 = vadd.f32 %v2995_v19, %v2993_v8 }
 0x151   :  { %v2999_v27 = vpop.f32.mrf.mxu1 }
 0x152   :  { %v795_v58 = vadd.f32 %v2999_v27, %v766_v6 }
 0x155   :  { %v3001_v36 = vpop.f32.mrf.mxu2 }
 0x157   :  { %v3003_v9 = vpop.f32.mrf.mxu3  ;;  %v872_v18 = vpop.f32.mrf.mxu0 }
 0x15a   :  { %v954_v13 = vpop.f32.mrf.mxu1 }
 0x15b   :  { %v955_v50 = vadd.f32 %v2404_v5, %v954_v13  ;;  %v873_v13 = vadd.f32 %v872_v18, %v844_v16 }
 0x15d   :  { %v888_v59 = vmul.f32 %v873_v13, %v2922_v17  ;;  %vm884_vm9 = vcmp.gt.f32.partialorder %v873_v13, 0.0 }
 0x15e   :  { %v983_v14 = vpop.f32.mrf.mxu2 }
 0x15f   :  { %v875_v30 = vpop.f32.mrf.mxu0  ;;  %v984_v1 = vadd.f32 %v983_v14, %v955_v50 }
 0x160   :  { %v1012_v15 = vpop.f32.mrf.mxu3 }
 0x161   :  { %v1013_v34 = vadd.f32 %v1012_v15, %v984_v1  ;;  %v876_v1 = vadd.f32 %v875_v30, %v847_v49 }
 0x163   :  { %v957_v38 = vpop.f32.mrf.mxu1  ;;  %v889_v30 = vmul.f32 %v876_v1, %v2922_v17  ;;  %vm885_vm12 = vcmp.gt.f32.partialorder %v876_v1, 0.0 }
 0x164   :  { %v958_v25 = vadd.f32 %v2404_v5, %v957_v38  ;;  %v763_v38 = vadd.f32 %v762_v24, %v2979_v29 }
 0x165   :  { %v893_v62 = vsel %vm885_vm12, %v876_v1, %v889_v30 }
 0x166   :  { %v986_v55 = vpop.f32.mrf.mxu2  ;;  %v792_v63 = vadd.f32 %v791_v32, %v763_v38 }
 0x167   :  { %v3005_v43 = vpop.f32.mrf.mxu0  ;;  %v987_v35 = vadd.f32 %v986_v55, %v958_v25 }
 0x168   :  { %v1015_v7 = vpop.f32.mrf.mxu3  ;;  %v821_v22 = vadd.f32 %v820_v28, %v792_v63 }
 0x169   :  { %v1016_v14 = vadd.f32 %v1015_v7, %v987_v35  ;;  %v892_v7 = vsel %vm884_vm9, %v873_v13, %v888_v59 }
 0x16b   :  { %v960_v26 = vpop.f32.mrf.mxu1 }
 0x16c   :  { %v961_v57 = vadd.f32 %v2404_v5, %v960_v26 }
 0x16e   :  { %v989_v42 = vpop.f32.mrf.mxu2 }
 0x16f   :  { %v3008_v56 = vpop.f32.mrf.mxu0  ;;  %v990_v55 = vadd.f32 %v989_v42, %v961_v57 }
 0x170   :  { %v1018_v3 = vpop.f32.mrf.mxu3 }
 0x171   :  { %v1019_v24 = vadd.f32 %v1018_v3, %v990_v55 }
 0x173   :  { %v963_v4 = vpop.f32.mrf.mxu1 }
 0x176   :  { %v992_v48 = vpop.f32.mrf.mxu2 }
 0x177   :  { %v1041_v31 = vpop.f32.mrf.mxu0 }
 0x178   :  { %v1021_v52 = vpop.f32.mrf.mxu3  ;;  %v1042_v33 = vadd.f32 %v1041_v31, %v1013_v34  ;;  %v964_v34 = vadd.f32 %v2404_v5, %v963_v4  ;;  %v850_v5 = vadd.f32 %v2997_v11, %v821_v22 }
 0x17a   :  { %v993_v3 = vadd.f32 %v992_v48, %v964_v34 }
 0x17b   :  { %v1070_v37 = vpop.f32.mrf.mxu1 }
 0x17c   :  { %v1071_v39 = vadd.f32 %v1070_v37, %v1042_v33  ;;  %v824_v37 = vadd.f32 %v3001_v36, %v795_v58  ;;  %v1022_v41 = vadd.f32 %v1021_v52, %v993_v3 }
 0x17e   :  { %v1099_v47 = vpop.f32.mrf.mxu2  ;;  %v853_v36 = vadd.f32 %v3003_v9, %v824_v37 }
 0x17f   :  { %v1100_v60 = vadd.f32 %v1099_v47, %v1071_v39  ;;  %v1044_v15 = vpop.f32.mrf.mxu0 }
 0x180   :  { %v1128_v50 = vpop.f32.mrf.mxu3  ;;  %v1045_v51 = vadd.f32 %v1044_v15, %v1016_v14  ;;  %v882_v44 = vadd.f32 %v3008_v56, %v853_v36 }
 0x181   :  { %v1129_v61 = vadd.f32 %v1128_v50, %v1100_v60 }
 0x182   :  { %vm887_vm0 = vcmp.gt.f32.partialorder %v882_v44, 0.0 }
 0x183   :  { %vm1140_vm10 = vcmp.gt.f32.partialorder %v1129_v61, 0.0  ;;  %v1144_v0 = vmul.f32 %v1129_v61, %v2922_v17  ;;  %v1073_v18 = vpop.f32.mrf.mxu1 }
 0x184   :  { %v1074_v39 = vadd.f32 %v1073_v18, %v1045_v51  ;;  %v891_v51 = vmul.f32 %v882_v44, %v2922_v17 }
 0x185   :  { %v1148_v26 = vsel %vm1140_vm10, %v1129_v61, %v1144_v0 }
 0x186   :  { %v1152_v40 = vmax.f32 %v892_v7, %v1148_v26  ;;  %v1102_v29 = vpop.f32.mrf.mxu2  ;;  %v895_v61 = vsel %vm887_vm0, %v882_v44, %v891_v51 }
 0x187   :  { %v1103_v25 = vadd.f32 %v1102_v29, %v1074_v39  ;;  %v1047_v31 = vpop.f32.mrf.mxu0 }
 0x188   :  { %v1156_v32 = vmax.f32 %v636_v45, %v1152_v40  ;;  %v1131_v42 = vpop.f32.mrf.mxu3  ;;  %v1048_v2 = vadd.f32 %v1047_v31, %v1019_v24  ;;  %v879_v45 = vadd.f32 %v3005_v43, %v850_v5 }
 0x189   :  { %v1132_v28 = vadd.f32 %v1131_v42, %v1103_v25 }
 0x18a   :  { %1161 = vst.msk [vmem:[%s3064_s4] sm:$0xff] %vm1160_vm11, %v1156_v32  ;;  %v890_v54 = vmul.f32 %v879_v45, %v2922_v17  ;;  %vm886_vm14 = vcmp.gt.f32.partialorder %v879_v45, 0.0 }
 0x18b   :  { %vm1141_vm13 = vcmp.gt.f32.partialorder %v1132_v28, 0.0  ;;  %v1145_v8 = vmul.f32 %v1132_v28, %v2922_v17  ;;  %v1076_v19 = vpop.f32.mrf.mxu1 }
 0x18c   :  { %v1077_v33 = vadd.f32 %v1076_v19, %v1048_v2  ;;  %v894_v57 = vsel %vm886_vm14, %v879_v45, %v890_v54 }
 0x18d   :  { %v1149_v4 = vsel %vm1141_vm13, %v1132_v28, %v1145_v8 }
 0x18e   :  { %v1153_v16 = vmax.f32 %v893_v62, %v1149_v4  ;;  %v1105_v35 = vpop.f32.mrf.mxu2 }
 0x18f   :  { %v1106_v13 = vadd.f32 %v1105_v35, %v1077_v33  ;;  %v1050_v47 = vpop.f32.mrf.mxu0 }
 0x190   :  { %v1157_v11 = vmax.f32 %v637_v10, %v1153_v16  ;;  %v1134_v48 = vpop.f32.mrf.mxu3  ;;  %v1051_v27 = vadd.f32 %v1050_v47, %v1022_v41 }
 0x191   :  { %v1135_v14 = vadd.f32 %v1134_v48, %v1106_v13 }
 0x192   :  { %1162 = vst.msk [vmem:[%s3064_s4 + $0x8] sm:$0xff] %vm1160_vm11, %v1157_v11 }
 0x193   :  { %vm1142_vm15 = vcmp.gt.f32.partialorder %v1135_v14, 0.0  ;;  %v1146_v43 = vmul.f32 %v1135_v14, %v2922_v17  ;;  %v1079_v52 = vpop.f32.mrf.mxu1 }
 0x194   :  { %v1080_v10 = vadd.f32 %v1079_v52, %v1051_v27 }
 0x195   :  { %v1150_v46 = vsel %vm1142_vm15, %v1135_v14, %v1146_v43 }
 0x196   :  { %v1154_v60 = vmax.f32 %v894_v57, %v1150_v46  ;;  %v1108_v15 = vpop.f32.mrf.mxu2 }
 0x197   :  { %v1109_v38 = vadd.f32 %v1108_v15, %v1080_v10 }
 0x198   :  { %v1158_v50 = vmax.f32 %v638_v21, %v1154_v60  ;;  %v1137_v59 = vpop.f32.mrf.mxu3 }
 0x199   :  { %v1138_v9 = vadd.f32 %v1137_v59, %v1109_v38 }
 0x19a   :  { %1163 = vst.msk [vmem:[%s3064_s4 + $0x10] sm:$0xff] %vm1160_vm11, %v1158_v50 }
 0x19b   :  { %vm1143_vm1 = vcmp.gt.f32.partialorder %v1138_v9, 0.0  ;;  %v1147_v56 = vmul.f32 %v1138_v9, %v2922_v17 }
 0x19d   :  { %v1151_v49 = vsel %vm1143_vm1, %v1138_v9, %v1147_v56 }
 0x19e   :  { %v1155_v55 = vmax.f32 %v895_v61, %v1151_v49 }
 0x1a0   :  { %v1159_v23 = vmax.f32 %v3241_v12, %v1155_v55 }
 0x1a2   :  { %1164 = vst.msk [vmem:[%s3064_s4 + $0x18] sm:$0xff] %vm1160_vm11, %v1159_v23 }

// kernel: embedding_net_l2.5
= control target key start
LH: loop header
LB: loop body
LE: loop exit
PB: predicated region body
PF: predicated region fallthrough
CT: control target
= control target key end

     0   :  { %13 = vsyncpa [#allocation3], 0  ;;  %s916_s30 = smov [#allocation2]   ;;  %s2102_s0 = inlined_call_operand.vmem [shape: f32[8,1024], index: 0, kind: input, shape index: {}]   ;;  %s2103_s1 = inlined_call_operand.vmem [shape: f32[1024,256], index: 1, kind: input, shape index: {}]   ;;  %s2104_s2 = inlined_call_operand.vmem [shape: f32[1,256], index: 2, kind: input, shape index: {}]   ;;  %s2105_s3 = inlined_call_operand.vmem [shape: f32[256,256], index: 3, kind: input, shape index: {}]   ;;  %s2106_s4 = inlined_call_operand.vmem [shape: f32[1,256], index: 4, kind: input, shape index: {}]   ;;  %s2107_s5 = inlined_call_operand.vmem [shape: f32[256,2], index: 5, kind: input, shape index: {}]   ;;  %s2108_s6 = inlined_call_operand.vmem [shape: f32[1,2], index: 6, kind: input, shape index: {}]   ;;  %s2109_s7 = inlined_call_operand.vmem [shape: f32[2], index: 7, kind: input, shape index: {}]   ;;  %s2110_s8 = inlined_call_operand.vmem [shape: f32[8,2], index: 8, kind: output, shape index: {}]  }
   0x1   :  { %s33_s29 = sshll.u32 %s2109_s7, 4  ;;  %s34_s29 = int_to_ptr.vmem [resolvable:$true] %s33_s29 }
   0x2   :  { %36 = dma.vmem_to_smem %s34_s29, 16, %s916_s30, [#allocation3]  }
   0x3   :  { %914 = dma.done.wait [#allocation3], 16  }
   0x4   :  { %915 = vsyncadd [#allocation3], 4294967280 }
   0x5   :  { %41 = sfence }
   0x6   :  { %v146_v0 = vld [vmem:[%s2103_s1 + $0x2f0] sm:$0xff]  ;;  %v144_v2 = vld [vmem:[%s2103_s1 + $0x2e0] sm:$0xff]  ;;  %s1927_s11 = sld [smem:[#allocation2]]  ;;  %vm875_vm4 = vcmask 15360  }
   0x7   :  { %v82_v1 = vld [vmem:[%s2103_s1 + $0xf0] sm:$0xff]  ;;  %354 = vmatpush.msra.mxu2 %v146_v0  ;;  %v80_v4 = vld [vmem:[%s2103_s1 + $0xe0] sm:$0xff]  ;;  %s897_s12 = sld [smem:[#allocation2 + $0x1]] }
   0x8   :  { %314 = vmatpush.msra.mxu0 %v82_v1  ;;  %v178_v3 = vld [vmem:[%s2103_s1 + $0x3f0] sm:$0xff]  ;;  %v176_v7 = vld [vmem:[%s2103_s1 + $0x3e0] sm:$0xff] }
   0x9   :  { %v114_v5 = vld [vmem:[%s2103_s1 + $0x1f0] sm:$0xff]  ;;  %374 = vmatpush.msra.mxu3 %v178_v3  ;;  %355 = vmatpush.msra.mxu2 %v144_v2  ;;  %v112_v9 = vld [vmem:[%s2103_s1 + $0x1e0] sm:$0xff] }
   0xa   :  { %334 = vmatpush.msra.mxu1 %v114_v5  ;;  %v142_v6 = vld [vmem:[%s2103_s1 + $0x2d0] sm:$0xff]  ;;  %315 = vmatpush.msra.mxu0 %v80_v4  ;;  %v140_v11 = vld [vmem:[%s2103_s1 + $0x2c0] sm:$0xff] }
   0xb   :  { %v78_v8 = vld [vmem:[%s2103_s1 + $0xd0] sm:$0xff]  ;;  %375 = vmatpush.msra.mxu3 %v176_v7  ;;  %v76_v12 = vld [vmem:[%s2103_s1 + $0xc0] sm:$0xff]  ;;  %356 = vmatpush.msra.mxu2 %v142_v6 }
   0xc   :  { %v174_v10 = vld [vmem:[%s2103_s1 + $0x3d0] sm:$0xff]  ;;  %335 = vmatpush.msra.mxu1 %v112_v9  ;;  %316 = vmatpush.msra.mxu0 %v78_v8  ;;  %v172_v14 = vld [vmem:[%s2103_s1 + $0x3c0] sm:$0xff] }
   0xd   :  { %v110_v13 = vld [vmem:[%s2103_s1 + $0x1d0] sm:$0xff]  ;;  %v108_v15 = vld [vmem:[%s2103_s1 + $0x1c0] sm:$0xff]  ;;  %376 = vmatpush.msra.mxu3 %v174_v10  ;;  %357 = vmatpush.msra.mxu2 %v140_v11 }
   0xe   :  { %336 = vmatpush.msra.mxu1 %v110_v13  ;;  %v138_v16 = vld [vmem:[%s2103_s1 + $0x2b0] sm:$0xff]  ;;  %317 = vmatpush.msra.mxu0 %v76_v12  ;;  %v136_v20 = vld [vmem:[%s2103_s1 + $0x2a0] sm:$0xff] }
   0xf   :  { %v74_v17 = vld [vmem:[%s2103_s1 + $0xb0] sm:$0xff]  ;;  %377 = vmatpush.msra.mxu3 %v172_v14  ;;  %v72_v21 = vld [vmem:[%s2103_s1 + $0xa0] sm:$0xff]  ;;  %358 = vmatpush.msra.mxu2 %v138_v16 }
  0x10   :  { %v170_v18 = vld [vmem:[%s2103_s1 + $0x3b0] sm:$0xff]  ;;  %337 = vmatpush.msra.mxu1 %v108_v15  ;;  %318 = vmatpush.msra.mxu0 %v74_v17  ;;  %v168_v22 = vld [vmem:[%s2103_s1 + $0x3a0] sm:$0xff] }
  0x11   :  { %v106_v19 = vld [vmem:[%s2103_s1 + $0x1b0] sm:$0xff]  ;;  %v104_v23 = vld [vmem:[%s2103_s1 + $0x1a0] sm:$0xff]  ;;  %378 = vmatpush.msra.mxu3 %v170_v18  ;;  %359 = vmatpush.msra.mxu2 %v136_v20 }
  0x12   :  { %338 = vmatpush.msra.mxu1 %v106_v19  ;;  %v134_v24 = vld [vmem:[%s2103_s1 + $0x290] sm:$0xff]  ;;  %319 = vmatpush.msra.mxu0 %v72_v21  ;;  %v132_v28 = vld [vmem:[%s2103_s1 + $0x280] sm:$0xff] }
  0x13   :  { %v70_v25 = vld [vmem:[%s2103_s1 + $0x90] sm:$0xff]  ;;  %379 = vmatpush.msra.mxu3 %v168_v22  ;;  %v68_v29 = vld [vmem:[%s2103_s1 + $0x80] sm:$0xff]  ;;  %360 = vmatpush.msra.mxu2 %v134_v24 }
  0x14   :  { %v166_v26 = vld [vmem:[%s2103_s1 + $0x390] sm:$0xff]  ;;  %339 = vmatpush.msra.mxu1 %v104_v23  ;;  %320 = vmatpush.msra.mxu0 %v70_v25  ;;  %v164_v30 = vld [vmem:[%s2103_s1 + $0x380] sm:$0xff] }
  0x15   :  { %v102_v27 = vld [vmem:[%s2103_s1 + $0x190] sm:$0xff]  ;;  %v100_v31 = vld [vmem:[%s2103_s1 + $0x180] sm:$0xff]  ;;  %380 = vmatpush.msra.mxu3 %v166_v26  ;;  %361 = vmatpush.msra.mxu2 %v132_v28 }
  0x16   :  { %340 = vmatpush.msra.mxu1 %v102_v27  ;;  %v130_v32 = vld [vmem:[%s2103_s1 + $0x270] sm:$0xff]  ;;  %321 = vmatpush.msra.mxu0 %v68_v29  ;;  %v128_v36 = vld [vmem:[%s2103_s1 + $0x260] sm:$0xff] }
  0x17   :  { %v66_v33 = vld [vmem:[%s2103_s1 + $0x70] sm:$0xff]  ;;  %381 = vmatpush.msra.mxu3 %v164_v30  ;;  %v64_v37 = vld [vmem:[%s2103_s1 + $0x60] sm:$0xff]  ;;  %362 = vmatpush.msra.mxu2 %v130_v32 }
  0x18   :  { %v162_v34 = vld [vmem:[%s2103_s1 + $0x370] sm:$0xff]  ;;  %341 = vmatpush.msra.mxu1 %v100_v31  ;;  %322 = vmatpush.msra.mxu0 %v66_v33  ;;  %v160_v38 = vld [vmem:[%s2103_s1 + $0x360] sm:$0xff] }
  0x19   :  { %v98_v35 = vld [vmem:[%s2103_s1 + $0x170] sm:$0xff]  ;;  %v96_v39 = vld [vmem:[%s2103_s1 + $0x160] sm:$0xff]  ;;  %382 = vmatpush.msra.mxu3 %v162_v34  ;;  %363 = vmatpush.msra.mxu2 %v128_v36 }
  0x1a   :  { %342 = vmatpush.msra.mxu1 %v98_v35  ;;  %v126_v40 = vld [vmem:[%s2103_s1 + $0x250] sm:$0xff]  ;;  %323 = vmatpush.msra.mxu0 %v64_v37  ;;  %v124_v44 = vld [vmem:[%s2103_s1 + $0x240] sm:$0xff] }
  0x1b   :  { %v62_v41 = vld [vmem:[%s2103_s1 + $0x50] sm:$0xff]  ;;  %383 = vmatpush.msra.mxu3 %v160_v38  ;;  %v60_v45 = vld [vmem:[%s2103_s1 + $0x40] sm:$0xff]  ;;  %364 = vmatpush.msra.mxu2 %v126_v40 }
  0x1c   :  { %v158_v42 = vld [vmem:[%s2103_s1 + $0x350] sm:$0xff]  ;;  %343 = vmatpush.msra.mxu1 %v96_v39  ;;  %324 = vmatpush.msra.mxu0 %v62_v41  ;;  %v156_v46 = vld [vmem:[%s2103_s1 + $0x340] sm:$0xff] }
  0x1d   :  { %v94_v43 = vld [vmem:[%s2103_s1 + $0x150] sm:$0xff]  ;;  %v92_v47 = vld [vmem:[%s2103_s1 + $0x140] sm:$0xff]  ;;  %384 = vmatpush.msra.mxu3 %v158_v42  ;;  %365 = vmatpush.msra.mxu2 %v124_v44 }
  0x1e   :  { %344 = vmatpush.msra.mxu1 %v94_v43  ;;  %v122_v48 = vld [vmem:[%s2103_s1 + $0x230] sm:$0xff]  ;;  %325 = vmatpush.msra.mxu0 %v60_v45  ;;  %v120_v52 = vld [vmem:[%s2103_s1 + $0x220] sm:$0xff] }
  0x1f   :  { %v58_v49 = vld [vmem:[%s2103_s1 + $0x30] sm:$0xff]  ;;  %385 = vmatpush.msra.mxu3 %v156_v46  ;;  %v56_v53 = vld [vmem:[%s2103_s1 + $0x20] sm:$0xff]  ;;  %366 = vmatpush.msra.mxu2 %v122_v48 }
  0x20   :  { %v154_v50 = vld [vmem:[%s2103_s1 + $0x330] sm:$0xff]  ;;  %345 = vmatpush.msra.mxu1 %v92_v47  ;;  %326 = vmatpush.msra.mxu0 %v58_v49  ;;  %v152_v54 = vld [vmem:[%s2103_s1 + $0x320] sm:$0xff] }
  0x21   :  { %v90_v51 = vld [vmem:[%s2103_s1 + $0x130] sm:$0xff]  ;;  %v88_v55 = vld [vmem:[%s2103_s1 + $0x120] sm:$0xff]  ;;  %386 = vmatpush.msra.mxu3 %v154_v50  ;;  %367 = vmatpush.msra.mxu2 %v120_v52 }
  0x22   :  { %346 = vmatpush.msra.mxu1 %v90_v51  ;;  %v118_v56 = vld [vmem:[%s2103_s1 + $0x210] sm:$0xff]  ;;  %327 = vmatpush.msra.mxu0 %v56_v53  ;;  %v116_v60 = vld [vmem:[%s2103_s1 + $0x200] sm:$0xff] }
  0x23   :  { %v54_v57 = vld [vmem:[%s2103_s1 + $0x10] sm:$0xff]  ;;  %387 = vmatpush.msra.mxu3 %v152_v54  ;;  %v52_v61 = vld [vmem:[%s2103_s1] sm:$0xff]  ;;  %368 = vmatpush.msra.mxu2 %v118_v56 }
  0x24   :  { %v150_v58 = vld [vmem:[%s2103_s1 + $0x310] sm:$0xff]  ;;  %347 = vmatpush.msra.mxu1 %v88_v55  ;;  %328 = vmatpush.msra.mxu0 %v54_v57  ;;  %v148_v63 = vld [vmem:[%s2103_s1 + $0x300] sm:$0xff] }
  0x25   :  { %v86_v59 = vld [vmem:[%s2103_s1 + $0x110] sm:$0xff]  ;;  %388 = vmatpush.msra.mxu3 %v150_v58  ;;  %369 = vmatpush.msra.mxu2 %v116_v60  ;;  %v272_v2 = vld [vmem:[%s2103_s1 + $0x6e0] sm:$0xff] }
  0x26   :  { %v274_v62 = vld [vmem:[%s2103_s1 + $0x6f0] sm:$0xff]  ;;  %348 = vmatpush.msra.mxu1 %v86_v59  ;;  %329 = vmatpush.msra.mxu0 %v52_v61  ;;  %v84_v3 = vld [vmem:[%s2103_s1 + $0x100] sm:$0xff] }
  0x27   :  { %v210_v0 = vld [vmem:[%s2103_s1 + $0x4f0] sm:$0xff]  ;;  %434 = vmatpush.msrb.mxu2 %v274_v62  ;;  %389 = vmatpush.msra.mxu3 %v148_v63  ;;  %v208_v4 = vld [vmem:[%s2103_s1 + $0x4e0] sm:$0xff]  ;;  %v1351_v62 = vld [vmem:[%s2102_s0 + $0x18] sm:$0xff] }
  0x28   :  { %v306_v1 = vld [vmem:[%s2103_s1 + $0x7f0] sm:$0xff]  ;;  %394 = vmatpush.msrb.mxu0 %v210_v0  ;;  %v304_v7 = vld [vmem:[%s2103_s1 + $0x7e0] sm:$0xff]  ;;  %349 = vmatpush.msra.mxu1 %v84_v3  ;;  %v147_v63 = vld [vmem:[%s2103_s1 + $0x2f8] sm:$0xff] }
  0x29   :  { %v242_v5 = vld [vmem:[%s2103_s1 + $0x5f0] sm:$0xff]  ;;  %454 = vmatpush.msrb.mxu3 %v306_v1  ;;  %435 = vmatpush.msrb.mxu2 %v272_v2  ;;  %v240_v9 = vld [vmem:[%s2103_s1 + $0x5e0] sm:$0xff]  ;;  %v1369_v3 = vld [vmem:[%s2102_s0 + $0x8] sm:$0xff] }
  0x2a   :  { %v270_v6 = vld [vmem:[%s2103_s1 + $0x6d0] sm:$0xff]  ;;  %395 = vmatpush.msrb.mxu0 %v208_v4  ;;  %414 = vmatpush.msrb.mxu1 %v242_v5  ;;  %v268_v10 = vld [vmem:[%s2103_s1 + $0x6c0] sm:$0xff]  ;;  %v83_v4 = vld [vmem:[%s2103_s1 + $0xf8] sm:$0xff] }
  0x2b   :  { %v206_v8 = vld [vmem:[%s2103_s1 + $0x4d0] sm:$0xff]  ;;  %436 = vmatpush.msrb.mxu2 %v270_v6  ;;  %455 = vmatpush.msrb.mxu3 %v304_v7  ;;  %v204_v12 = vld [vmem:[%s2103_s1 + $0x4c0] sm:$0xff]  ;;  %v145_v5 = vld [vmem:[%s2103_s1 + $0x2e8] sm:$0xff] }
  0x2c   :  { %v302_v11 = vld [vmem:[%s2103_s1 + $0x7d0] sm:$0xff]  ;;  %396 = vmatpush.msrb.mxu0 %v206_v8  ;;  %415 = vmatpush.msrb.mxu1 %v240_v9  ;;  %v300_v15 = vld [vmem:[%s2103_s1 + $0x7c0] sm:$0xff]  ;;  %v179_v6 = vld [vmem:[%s2103_s1 + $0x3f8] sm:$0xff] }
  0x2d   :  { %v238_v13 = vld [vmem:[%s2103_s1 + $0x5d0] sm:$0xff]  ;;  %437 = vmatpush.msrb.mxu2 %v268_v10  ;;  %456 = vmatpush.msrb.mxu3 %v302_v11  ;;  %v236_v17 = vld [vmem:[%s2103_s1 + $0x5c0] sm:$0xff]  ;;  %v81_v8 = vld [vmem:[%s2103_s1 + $0xe8] sm:$0xff] }
  0x2e   :  { %v266_v14 = vld [vmem:[%s2103_s1 + $0x6b0] sm:$0xff]  ;;  %397 = vmatpush.msrb.mxu0 %v204_v12  ;;  %416 = vmatpush.msrb.mxu1 %v238_v13  ;;  %v264_v18 = vld [vmem:[%s2103_s1 + $0x6a0] sm:$0xff]  ;;  %v115_v9 = vld [vmem:[%s2103_s1 + $0x1f8] sm:$0xff] }
  0x2f   :  { %v202_v16 = vld [vmem:[%s2103_s1 + $0x4b0] sm:$0xff]  ;;  %438 = vmatpush.msrb.mxu2 %v266_v14  ;;  %457 = vmatpush.msrb.mxu3 %v300_v15  ;;  %v200_v20 = vld [vmem:[%s2103_s1 + $0x4a0] sm:$0xff]  ;;  %v143_v10 = vld [vmem:[%s2103_s1 + $0x2d8] sm:$0xff] }
  0x30   :  { %v298_v19 = vld [vmem:[%s2103_s1 + $0x7b0] sm:$0xff]  ;;  %398 = vmatpush.msrb.mxu0 %v202_v16  ;;  %417 = vmatpush.msrb.mxu1 %v236_v17  ;;  %v296_v23 = vld [vmem:[%s2103_s1 + $0x7a0] sm:$0xff]  ;;  %v177_v11 = vld [vmem:[%s2103_s1 + $0x3e8] sm:$0xff] }
  0x31   :  { %v234_v21 = vld [vmem:[%s2103_s1 + $0x5b0] sm:$0xff]  ;;  %439 = vmatpush.msrb.mxu2 %v264_v18  ;;  %458 = vmatpush.msrb.mxu3 %v298_v19  ;;  %v232_v25 = vld [vmem:[%s2103_s1 + $0x5a0] sm:$0xff]  ;;  %v79_v13 = vld [vmem:[%s2103_s1 + $0xd8] sm:$0xff] }
  0x32   :  { %v262_v22 = vld [vmem:[%s2103_s1 + $0x690] sm:$0xff]  ;;  %399 = vmatpush.msrb.mxu0 %v200_v20  ;;  %418 = vmatpush.msrb.mxu1 %v234_v21  ;;  %v260_v26 = vld [vmem:[%s2103_s1 + $0x680] sm:$0xff]  ;;  %v113_v14 = vld [vmem:[%s2103_s1 + $0x1e8] sm:$0xff] }
  0x33   :  { %v198_v24 = vld [vmem:[%s2103_s1 + $0x490] sm:$0xff]  ;;  %440 = vmatpush.msrb.mxu2 %v262_v22  ;;  %459 = vmatpush.msrb.mxu3 %v296_v23  ;;  %v196_v28 = vld [vmem:[%s2103_s1 + $0x480] sm:$0xff]  ;;  %v141_v15 = vld [vmem:[%s2103_s1 + $0x2c8] sm:$0xff] }
  0x34   :  { %v294_v27 = vld [vmem:[%s2103_s1 + $0x790] sm:$0xff]  ;;  %400 = vmatpush.msrb.mxu0 %v198_v24  ;;  %419 = vmatpush.msrb.mxu1 %v232_v25  ;;  %v292_v31 = vld [vmem:[%s2103_s1 + $0x780] sm:$0xff]  ;;  %v175_v16 = vld [vmem:[%s2103_s1 + $0x3d8] sm:$0xff] }
  0x35   :  { %v230_v29 = vld [vmem:[%s2103_s1 + $0x590] sm:$0xff]  ;;  %441 = vmatpush.msrb.mxu2 %v260_v26  ;;  %460 = vmatpush.msrb.mxu3 %v294_v27  ;;  %v228_v33 = vld [vmem:[%s2103_s1 + $0x580] sm:$0xff]  ;;  %v1423_v18 = vld [vmem:[%s2102_s0 + $0x38] sm:$0xff] }
  0x36   :  { %v258_v30 = vld [vmem:[%s2103_s1 + $0x670] sm:$0xff]  ;;  %401 = vmatpush.msrb.mxu0 %v196_v28  ;;  %420 = vmatpush.msrb.mxu1 %v230_v29  ;;  %v256_v34 = vld [vmem:[%s2103_s1 + $0x660] sm:$0xff]  ;;  %v77_v19 = vld [vmem:[%s2103_s1 + $0xc8] sm:$0xff] }
  0x37   :  { %v194_v32 = vld [vmem:[%s2103_s1 + $0x470] sm:$0xff]  ;;  %442 = vmatpush.msrb.mxu2 %v258_v30  ;;  %461 = vmatpush.msrb.mxu3 %v292_v31  ;;  %v192_v36 = vld [vmem:[%s2103_s1 + $0x460] sm:$0xff]  ;;  %v111_v20 = vld [vmem:[%s2103_s1 + $0x1d8] sm:$0xff] }
  0x38   :  { %v290_v35 = vld [vmem:[%s2103_s1 + $0x770] sm:$0xff]  ;;  %402 = vmatpush.msrb.mxu0 %v194_v32  ;;  %421 = vmatpush.msrb.mxu1 %v228_v33  ;;  %v288_v39 = vld [vmem:[%s2103_s1 + $0x760] sm:$0xff]  ;;  %v139_v21 = vld [vmem:[%s2103_s1 + $0x2b8] sm:$0xff] }
  0x39   :  { %v226_v37 = vld [vmem:[%s2103_s1 + $0x570] sm:$0xff]  ;;  %443 = vmatpush.msrb.mxu2 %v256_v34  ;;  %462 = vmatpush.msrb.mxu3 %v290_v35  ;;  %v224_v41 = vld [vmem:[%s2103_s1 + $0x560] sm:$0xff]  ;;  %v173_v22 = vld [vmem:[%s2103_s1 + $0x3c8] sm:$0xff] }
  0x3a   :  { %v254_v38 = vld [vmem:[%s2103_s1 + $0x650] sm:$0xff]  ;;  %403 = vmatpush.msrb.mxu0 %v192_v36  ;;  %422 = vmatpush.msrb.mxu1 %v226_v37  ;;  %v252_v42 = vld [vmem:[%s2103_s1 + $0x640] sm:$0xff]  ;;  %v1441_v23 = vld [vmem:[%s2102_s0 + $0x28] sm:$0xff] }
  0x3b   :  { %v190_v40 = vld [vmem:[%s2103_s1 + $0x450] sm:$0xff]  ;;  %444 = vmatpush.msrb.mxu2 %v254_v38  ;;  %463 = vmatpush.msrb.mxu3 %v288_v39  ;;  %v188_v44 = vld [vmem:[%s2103_s1 + $0x440] sm:$0xff]  ;;  %v75_v24 = vld [vmem:[%s2103_s1 + $0xb8] sm:$0xff] }
  0x3c   :  { %v286_v43 = vld [vmem:[%s2103_s1 + $0x750] sm:$0xff]  ;;  %404 = vmatpush.msrb.mxu0 %v190_v40  ;;  %423 = vmatpush.msrb.mxu1 %v224_v41  ;;  %v284_v47 = vld [vmem:[%s2103_s1 + $0x740] sm:$0xff]  ;;  %v109_v25 = vld [vmem:[%s2103_s1 + $0x1c8] sm:$0xff] }
  0x3d   :  { %v222_v45 = vld [vmem:[%s2103_s1 + $0x550] sm:$0xff]  ;;  %445 = vmatpush.msrb.mxu2 %v252_v42  ;;  %464 = vmatpush.msrb.mxu3 %v286_v43  ;;  %v220_v49 = vld [vmem:[%s2103_s1 + $0x540] sm:$0xff]  ;;  %v137_v26 = vld [vmem:[%s2103_s1 + $0x2a8] sm:$0xff] }
  0x3e   :  { %v250_v46 = vld [vmem:[%s2103_s1 + $0x630] sm:$0xff]  ;;  %405 = vmatpush.msrb.mxu0 %v188_v44  ;;  %424 = vmatpush.msrb.mxu1 %v222_v45  ;;  %v248_v50 = vld [vmem:[%s2103_s1 + $0x620] sm:$0xff]  ;;  %v171_v27 = vld [vmem:[%s2103_s1 + $0x3b8] sm:$0xff] }
  0x3f   :  { %v186_v48 = vld [vmem:[%s2103_s1 + $0x430] sm:$0xff]  ;;  %446 = vmatpush.msrb.mxu2 %v250_v46  ;;  %465 = vmatpush.msrb.mxu3 %v284_v47  ;;  %v184_v52 = vld [vmem:[%s2103_s1 + $0x420] sm:$0xff]  ;;  %v73_v28 = vld [vmem:[%s2103_s1 + $0xa8] sm:$0xff] }
  0x40   :  { %v282_v51 = vld [vmem:[%s2103_s1 + $0x730] sm:$0xff]  ;;  %406 = vmatpush.msrb.mxu0 %v186_v48  ;;  %425 = vmatpush.msrb.mxu1 %v220_v49  ;;  %v280_v55 = vld [vmem:[%s2103_s1 + $0x720] sm:$0xff]  ;;  %v107_v29 = vld [vmem:[%s2103_s1 + $0x1b8] sm:$0xff] }
  0x41   :  { %v218_v53 = vld [vmem:[%s2103_s1 + $0x530] sm:$0xff]  ;;  %447 = vmatpush.msrb.mxu2 %v248_v50  ;;  %466 = vmatpush.msrb.mxu3 %v282_v51  ;;  %v216_v58 = vld [vmem:[%s2103_s1 + $0x520] sm:$0xff]  ;;  %v135_v30 = vld [vmem:[%s2103_s1 + $0x298] sm:$0xff] }
  0x42   :  { %v246_v54 = vld [vmem:[%s2103_s1 + $0x610] sm:$0xff]  ;;  %407 = vmatpush.msrb.mxu0 %v184_v52  ;;  %426 = vmatpush.msrb.mxu1 %v218_v53  ;;  %v244_v59 = vld [vmem:[%s2103_s1 + $0x600] sm:$0xff]  ;;  %v169_v31 = vld [vmem:[%s2103_s1 + $0x3a8] sm:$0xff] }
  0x43   :  { %v1328_v56 = vld [vmem:[%s2102_s0 + $0x10] sm:$0xff]  ;;  %448 = vmatpush.msrb.mxu2 %v246_v54  ;;  %467 = vmatpush.msrb.mxu3 %v280_v55  ;;  %v1345_v61 = vld [vmem:[%s2102_s0] sm:$0xff]  ;;  %v71_v32 = vld [vmem:[%s2103_s1 + $0x98] sm:$0xff] }
  0x44   :  { %v182_v57 = vld [vmem:[%s2103_s1 + $0x410] sm:$0xff]  ;;  %370 = vmatmul.f32.vlgmr.msra.gmra.mxu2 %v1328_v56  ;;  %427 = vmatpush.msrb.mxu1 %v216_v58  ;;  %v180_v0 = vld [vmem:[%s2103_s1 + $0x400] sm:$0xff]  ;;  %v105_v33 = vld [vmem:[%s2103_s1 + $0x1a8] sm:$0xff] }
  0x45   :  { %v278_v60 = vld [vmem:[%s2103_s1 + $0x710] sm:$0xff]  ;;  %408 = vmatpush.msrb.mxu0 %v182_v57  ;;  %449 = vmatpush.msrb.mxu2 %v244_v59  ;;  %v276_v2 = vld [vmem:[%s2103_s1 + $0x700] sm:$0xff]  ;;  %v133_v34 = vld [vmem:[%s2103_s1 + $0x288] sm:$0xff] }
  0x46   :  { %v214_v1 = vld [vmem:[%s2103_s1 + $0x510] sm:$0xff]  ;;  %468 = vmatpush.msrb.mxu3 %v278_v60  ;;  %330 = vmatmul.f32.vlgmr.msra.gmra.mxu0 %v1345_v61  ;;  %v212_v7 = vld [vmem:[%s2103_s1 + $0x500] sm:$0xff]  ;;  %v167_v35 = vld [vmem:[%s2103_s1 + $0x398] sm:$0xff] }
  0x47   :  { %390 = vmatmul.f32.vlgmr.msra.gmra.mxu3 %v1351_v62  ;;  %514 = vmatpush.msra.mxu2 %v147_v63  ;;  %v1400_v12 = vld [vmem:[%s2102_s0 + $0x30] sm:$0xff]  ;;  %v1417_v17 = vld [vmem:[%s2102_s0 + $0x20] sm:$0xff]  ;;  %v69_v36 = vld [vmem:[%s2103_s1 + $0x88] sm:$0xff] }
  0x48   :  { %409 = vmatpush.msrb.mxu0 %v180_v0  ;;  %428 = vmatpush.msrb.mxu1 %v214_v1  ;;  %v103_v37 = vld [vmem:[%s2103_s1 + $0x198] sm:$0xff]  ;;  %v165_v39 = vld [vmem:[%s2103_s1 + $0x388] sm:$0xff] }
  0x49   :  { %469 = vmatpush.msrb.mxu3 %v276_v2  ;;  %350 = vmatmul.f32.vlgmr.msra.gmra.mxu1 %v1369_v3  ;;  %v131_v38 = vld [vmem:[%s2103_s1 + $0x278] sm:$0xff]  ;;  %v101_v41 = vld [vmem:[%s2103_s1 + $0x188] sm:$0xff] }
  0x4a   :  { %474 = vmatpush.msra.mxu0 %v83_v4  ;;  %515 = vmatpush.msra.mxu2 %v145_v5  ;;  %v67_v40 = vld [vmem:[%s2103_s1 + $0x78] sm:$0xff]  ;;  %v129_v42 = vld [vmem:[%s2103_s1 + $0x268] sm:$0xff] }
  0x4b   :  { %534 = vmatpush.msra.mxu3 %v179_v6  ;;  %429 = vmatpush.msrb.mxu1 %v212_v7  ;;  %v163_v43 = vld [vmem:[%s2103_s1 + $0x378] sm:$0xff]  ;;  %v65_v44 = vld [vmem:[%s2103_s1 + $0x68] sm:$0xff] }
  0x4c   :  { %475 = vmatpush.msra.mxu0 %v81_v8  ;;  %516 = vmatpush.msra.mxu2 %v143_v10  ;;  %v99_v45 = vld [vmem:[%s2103_s1 + $0x178] sm:$0xff]  ;;  %v161_v47 = vld [vmem:[%s2103_s1 + $0x368] sm:$0xff] }
  0x4d   :  { %494 = vmatpush.msra.mxu1 %v115_v9  ;;  %535 = vmatpush.msra.mxu3 %v177_v11  ;;  %v127_v46 = vld [vmem:[%s2103_s1 + $0x258] sm:$0xff]  ;;  %v97_v49 = vld [vmem:[%s2103_s1 + $0x168] sm:$0xff] }
  0x4e   :  { %450 = vmatmul.f32.vlgmr.msrb.gmra.mxu2 %v1400_v12  ;;  %476 = vmatpush.msra.mxu0 %v79_v13  ;;  %v63_v48 = vld [vmem:[%s2103_s1 + $0x58] sm:$0xff]  ;;  %v125_v50 = vld [vmem:[%s2103_s1 + $0x248] sm:$0xff] }
  0x4f   :  { %495 = vmatpush.msra.mxu1 %v113_v14  ;;  %517 = vmatpush.msra.mxu2 %v141_v15  ;;  %v159_v51 = vld [vmem:[%s2103_s1 + $0x358] sm:$0xff]  ;;  %v61_v52 = vld [vmem:[%s2103_s1 + $0x48] sm:$0xff] }
  0x50   :  { %536 = vmatpush.msra.mxu3 %v175_v16  ;;  %410 = vmatmul.f32.vlgmr.msrb.gmra.mxu0 %v1417_v17  ;;  %v95_v53 = vld [vmem:[%s2103_s1 + $0x158] sm:$0xff]  ;;  %v157_v55 = vld [vmem:[%s2103_s1 + $0x348] sm:$0xff] }
  0x51   :  { %470 = vmatmul.f32.vlgmr.msrb.gmra.mxu3 %v1423_v18  ;;  %477 = vmatpush.msra.mxu0 %v77_v19  ;;  %v123_v54 = vld [vmem:[%s2103_s1 + $0x238] sm:$0xff]  ;;  %v93_v58 = vld [vmem:[%s2103_s1 + $0x148] sm:$0xff] }
  0x52   :  { %496 = vmatpush.msra.mxu1 %v111_v20  ;;  %518 = vmatpush.msra.mxu2 %v139_v21  ;;  %v59_v57 = vld [vmem:[%s2103_s1 + $0x38] sm:$0xff]  ;;  %v121_v59 = vld [vmem:[%s2103_s1 + $0x228] sm:$0xff] }
  0x53   :  { %537 = vmatpush.msra.mxu3 %v173_v22  ;;  %430 = vmatmul.f32.vlgmr.msrb.gmra.mxu1 %v1441_v23  ;;  %v155_v60 = vld [vmem:[%s2103_s1 + $0x338] sm:$0xff]  ;;  %v57_v63 = vld [vmem:[%s2103_s1 + $0x28] sm:$0xff] }
  0x54   :  { %478 = vmatpush.msra.mxu0 %v75_v24  ;;  %497 = vmatpush.msra.mxu1 %v109_v25  ;;  %v91_v0 = vld [vmem:[%s2103_s1 + $0x138] sm:$0xff]  ;;  %v153_v2 = vld [vmem:[%s2103_s1 + $0x328] sm:$0xff] }
  0x55   :  { %519 = vmatpush.msra.mxu2 %v137_v26  ;;  %538 = vmatpush.msra.mxu3 %v171_v27  ;;  %v119_v1 = vld [vmem:[%s2103_s1 + $0x218] sm:$0xff]  ;;  %v89_v5 = vld [vmem:[%s2103_s1 + $0x128] sm:$0xff] }
  0x56   :  { %479 = vmatpush.msra.mxu0 %v73_v28  ;;  %498 = vmatpush.msra.mxu1 %v107_v29  ;;  %v55_v4 = vld [vmem:[%s2103_s1 + $0x18] sm:$0xff]  ;;  %v117_v6 = vld [vmem:[%s2103_s1 + $0x208] sm:$0xff] }
  0x57   :  { %520 = vmatpush.msra.mxu2 %v135_v30  ;;  %539 = vmatpush.msra.mxu3 %v169_v31  ;;  %v151_v7 = vld [vmem:[%s2103_s1 + $0x318] sm:$0xff]  ;;  %v53_v9 = vld [vmem:[%s2103_s1 + $0x8] sm:$0xff] }
  0x58   :  { %480 = vmatpush.msra.mxu0 %v71_v32  ;;  %499 = vmatpush.msra.mxu1 %v105_v33  ;;  %v275_v8 = vld [vmem:[%s2103_s1 + $0x6f8] sm:$0xff]  ;;  %v149_v11 = vld [vmem:[%s2103_s1 + $0x308] sm:$0xff] }
  0x59   :  { %521 = vmatpush.msra.mxu2 %v133_v34  ;;  %540 = vmatpush.msra.mxu3 %v167_v35  ;;  %v87_v10 = vld [vmem:[%s2103_s1 + $0x118] sm:$0xff]  ;;  %v273_v14 = vld [vmem:[%s2103_s1 + $0x6e8] sm:$0xff] }
  0x5a   :  { %481 = vmatpush.msra.mxu0 %v69_v36  ;;  %500 = vmatpush.msra.mxu1 %v103_v37  ;;  %v211_v13 = vld [vmem:[%s2103_s1 + $0x4f8] sm:$0xff]  ;;  %v85_v16 = vld [vmem:[%s2103_s1 + $0x108] sm:$0xff] }
  0x5b   :  { %522 = vmatpush.msra.mxu2 %v131_v38  ;;  %541 = vmatpush.msra.mxu3 %v165_v39  ;;  %v307_v15 = vld [vmem:[%s2103_s1 + $0x7f8] sm:$0xff]  ;;  %v209_v19 = vld [vmem:[%s2103_s1 + $0x4e8] sm:$0xff] }
  0x5c   :  { %482 = vmatpush.msra.mxu0 %v67_v40  ;;  %501 = vmatpush.msra.mxu1 %v101_v41  ;;  %v243_v20 = vld [vmem:[%s2103_s1 + $0x5f8] sm:$0xff]  ;;  %v305_v22 = vld [vmem:[%s2103_s1 + $0x7e8] sm:$0xff] }
  0x5d   :  { %523 = vmatpush.msra.mxu2 %v129_v42  ;;  %542 = vmatpush.msra.mxu3 %v163_v43  ;;  %v271_v21 = vld [vmem:[%s2103_s1 + $0x6d8] sm:$0xff]  ;;  %v241_v25 = vld [vmem:[%s2103_s1 + $0x5e8] sm:$0xff] }
  0x5e   :  { %483 = vmatpush.msra.mxu0 %v65_v44  ;;  %502 = vmatpush.msra.mxu1 %v99_v45  ;;  %v207_v24 = vld [vmem:[%s2103_s1 + $0x4d8] sm:$0xff]  ;;  %v269_v26 = vld [vmem:[%s2103_s1 + $0x6c8] sm:$0xff] }
  0x5f   :  { %524 = vmatpush.msra.mxu2 %v127_v46  ;;  %543 = vmatpush.msra.mxu3 %v161_v47  ;;  %v303_v27 = vld [vmem:[%s2103_s1 + $0x7d8] sm:$0xff]  ;;  %v205_v28 = vld [vmem:[%s2103_s1 + $0x4c8] sm:$0xff] }
  0x60   :  { %484 = vmatpush.msra.mxu0 %v63_v48  ;;  %503 = vmatpush.msra.mxu1 %v97_v49  ;;  %v239_v29 = vld [vmem:[%s2103_s1 + $0x5d8] sm:$0xff]  ;;  %v301_v31 = vld [vmem:[%s2103_s1 + $0x7c8] sm:$0xff] }
  0x61   :  { %525 = vmatpush.msra.mxu2 %v125_v50  ;;  %544 = vmatpush.msra.mxu3 %v159_v51  ;;  %v267_v30 = vld [vmem:[%s2103_s1 + $0x6b8] sm:$0xff]  ;;  %v237_v33 = vld [vmem:[%s2103_s1 + $0x5c8] sm:$0xff] }
  0x62   :  { %485 = vmatpush.msra.mxu0 %v61_v52  ;;  %504 = vmatpush.msra.mxu1 %v95_v53  ;;  %v203_v32 = vld [vmem:[%s2103_s1 + $0x4b8] sm:$0xff]  ;;  %v265_v34 = vld [vmem:[%s2103_s1 + $0x6a8] sm:$0xff] }
  0x63   :  { %526 = vmatpush.msra.mxu2 %v123_v54  ;;  %545 = vmatpush.msra.mxu3 %v157_v55  ;;  %v299_v35 = vld [vmem:[%s2103_s1 + $0x7b8] sm:$0xff]  ;;  %v201_v36 = vld [vmem:[%s2103_s1 + $0x4a8] sm:$0xff] }
  0x64   :  { %486 = vmatpush.msra.mxu0 %v59_v57  ;;  %505 = vmatpush.msra.mxu1 %v93_v58  ;;  %v235_v37 = vld [vmem:[%s2103_s1 + $0x5b8] sm:$0xff]  ;;  %v297_v39 = vld [vmem:[%s2103_s1 + $0x7a8] sm:$0xff] }
  0x65   :  { %527 = vmatpush.msra.mxu2 %v121_v59  ;;  %546 = vmatpush.msra.mxu3 %v155_v60  ;;  %v263_v38 = vld [vmem:[%s2103_s1 + $0x698] sm:$0xff]  ;;  %v233_v41 = vld [vmem:[%s2103_s1 + $0x5a8] sm:$0xff] }
  0x66   :  { %487 = vmatpush.msra.mxu0 %v57_v63  ;;  %506 = vmatpush.msra.mxu1 %v91_v0  ;;  %v199_v40 = vld [vmem:[%s2103_s1 + $0x498] sm:$0xff]  ;;  %v261_v42 = vld [vmem:[%s2103_s1 + $0x688] sm:$0xff] }
  0x67   :  { %528 = vmatpush.msra.mxu2 %v119_v1  ;;  %547 = vmatpush.msra.mxu3 %v153_v2  ;;  %v295_v43 = vld [vmem:[%s2103_s1 + $0x798] sm:$0xff]  ;;  %v197_v44 = vld [vmem:[%s2103_s1 + $0x488] sm:$0xff] }
  0x68   :  { %488 = vmatpush.msra.mxu0 %v55_v4  ;;  %507 = vmatpush.msra.mxu1 %v89_v5  ;;  %v231_v45 = vld [vmem:[%s2103_s1 + $0x598] sm:$0xff]  ;;  %v293_v47 = vld [vmem:[%s2103_s1 + $0x788] sm:$0xff] }
  0x69   :  { %529 = vmatpush.msra.mxu2 %v117_v6  ;;  %548 = vmatpush.msra.mxu3 %v151_v7  ;;  %v259_v46 = vld [vmem:[%s2103_s1 + $0x678] sm:$0xff]  ;;  %v229_v49 = vld [vmem:[%s2103_s1 + $0x588] sm:$0xff] }
  0x6a   :  { %489 = vmatpush.msra.mxu0 %v53_v9  ;;  %508 = vmatpush.msra.mxu1 %v87_v10  ;;  %v195_v48 = vld [vmem:[%s2103_s1 + $0x478] sm:$0xff]  ;;  %v257_v50 = vld [vmem:[%s2103_s1 + $0x668] sm:$0xff] }
  0x6b   :  { %594 = vmatpush.msrb.mxu2 %v275_v8  ;;  %549 = vmatpush.msra.mxu3 %v149_v11  ;;  %v291_v51 = vld [vmem:[%s2103_s1 + $0x778] sm:$0xff]  ;;  %v193_v52 = vld [vmem:[%s2103_s1 + $0x468] sm:$0xff] }
  0x6c   :  { %554 = vmatpush.msrb.mxu0 %v211_v13  ;;  %509 = vmatpush.msra.mxu1 %v85_v16  ;;  %v227_v53 = vld [vmem:[%s2103_s1 + $0x578] sm:$0xff]  ;;  %v289_v55 = vld [vmem:[%s2103_s1 + $0x768] sm:$0xff] }
  0x6d   :  { %595 = vmatpush.msrb.mxu2 %v273_v14  ;;  %614 = vmatpush.msrb.mxu3 %v307_v15  ;;  %v255_v54 = vld [vmem:[%s2103_s1 + $0x658] sm:$0xff]  ;;  %v225_v58 = vld [vmem:[%s2103_s1 + $0x568] sm:$0xff] }
  0x6e   :  { %555 = vmatpush.msrb.mxu0 %v209_v19  ;;  %574 = vmatpush.msrb.mxu1 %v243_v20  ;;  %v191_v57 = vld [vmem:[%s2103_s1 + $0x458] sm:$0xff]  ;;  %v253_v59 = vld [vmem:[%s2103_s1 + $0x648] sm:$0xff]  ;;  %v671_v19 = vld [vmem:[%s2105_s3 + $0xf0] sm:$0xff] }
  0x6f   :  { %596 = vmatpush.msrb.mxu2 %v271_v21  ;;  %615 = vmatpush.msrb.mxu3 %v305_v22  ;;  %v287_v60 = vld [vmem:[%s2103_s1 + $0x758] sm:$0xff]  ;;  %v189_v63 = vld [vmem:[%s2103_s1 + $0x448] sm:$0xff]  ;;  %v667_v22 = vld [vmem:[%s2105_s3 + $0xd0] sm:$0xff] }
  0x70   :  { %556 = vmatpush.msrb.mxu0 %v207_v24  ;;  %575 = vmatpush.msrb.mxu1 %v241_v25  ;;  %v223_v0 = vld [vmem:[%s2103_s1 + $0x558] sm:$0xff]  ;;  %v285_v2 = vld [vmem:[%s2103_s1 + $0x748] sm:$0xff]  ;;  %v663_v24 = vld [vmem:[%s2105_s3 + $0xb0] sm:$0xff] }
  0x71   :  { %597 = vmatpush.msrb.mxu2 %v269_v26  ;;  %616 = vmatpush.msrb.mxu3 %v303_v27  ;;  %v251_v1 = vld [vmem:[%s2103_s1 + $0x638] sm:$0xff]  ;;  %v221_v5 = vld [vmem:[%s2103_s1 + $0x548] sm:$0xff]  ;;  %v661_v26 = vld [vmem:[%s2105_s3 + $0xa0] sm:$0xff] }
  0x72   :  { %557 = vmatpush.msrb.mxu0 %v205_v28  ;;  %576 = vmatpush.msrb.mxu1 %v239_v29  ;;  %v187_v4 = vld [vmem:[%s2103_s1 + $0x438] sm:$0xff]  ;;  %v249_v6 = vld [vmem:[%s2103_s1 + $0x628] sm:$0xff]  ;;  %v659_v28 = vld [vmem:[%s2105_s3 + $0x90] sm:$0xff] }
  0x73   :  { %598 = vmatpush.msrb.mxu2 %v267_v30  ;;  %617 = vmatpush.msrb.mxu3 %v301_v31  ;;  %v185_v7 = vld [vmem:[%s2103_s1 + $0x428] sm:$0xff]  ;;  %v219_v8 = vld [vmem:[%s2103_s1 + $0x538] sm:$0xff]  ;;  %v657_v30 = vld [vmem:[%s2105_s3 + $0x80] sm:$0xff] }
  0x74   :  { %558 = vmatpush.msrb.mxu0 %v203_v32  ;;  %577 = vmatpush.msrb.mxu1 %v237_v33  ;;  %v281_v9 = vld [vmem:[%s2103_s1 + $0x728] sm:$0xff]  ;;  %v279_v13 = vld [vmem:[%s2103_s1 + $0x718] sm:$0xff]  ;;  %v655_v32 = vld [vmem:[%s2105_s3 + $0x70] sm:$0xff] }
  0x75   :  { %599 = vmatpush.msrb.mxu2 %v265_v34  ;;  %618 = vmatpush.msrb.mxu3 %v299_v35  ;;  %v217_v10 = vld [vmem:[%s2103_s1 + $0x528] sm:$0xff]  ;;  %v215_v14 = vld [vmem:[%s2103_s1 + $0x518] sm:$0xff]  ;;  %v653_v34 = vld [vmem:[%s2105_s3 + $0x60] sm:$0xff] }
  0x76   :  { %559 = vmatpush.msrb.mxu0 %v201_v36  ;;  %578 = vmatpush.msrb.mxu1 %v235_v37  ;;  %v245_v11 = vld [vmem:[%s2103_s1 + $0x608] sm:$0xff]  ;;  %v672_v20 = vld [vmem:[%s2105_s3 + $0xf8] sm:$0xff]  ;;  %v651_v36 = vld [vmem:[%s2105_s3 + $0x50] sm:$0xff] }
  0x77   :  { %600 = vmatpush.msrb.mxu2 %v263_v38  ;;  %619 = vmatpush.msrb.mxu3 %v297_v39  ;;  %v277_v15 = vld [vmem:[%s2103_s1 + $0x708] sm:$0xff]  ;;  %v664_v25 = vld [vmem:[%s2105_s3 + $0xb8] sm:$0xff]  ;;  %v649_v38 = vld [vmem:[%s2105_s3 + $0x40] sm:$0xff] }
  0x78   :  { %560 = vmatpush.msrb.mxu0 %v199_v40  ;;  %579 = vmatpush.msrb.mxu1 %v233_v41  ;;  %v213_v16 = vld [vmem:[%s2103_s1 + $0x508] sm:$0xff]  ;;  %v660_v29 = vld [vmem:[%s2105_s3 + $0x98] sm:$0xff]  ;;  %v647_v40 = vld [vmem:[%s2105_s3 + $0x30] sm:$0xff] }
  0x79   :  { %601 = vmatpush.msrb.mxu2 %v261_v42  ;;  %620 = vmatpush.msrb.mxu3 %v295_v43  ;;  %v670_v21 = vld [vmem:[%s2105_s3 + $0xe8] sm:$0xff]  ;;  %v656_v33 = vld [vmem:[%s2105_s3 + $0x78] sm:$0xff]  ;;  %v645_v42 = vld [vmem:[%s2105_s3 + $0x20] sm:$0xff] }
  0x7a   :  { %561 = vmatpush.msrb.mxu0 %v197_v44  ;;  %580 = vmatpush.msrb.mxu1 %v231_v45  ;;  %v662_v27 = vld [vmem:[%s2105_s3 + $0xa8] sm:$0xff]  ;;  %v652_v37 = vld [vmem:[%s2105_s3 + $0x58] sm:$0xff]  ;;  %v643_v44 = vld [vmem:[%s2105_s3 + $0x10] sm:$0xff] }
  0x7b   :  { %602 = vmatpush.msrb.mxu2 %v259_v46  ;;  %621 = vmatpush.msrb.mxu3 %v293_v47  ;;  %v658_v31 = vld [vmem:[%s2105_s3 + $0x88] sm:$0xff]  ;;  %v648_v41 = vld [vmem:[%s2105_s3 + $0x38] sm:$0xff]  ;;  %v641_v46 = vld [vmem:[%s2105_s3] sm:$0xff] }
  0x7c   :  { %562 = vmatpush.msrb.mxu0 %v195_v48  ;;  %581 = vmatpush.msrb.mxu1 %v229_v49  ;;  %v654_v35 = vld [vmem:[%s2105_s3 + $0x68] sm:$0xff]  ;;  %v644_v45 = vld [vmem:[%s2105_s3 + $0x18] sm:$0xff]  ;;  %v703_v48 = vld [vmem:[%s2105_s3 + $0x1f0] sm:$0xff] }
  0x7d   :  { %603 = vmatpush.msrb.mxu2 %v257_v50  ;;  %622 = vmatpush.msrb.mxu3 %v291_v51  ;;  %v650_v39 = vld [vmem:[%s2105_s3 + $0x48] sm:$0xff]  ;;  %v704_v49 = vld [vmem:[%s2105_s3 + $0x1f8] sm:$0xff]  ;;  %v701_v50 = vld [vmem:[%s2105_s3 + $0x1e0] sm:$0xff] }
  0x7e   :  { %563 = vmatpush.msrb.mxu0 %v193_v52  ;;  %582 = vmatpush.msrb.mxu1 %v227_v53  ;;  %v646_v43 = vld [vmem:[%s2105_s3 + $0x28] sm:$0xff]  ;;  %v699_v52 = vld [vmem:[%s2105_s3 + $0x1d0] sm:$0xff]  ;;  %v700_v53 = vld [vmem:[%s2105_s3 + $0x1d8] sm:$0xff] }
  0x7f   :  { %604 = vmatpush.msrb.mxu2 %v255_v54  ;;  %623 = vmatpush.msrb.mxu3 %v289_v55  ;;  %v642_v47 = vld [vmem:[%s2105_s3 + $0x8] sm:$0xff]  ;;  %v1906_v54 = vld [vmem:[%s2104_s2] sm:$0x3] }
  0x80   :  { %564 = vmatpush.msrb.mxu0 %v191_v57  ;;  %583 = vmatpush.msrb.mxu1 %v225_v58  ;;  %v702_v51 = vld [vmem:[%s2105_s3 + $0x1e8] sm:$0xff]  ;;  %v697_v55 = vld [vmem:[%s2105_s3 + $0x1c0] sm:$0xff]  ;;  %v310_v58 = vperm.slane %v1906_v54, 0 }
  0x81   :  { %605 = vmatpush.msrb.mxu2 %v253_v59  ;;  %624 = vmatpush.msrb.mxu3 %v287_v60  ;;  %v698_v57 = vld [vmem:[%s2105_s3 + $0x1c8] sm:$0xff]  ;;  %v695_v59 = vld [vmem:[%s2105_s3 + $0x1b0] sm:$0xff]  ;;  %v696_v60 = vld [vmem:[%s2105_s3 + $0x1b8] sm:$0xff] }
  0x82   :  { %530 = vmatmul.f32.vlgmr.msra.gmra.mxu2 %v1328_v56  ;;  %565 = vmatpush.msrb.mxu0 %v189_v63  ;;  %v283_v56 = vld [vmem:[%s2103_s1 + $0x738] sm:$0xff]  ;;  %v693_v63 = vld [vmem:[%s2105_s3 + $0x1a0] sm:$0xff] }
  0x83   :  { %584 = vmatpush.msrb.mxu1 %v223_v0  ;;  %606 = vmatpush.msrb.mxu2 %v251_v1  ;;  %v694_v0 = vld [vmem:[%s2105_s3 + $0x1a8] sm:$0xff] }
  0x84   :  { %625 = vmatpush.msrb.mxu3 %v285_v2  ;;  %490 = vmatmul.f32.vlgmr.msra.gmra.mxu0 %v1345_v61  ;;  %v247_v61 = vld [vmem:[%s2103_s1 + $0x618] sm:$0xff] }
  0x85   :  { %550 = vmatmul.f32.vlgmr.msra.gmra.mxu3 %v1351_v62  ;;  %566 = vmatpush.msrb.mxu0 %v187_v4  ;;  %v183_v62 = vld [vmem:[%s2103_s1 + $0x418] sm:$0xff] }
  0x86   :  { %585 = vmatpush.msrb.mxu1 %v221_v5  ;;  %607 = vmatpush.msrb.mxu2 %v249_v6 }
  0x87   :  { %626 = vmatpush.msrb.mxu3 %v283_v56  ;;  %510 = vmatmul.f32.vlgmr.msra.gmra.mxu1 %v1369_v3  ;;  %v181_v3 = vld [vmem:[%s2103_s1 + $0x408] sm:$0xff] }
  0x88   :  { %567 = vmatpush.msrb.mxu0 %v185_v7  ;;  %586 = vmatpush.msrb.mxu1 %v219_v8 }
  0x89   :  { %608 = vmatpush.msrb.mxu2 %v247_v61  ;;  %627 = vmatpush.msrb.mxu3 %v281_v9 }
  0x8a   :  { %568 = vmatpush.msrb.mxu0 %v183_v62  ;;  %587 = vmatpush.msrb.mxu1 %v217_v10 }
  0x8b   :  { %609 = vmatpush.msrb.mxu2 %v245_v11  ;;  %628 = vmatpush.msrb.mxu3 %v279_v13 }
  0x8c   :  { %610 = vmatmul.f32.vlgmr.msrb.gmra.mxu2 %v1400_v12  ;;  %569 = vmatpush.msrb.mxu0 %v181_v3  ;;  %v669_v12 = vld [vmem:[%s2105_s3 + $0xe0] sm:$0xff] }
  0x8d   :  { %588 = vmatpush.msrb.mxu1 %v215_v14  ;;  %629 = vmatpush.msrb.mxu3 %v277_v15  ;;  %v636_v14 = vstv %s1927_s11 }
  0x8e   :  { %570 = vmatmul.f32.vlgmr.msrb.gmra.mxu0 %v1417_v17  ;;  %630 = vmatmul.f32.vlgmr.msrb.gmra.mxu3 %v1423_v18  ;;  %v668_v17 = vld [vmem:[%s2105_s3 + $0xd8] sm:$0xff]  ;;  %v665_v18 = vld [vmem:[%s2105_s3 + $0xc0] sm:$0xff] }
  0x8f   :  { %589 = vmatpush.msrb.mxu1 %v213_v16  ;;  %711 = vmatpush.msra.mxu0 %v671_v19 }
  0x90   :  { %590 = vmatmul.f32.vlgmr.msrb.gmra.mxu1 %v1441_v23  ;;  %751 = vmatpush.msra.mxu2 %v672_v20  ;;  %v666_v23 = vld [vmem:[%s2105_s3 + $0xc8] sm:$0xff]  ;;  %v691_v20 = vld [vmem:[%s2105_s3 + $0x190] sm:$0xff] }
  0x91   :  { %712 = vmatpush.msra.mxu0 %v669_v12  ;;  %731 = vmatpush.msra.mxu1 %v703_v48  ;;  %v692_v12 = vld [vmem:[%s2105_s3 + $0x198] sm:$0xff] }
  0x92   :  { %752 = vmatpush.msra.mxu2 %v670_v21  ;;  %771 = vmatpush.msra.mxu3 %v704_v49  ;;  %v689_v21 = vld [vmem:[%s2105_s3 + $0x180] sm:$0xff] }
  0x93   :  { %713 = vmatpush.msra.mxu0 %v667_v22  ;;  %732 = vmatpush.msra.mxu1 %v701_v50  ;;  %v690_v22 = vld [vmem:[%s2105_s3 + $0x188] sm:$0xff] }
  0x94   :  { %753 = vmatpush.msra.mxu2 %v668_v17  ;;  %772 = vmatpush.msra.mxu3 %v702_v51  ;;  %v687_v17 = vld [vmem:[%s2105_s3 + $0x170] sm:$0xff] }
  0x95   :  { %714 = vmatpush.msra.mxu0 %v665_v18  ;;  %733 = vmatpush.msra.mxu1 %v699_v52  ;;  %v688_v18 = vld [vmem:[%s2105_s3 + $0x178] sm:$0xff] }
  0x96   :  { %754 = vmatpush.msra.mxu2 %v666_v23  ;;  %773 = vmatpush.msra.mxu3 %v700_v53  ;;  %v685_v23 = vld [vmem:[%s2105_s3 + $0x160] sm:$0xff] }
  0x97   :  { %715 = vmatpush.msra.mxu0 %v663_v24  ;;  %734 = vmatpush.msra.mxu1 %v697_v55  ;;  %v686_v24 = vld [vmem:[%s2105_s3 + $0x168] sm:$0xff] }
  0x98   :  { %755 = vmatpush.msra.mxu2 %v664_v25  ;;  %774 = vmatpush.msra.mxu3 %v698_v57  ;;  %v683_v25 = vld [vmem:[%s2105_s3 + $0x150] sm:$0xff]  ;;  %v813_v57 = vld [vmem:[%s2107_s5 + $0x78] sm:$0xff] }
  0x99   :  { %716 = vmatpush.msra.mxu0 %v661_v26  ;;  %735 = vmatpush.msra.mxu1 %v695_v59  ;;  %v684_v26 = vld [vmem:[%s2105_s3 + $0x158] sm:$0xff] }
  0x9a   :  { %756 = vmatpush.msra.mxu2 %v662_v27  ;;  %775 = vmatpush.msra.mxu3 %v696_v60  ;;  %v681_v27 = vld [vmem:[%s2105_s3 + $0x140] sm:$0xff]  ;;  %v829_v59 = vld [vmem:[%s2107_s5 + $0xf8] sm:$0xff]  ;;  %v811_v60 = vld [vmem:[%s2107_s5 + $0x68] sm:$0xff] }
  0x9b   :  { %717 = vmatpush.msra.mxu0 %v659_v28  ;;  %736 = vmatpush.msra.mxu1 %v693_v63  ;;  %v682_v28 = vld [vmem:[%s2105_s3 + $0x148] sm:$0xff]  ;;  %v828_v63 = vld [vmem:[%s2107_s5 + $0xf0] sm:$0xff] }
  0x9c   :  { %757 = vmatpush.msra.mxu2 %v660_v29  ;;  %776 = vmatpush.msra.mxu3 %v694_v0  ;;  %v679_v29 = vld [vmem:[%s2105_s3 + $0x130] sm:$0xff]  ;;  %v827_v0 = vld [vmem:[%s2107_s5 + $0xe8] sm:$0xff] }
  0x9d   :  { %718 = vmatpush.msra.mxu0 %v657_v30  ;;  %737 = vmatpush.msra.mxu1 %v691_v20  ;;  %v680_v30 = vld [vmem:[%s2105_s3 + $0x138] sm:$0xff]  ;;  %v799_v20 = vld [vmem:[%s2107_s5 + $0x8] sm:$0xff] }
  0x9e   :  { %758 = vmatpush.msra.mxu2 %v658_v31  ;;  %777 = vmatpush.msra.mxu3 %v692_v12  ;;  %v677_v31 = vld [vmem:[%s2105_s3 + $0x120] sm:$0xff] }
  0x9f   :  { %719 = vmatpush.msra.mxu0 %v655_v32  ;;  %738 = vmatpush.msra.mxu1 %v689_v21  ;;  %v678_v32 = vld [vmem:[%s2105_s3 + $0x128] sm:$0xff]  ;;  %v818_v12 = vld [vmem:[%s2107_s5 + $0xa0] sm:$0xff] }
  0xa0   :  { %759 = vmatpush.msra.mxu2 %v656_v33  ;;  %778 = vmatpush.msra.mxu3 %v690_v22  ;;  %v675_v33 = vld [vmem:[%s2105_s3 + $0x110] sm:$0xff]  ;;  %v798_v21 = vld [vmem:[%s2107_s5] sm:$0xff]  ;;  %v817_v22 = vld [vmem:[%s2107_s5 + $0x98] sm:$0xff] }
  0xa1   :  { %720 = vmatpush.msra.mxu0 %v653_v34  ;;  %739 = vmatpush.msra.mxu1 %v687_v17  ;;  %v676_v34 = vld [vmem:[%s2105_s3 + $0x118] sm:$0xff]  ;;  %v816_v17 = vld [vmem:[%s2107_s5 + $0x90] sm:$0xff] }
  0xa2   :  { %760 = vmatpush.msra.mxu2 %v654_v35  ;;  %779 = vmatpush.msra.mxu3 %v688_v18  ;;  %v673_v35 = vld [vmem:[%s2105_s3 + $0x100] sm:$0xff]  ;;  %v815_v18 = vld [vmem:[%s2107_s5 + $0x88] sm:$0xff] }
  0xa3   :  { %721 = vmatpush.msra.mxu0 %v651_v36  ;;  %740 = vmatpush.msra.mxu1 %v685_v23  ;;  %v674_v36 = vld [vmem:[%s2105_s3 + $0x108] sm:$0xff]  ;;  %v814_v23 = vld [vmem:[%s2107_s5 + $0x80] sm:$0xff] }
  0xa4   :  { %761 = vmatpush.msra.mxu2 %v652_v37  ;;  %780 = vmatpush.msra.mxu3 %v686_v24  ;;  %v311_v37 = vperm.slane %v1906_v54, 1  ;;  %v705_v24 = vld [vmem:[%s2106_s4] sm:$0x3] }
  0xa5   :  { %722 = vmatpush.msra.mxu0 %v649_v38  ;;  %741 = vmatpush.msra.mxu1 %v683_v25  ;;  %v707_v25 = vperm.slane %v705_v24, 0 }
  0xa6   :  { %762 = vmatpush.msra.mxu2 %v650_v39  ;;  %781 = vmatpush.msra.mxu3 %v684_v26 }
  0xa7   :  { %723 = vmatpush.msra.mxu0 %v647_v40  ;;  %742 = vmatpush.msra.mxu1 %v681_v27 }
  0xa8   :  { %763 = vmatpush.msra.mxu2 %v648_v41  ;;  %782 = vmatpush.msra.mxu3 %v682_v28 }
  0xa9   :  { %724 = vmatpush.msra.mxu0 %v645_v42  ;;  %743 = vmatpush.msra.mxu1 %v679_v29  ;;  %v793_v29 = vstv %s897_s12 }
  0xaa   :  { %764 = vmatpush.msra.mxu2 %v646_v43  ;;  %783 = vmatpush.msra.mxu3 %v680_v30  ;;  %v708_v30 = vperm.slane %v705_v24, 1 }
  0xab   :  { %725 = vmatpush.msra.mxu0 %v643_v44  ;;  %744 = vmatpush.msra.mxu1 %v677_v31 }
  0xac   :  { %765 = vmatpush.msra.mxu2 %v644_v45  ;;  %784 = vmatpush.msra.mxu3 %v678_v32 }
  0xad   :  { %726 = vmatpush.msra.mxu0 %v641_v46  ;;  %745 = vmatpush.msra.mxu1 %v675_v33 }
  0xae   :  { %766 = vmatpush.msra.mxu2 %v642_v47  ;;  %785 = vmatpush.msra.mxu3 %v676_v34 }
  0xaf   :  { %746 = vmatpush.msra.mxu1 %v673_v35  ;;  %834 = vmatpush.msrb.mxu0 %v813_v57 }
  0xb0   :  { %786 = vmatpush.msra.mxu3 %v674_v36 }
  0xb1   :  { %854 = vmatpush.msrb.mxu1 %v829_v59 }
  0xb3   :  { %855 = vmatpush.msrb.mxu1 %v828_v63 }
  0xb5   :  { %856 = vmatpush.msrb.mxu1 %v827_v0 }
  0xc3   :  { %v331_v1 = vpop.f32.mrf.mxu0 }
  0xc4   :  { %v332_v2 = vadd.f32 %v331_v1, %v310_v58  ;;  %v812_v58 = vld [vmem:[%s2107_s5 + $0x70] sm:$0xff]  ;;  %v810_v1 = vld [vmem:[%s2107_s5 + $0x60] sm:$0xff] }
  0xc5   :  { %835 = vmatpush.msrb.mxu0 %v812_v58 }
  0xc6   :  { %v351_v4 = vpop.f32.mrf.mxu1 }
  0xc7   :  { %v352_v5 = vadd.f32 %v351_v4, %v332_v2  ;;  %v371_v6 = vpop.f32.mrf.mxu2  ;;  %836 = vmatpush.msrb.mxu0 %v811_v60  ;;  %v826_v2 = vld [vmem:[%s2107_s5 + $0xe0] sm:$0xff]  ;;  %v809_v4 = vld [vmem:[%s2107_s5 + $0x58] sm:$0xff] }
  0xc8   :  { %857 = vmatpush.msrb.mxu1 %v826_v2 }
  0xc9   :  { %v372_v56 = vadd.f32 %v371_v6, %v352_v5  ;;  %837 = vmatpush.msrb.mxu0 %v810_v1  ;;  %v825_v5 = vld [vmem:[%s2107_s5 + $0xd8] sm:$0xff]  ;;  %v808_v6 = vld [vmem:[%s2107_s5 + $0x50] sm:$0xff] }
  0xca   :  { %v391_v7 = vpop.f32.mrf.mxu3  ;;  %858 = vmatpush.msrb.mxu1 %v825_v5 }
  0xcb   :  { %v392_v8 = vadd.f32 %v391_v7, %v372_v56  ;;  %838 = vmatpush.msrb.mxu0 %v809_v4  ;;  %v824_v56 = vld [vmem:[%s2107_s5 + $0xd0] sm:$0xff]  ;;  %v807_v7 = vld [vmem:[%s2107_s5 + $0x48] sm:$0xff] }
  0xcc   :  { %859 = vmatpush.msrb.mxu1 %v824_v56 }
  0xcd   :  { %v411_v61 = vpop.f32.mrf.mxu0  ;;  %839 = vmatpush.msrb.mxu0 %v808_v6 }
  0xce   :  { %v412_v9 = vadd.f32 %v411_v61, %v392_v8  ;;  %v823_v8 = vld [vmem:[%s2107_s5 + $0xc8] sm:$0xff]  ;;  %v806_v61 = vld [vmem:[%s2107_s5 + $0x40] sm:$0xff] }
  0xcf   :  { %840 = vmatpush.msrb.mxu0 %v807_v7  ;;  %860 = vmatpush.msrb.mxu1 %v823_v8 }
  0xd0   :  { %v431_v62 = vpop.f32.mrf.mxu1 }
  0xd1   :  { %v432_v10 = vadd.f32 %v431_v62, %v412_v9  ;;  %v451_v11 = vpop.f32.mrf.mxu2  ;;  %v822_v9 = vld [vmem:[%s2107_s5 + $0xc0] sm:$0xff]  ;;  %v805_v62 = vld [vmem:[%s2107_s5 + $0x38] sm:$0xff]  ;;  %841 = vmatpush.msrb.mxu0 %v806_v61 }
  0xd2   :  { %861 = vmatpush.msrb.mxu1 %v822_v9 }
  0xd3   :  { %v452_v13 = vadd.f32 %v451_v11, %v432_v10  ;;  %v821_v10 = vld [vmem:[%s2107_s5 + $0xb8] sm:$0xff]  ;;  %v804_v11 = vld [vmem:[%s2107_s5 + $0x30] sm:$0xff]  ;;  %842 = vmatpush.msrb.mxu0 %v805_v62 }
  0xd4   :  { %v471_v3 = vpop.f32.mrf.mxu3  ;;  %862 = vmatpush.msrb.mxu1 %v821_v10 }
  0xd5   :  { %v472_v15 = vadd.f32 %v471_v3, %v452_v13  ;;  %v820_v13 = vld [vmem:[%s2107_s5 + $0xb0] sm:$0xff]  ;;  %v803_v3 = vld [vmem:[%s2107_s5 + $0x28] sm:$0xff]  ;;  %843 = vmatpush.msrb.mxu0 %v804_v11 }
  0xd6   :  { %863 = vmatpush.msrb.mxu1 %v820_v13 }
  0xd7   :  { %vm634_vm0 = vcmp.gt.f32.partialorder %v472_v15, 0.0  ;;  %v637_v16 = vmul.f32 %v636_v14, %v472_v15  ;;  %844 = vmatpush.msrb.mxu0 %v803_v3 }
  0xd9   :  { %v639_v19 = vsel %vm634_vm0, %v472_v15, %v637_v16  ;;  %v801_v15 = vld [vmem:[%s2107_s5 + $0x18] sm:$0xff]  ;;  %v800_v16 = vld [vmem:[%s2107_s5 + $0x10] sm:$0xff] }
  0xda   :  { %727 = vmatmul.f32.vlgmr.msra.gmra.mxu0 %v639_v19  ;;  %767 = vmatmul.f32.vlgmr.msra.gmra.mxu2 %v639_v19  ;;  %v819_v19 = vld [vmem:[%s2107_s5 + $0xa8] sm:$0xff] }
  0xdb   :  { %864 = vmatpush.msrb.mxu1 %v819_v19 }
  0xdd   :  { %865 = vmatpush.msrb.mxu1 %v818_v12 }
  0xdf   :  { %866 = vmatpush.msrb.mxu1 %v817_v22 }
  0xe1   :  { %867 = vmatpush.msrb.mxu1 %v816_v17 }
  0xe3   :  { %868 = vmatpush.msrb.mxu1 %v815_v18 }
  0xe5   :  { %869 = vmatpush.msrb.mxu1 %v814_v23 }
 0x101   :  { %v491_v38 = vpop.f32.mrf.mxu0 }
 0x102   :  { %v492_v39 = vadd.f32 %v491_v38, %v311_v37 }
 0x104   :  { %v511_v40 = vpop.f32.mrf.mxu1 }
 0x105   :  { %v512_v41 = vadd.f32 %v511_v40, %v492_v39  ;;  %v531_v42 = vpop.f32.mrf.mxu2  ;;  %v899_v40 = vld [vmem:[%s2108_s6] ss:$0 sm:$0xff] }
 0x107   :  { %v532_v43 = vadd.f32 %v531_v42, %v512_v41 }
 0x108   :  { %v551_v44 = vpop.f32.mrf.mxu3 }
 0x109   :  { %v552_v45 = vadd.f32 %v551_v44, %v532_v43 }
 0x10b   :  { %v571_v46 = vpop.f32.mrf.mxu0 }
 0x10c   :  { %v572_v47 = vadd.f32 %v571_v46, %v552_v45 }
 0x10d   :  { %v591_v48 = vpop.f32.mrf.mxu1 }
 0x10e   :  { %v592_v49 = vadd.f32 %v591_v48, %v572_v47 }
 0x10f   :  { %v611_v50 = vpop.f32.mrf.mxu2 }
 0x110   :  { %v612_v51 = vadd.f32 %v611_v50, %v592_v49 }
 0x111   :  { %v631_v52 = vpop.f32.mrf.mxu3 }
 0x112   :  { %v632_v53 = vadd.f32 %v631_v52, %v612_v51 }
 0x114   :  { %vm635_vm1 = vcmp.gt.f32.partialorder %v632_v53, 0.0  ;;  %v638_v54 = vmul.f32 %v636_v14, %v632_v53  ;;  %v802_v14 = vld [vmem:[%s2107_s5 + $0x20] sm:$0xff] }
 0x115   :  { %845 = vmatpush.msrb.mxu0 %v802_v14 }
 0x116   :  { %v640_v55 = vsel %vm635_vm1, %v632_v53, %v638_v54 }
 0x117   :  { %747 = vmatmul.f32.vlgmr.msra.gmra.mxu1 %v640_v55  ;;  %787 = vmatmul.f32.vlgmr.msra.gmra.mxu3 %v640_v55 }
 0x118   :  { %846 = vmatpush.msrb.mxu0 %v801_v15 }
 0x11a   :  { %847 = vmatpush.msrb.mxu0 %v800_v16 }
 0x11c   :  { %848 = vmatpush.msrb.mxu0 %v799_v20 }
 0x11e   :  { %849 = vmatpush.msrb.mxu0 %v798_v21 }
 0x157   :  { %v728_v26 = vpop.f32.mrf.mxu0 }
 0x158   :  { %v729_v27 = vadd.f32 %v728_v26, %v707_v25 }
 0x15d   :  { %v768_v32 = vpop.f32.mrf.mxu2 }
 0x15e   :  { %v769_v34 = vadd.f32 %v768_v32, %v708_v30 }
 0x194   :  { %v748_v28 = vpop.f32.mrf.mxu1 }
 0x195   :  { %v749_v31 = vadd.f32 %v748_v28, %v729_v27 }
 0x197   :  { %vm791_vm2 = vcmp.gt.f32.partialorder %v749_v31, 0.0  ;;  %v794_v33 = vmul.f32 %v793_v29, %v749_v31 }
 0x199   :  { %v796_v35 = vsel %vm791_vm2, %v749_v31, %v794_v33 }
 0x19a   :  { %v788_v36 = vpop.f32.mrf.mxu3  ;;  %850 = vmatmul.f32.vlgmr.msrb.gmra.mxu0 %v796_v35 }
 0x19b   :  { %v789_v37 = vadd.f32 %v788_v36, %v769_v34 }
 0x19d   :  { %vm792_vm3 = vcmp.gt.f32.partialorder %v789_v37, 0.0  ;;  %v795_v38 = vmul.f32 %v793_v29, %v789_v37 }
 0x19f   :  { %v797_v39 = vsel %vm792_vm3, %v789_v37, %v795_v38 }
 0x1a0   :  { %870 = vmatmul.f32.vlgmr.msrb.gmra.mxu1 %v797_v39 }
 0x217   :  { %v851_v41 = vpop.f32.mrf.mxu0 }
 0x218   :  { %v852_v42 = vadd.f32 %v899_v40, %v851_v41 }
 0x21d   :  { %v871_v43 = vpop.f32.mrf.mxu1 }
 0x21e   :  { %v872_v44 = vadd.f32 %v871_v43, %v852_v42 }
 0x220   :  { %v874_v45 = vmul.f32 %v872_v44, %v872_v44 }
 0x222   :  { %v876_v46 = vsel %vm875_vm4, %v874_v45, 0.0 }
 0x223   :  { %877 = vadd.xlane.f32.xlu0 %v876_v46 }
 0x296   :  { %v878_v47 = vpop.xlane.xlu0 %877 }
 0x297   :  { %v879_v48 = vadd.f32 1e-12, %v878_v47 }
 0x299   :  { %900 = vrsqrt.f32 %v879_v48  ;;  %vm886_vm6 = vweird.f32 %v879_v48 }
 0x29f   :  { %v901_v49 = vpop.eup %900 }
 0x2a0   :  { %v881_v50 = vmul.f32 %v901_v49, %v879_v48  ;;  %vm887_vm5 = vweird.f32 %v901_v49 }
 0x2a1   :  { %vm888_vm7 = vmor %vm886_vm6, %vm887_vm5 }
 0x2a2   :  { %v882_v51 = vmul.f32 %v901_v49, %v881_v50 }
 0x2a4   :  { %v883_v52 = vmul.f32 0.5, %v882_v51 }
 0x2a6   :  { %v884_v53 = vsub.f32 1.5, %v883_v52 }
 0x2a8   :  { %v885_v54 = vmul.f32 %v901_v49, %v884_v53 }
 0x2aa   :  { %v889_v55 = vsel %vm888_vm7, %v901_v49, %v885_v54 }
 0x2ab   :  { %v890_v57 = vmul.f32 %v889_v55, %v872_v44 }
 0x2ad   :  { %891 = vst.msk [vmem:[%s2110_s8] sm:$0xff] %vm875_vm4, %v890_v57 }
 0x2ae   :  { %896 = vsyncpa [#allocation3], 1 }

</bundles_post_ra>
